<compile_context>
chip_gen: v5e
topology: v5e:2x2
jax: 0.10.0
libtpu: 0.0.40
codegen_flags: <defaults>
</compile_context>

<pallas_src>
import functools

import jax
import jax.numpy as jnp
from jax import lax
from jax.experimental import pallas as pl
from jax.experimental.pallas import tpu as pltpu


def _cp():
    return pltpu.CompilerParams(
        dimension_semantics=("parallel",),
        vmem_limit_bytes=32 * 1024 * 1024,
    )


# ---------------------------------------------------------------------------
# Pallas kernels
# ---------------------------------------------------------------------------
def _matmul_bias_act_kernel(a_ref, w_ref, b_ref, o_ref, *, relu):
    # a: (TM, K) bf16, w: (K, N) bf16 (VMEM-resident), b: (1, N) f32
    acc = jnp.dot(a_ref[...], w_ref[...], preferred_element_type=jnp.float32)
    acc = acc + b_ref[...]
    if relu:
        acc = jnp.maximum(acc, 0.0)
    o_ref[...] = acc.astype(o_ref.dtype)


def matmul_bias_act(a, w, b, *, tm, out_dtype, relu):
    M, K = a.shape
    K2, N = w.shape
    assert K == K2 and M % tm == 0
    return pl.pallas_call(
        functools.partial(_matmul_bias_act_kernel, relu=relu),
        out_shape=jax.ShapeDtypeStruct((M, N), out_dtype),
        grid=(M // tm,),
        in_specs=[
            pl.BlockSpec((tm, K), lambda i: (i, 0)),   # activation tile
            pl.BlockSpec((K, N), lambda i: (0, 0)),    # weight resident
            pl.BlockSpec((1, N), lambda i: (0, 0)),    # bias resident
        ],
        out_specs=pl.BlockSpec((tm, N), lambda i: (i, 0)),
        compiler_params=_cp(),
    )(a, w, b)


def _conv_rowtap_kernel(x_ref, w_ref, b_ref, o_ref, *, oh):
    # Implicit GEMM over the KH kernel rows (no materialized im2col).
    # x_ref: (TB, IH, OW, KW*Cin) bf16   (W-taps pre-unrolled into lanes)
    # w_ref: (KH, KW*Cin, Cout)   bf16   (VMEM-resident)
    # b_ref: (1, Cout)            f32
    # o_ref: (TB*OH*OW, Cout)
    tb, _, ow, kc = x_ref.shape
    kh, _, cout = w_ref.shape
    acc = jnp.zeros((tb * oh * ow, cout), jnp.float32)
    for i in range(kh):
        # leading-dim (H) window load; reshape is layout-preserving (OW == 8)
        a = x_ref[:, i:i + oh, :, :].astype(jnp.float32)
        a = a.reshape(tb * oh * ow, kc).astype(jnp.bfloat16)
        acc = acc + jnp.dot(a, w_ref[i], preferred_element_type=jnp.float32)
    acc = jnp.maximum(acc + b_ref[...], 0.0)   # bias + ReLU in f32
    o_ref[...] = acc.astype(o_ref.dtype)


def conv_rowtap_relu(xw, w, b, *, tb, oh, out_dtype):
    Bp, IH, OW, KC = xw.shape
    KH, KC2, Cout = w.shape
    assert KC == KC2 and Bp % tb == 0 and IH == oh + KH - 1
    M = Bp * oh * OW
    return pl.pallas_call(
        functools.partial(_conv_rowtap_kernel, oh=oh),
        out_shape=jax.ShapeDtypeStruct((M, Cout), out_dtype),
        grid=(Bp // tb,),
        in_specs=[
            pl.BlockSpec((tb, IH, OW, KC), lambda i: (i, 0, 0, 0)),
            pl.BlockSpec((KH, KC, Cout), lambda i: (0, 0, 0)),
            pl.BlockSpec((1, Cout), lambda i: (0, 0)),
        ],
        out_specs=pl.BlockSpec((tb * oh * OW, Cout), lambda i: (i, 0)),
        compiler_params=_cp(),
    )(xw, w, b)


def _max4_kernel(a_ref, b_ref, c_ref, d_ref, o_ref):
    o_ref[...] = jnp.maximum(
        jnp.maximum(a_ref[...], b_ref[...]),
        jnp.maximum(c_ref[...], d_ref[...]),
    )


def maxpool2x2_nhwc(y, *, tb):
    """MaxPool2d(2,2) on NHWC via one lane-dense elementwise-max kernel."""
    Bp, H, W, C = y.shape
    H2, W2 = H // 2, W // 2
    corners = [
        y[:, 0::2, 0::2, :], y[:, 0::2, 1::2, :],
        y[:, 1::2, 0::2, :], y[:, 1::2, 1::2, :],
    ]
    # lane-dense slabs: last dim = W2*C (multiple of 128 -> unmasked stores)
    corners = [c.reshape(Bp, H2, W2 * C) for c in corners]
    spec = pl.BlockSpec((tb, H2, W2 * C), lambda i: (i, 0, 0))
    out = pl.pallas_call(
        _max4_kernel,
        out_shape=jax.ShapeDtypeStruct((Bp, H2, W2 * C), y.dtype),
        grid=(Bp // tb,),
        in_specs=[spec] * 4,
        out_specs=spec,
        compiler_params=_cp(),
    )(*corners)
    return out.reshape(Bp, H2, W2, C)


def _mlp_kernel(x_ref, w1_ref, b1_ref, w2_ref, b2_ref, o_ref):
    # fc1 + ReLU + fc2 fused; the (TM, 64) intermediate never leaves VMEM.
    h = jnp.dot(x_ref[...], w1_ref[...], preferred_element_type=jnp.float32)
    h = jnp.maximum(h + b1_ref[...], 0.0)
    o = jnp.dot(h.astype(jnp.bfloat16), w2_ref[...],
                preferred_element_type=jnp.float32)
    o_ref[...] = (o + b2_ref[...]).astype(o_ref.dtype)


def mlp_fused(x, w1, b1, w2p, b2p, *, tm):
    M, K = x.shape
    N1 = w1.shape[1]
    N2 = w2p.shape[1]
    assert M % tm == 0
    return pl.pallas_call(
        _mlp_kernel,
        out_shape=jax.ShapeDtypeStruct((M, N2), jnp.float32),
        grid=(M // tm,),
        in_specs=[
            pl.BlockSpec((tm, K), lambda i: (i, 0)),
            pl.BlockSpec((K, N1), lambda i: (0, 0)),
            pl.BlockSpec((1, N1), lambda i: (0, 0)),
            pl.BlockSpec((N1, N2), lambda i: (0, 0)),
            pl.BlockSpec((1, N2), lambda i: (0, 0)),
        ],
        out_specs=pl.BlockSpec((tm, N2), lambda i: (i, 0)),
        compiler_params=_cp(),
    )(x, w1, b1, w2p, b2p)


# ---------------------------------------------------------------------------
# Forward pass (mirrors ConvNet.forward)
# ---------------------------------------------------------------------------
def _pad_batch(x, bp):
    if x.shape[0] == bp:
        return x
    pad = [(0, bp - x.shape[0])] + [(0, 0)] * (x.ndim - 1)
    return jnp.pad(x, pad)


def convnet_forward(params, x):
    # x: (B, 1, 28, 28) float32, NCHW (PyTorch convention)
    B = x.shape[0]
    tb = min(8, B)                         # batch tile
    bp = ((B + tb - 1) // tb) * tb         # padded batch for the conv stages

    # --- one-time layout plumbing: weights -> tap-major / NHWC, bf16 --------
    w1 = jnp.transpose(params["w1"], (2, 3, 1, 0)).reshape(25, 64)
    w1 = w1.astype(jnp.bfloat16)                       # (kh*kw*cin, cout)
    b1 = params["b1"].reshape(1, 64).astype(jnp.float32)
    w2 = jnp.transpose(params["w2"], (2, 3, 1, 0)).reshape(5, 5 * 64, 128)
    w2 = w2.astype(jnp.bfloat16)                       # (kh, kw*cin, cout)
    b2 = params["b2"].reshape(1, 128).astype(jnp.float32)
    # fc1 rows reordered from torch's (C,H,W) flatten to our (H,W,C) flatten
    wf1 = params["wf1"].reshape(128, 4, 4, 64).transpose(1, 2, 0, 3)
    wf1 = wf1.reshape(128 * 4 * 4, 64).astype(jnp.bfloat16)
    bf1 = params["bf1"].reshape(1, 64).astype(jnp.float32)
    wf2 = jnp.pad(params["wf2"].astype(jnp.bfloat16), ((0, 0), (0, 118)))
    bf2 = jnp.pad(params["bf2"].reshape(1, 10), ((0, 0), (0, 118)))
    bf2 = bf2.astype(jnp.float32)

    # --- conv1 + ReLU (K=25 im2col matmul, fused epilogue) + pool -----------
    xn = jnp.transpose(x, (0, 2, 3, 1)).astype(jnp.bfloat16)  # NHWC (B,28,28,1)
    xn = _pad_batch(xn, bp)
    patches = jnp.concatenate(
        [xn[:, i:i + 24, j:j + 24, :] for i in range(5) for j in range(5)],
        axis=-1)                                        # (bp, 24, 24, 25)
    a1 = patches.reshape(bp * 24 * 24, 25)
    y1 = matmul_bias_act(a1, w1, b1, tm=tb * 24 * 24,
                         out_dtype=jnp.bfloat16, relu=True)
    y1 = y1.reshape(bp, 24, 24, 64)
    p1 = maxpool2x2_nhwc(y1, tb=tb)                     # (bp, 12, 12, 64)

    # --- conv2 + ReLU (implicit GEMM over kernel rows) + pool ---------------
    # unroll the 5 W-taps into the lane dim (small 5x block, not 25x im2col);
    # the 5 H-taps stay implicit inside the kernel.
    xw = jnp.concatenate([p1[:, :, j:j + 8, :] for j in range(5)], axis=-1)
    y2 = conv_rowtap_relu(xw, w2, b2, tb=tb, oh=8, out_dtype=jnp.bfloat16)
    y2 = y2.reshape(bp, 8, 8, 128)
    p2 = maxpool2x2_nhwc(y2, tb=tb)                     # (bp, 4, 4, 128)

    # --- flatten (torch .view semantics via the wf1 row permutation) --------
    feat = p2[:B].reshape(B, 128 * 4 * 4).astype(jnp.bfloat16)
    bf = ((B + 7) // 8) * 8
    tm = min(bf, 512)
    bf = ((bf + tm - 1) // tm) * tm
    feat = _pad_batch(feat, bf)

    # --- fc1 + ReLU + fc2 fused (N padded to 128 lanes) ---------------------
    out = mlp_fused(feat, wf1, bf1, wf2, bf2, tm=tm)    # (bf, 128) f32
    return out[:B, :10]


# ---------------------------------------------------------------------------
# Pure-JAX reference (f32) for a sanity check
# ---------------------------------------------------------------------------
def convnet_reference(params, x):
    dn = ("NCHW", "OIHW", "NCHW")
    y = lax.conv_general_dilated(x, params["w1"], (1, 1), "VALID",
                                 dimension_numbers=dn)
    y = jnp.maximum(y + params["b1"][None, :, None, None], 0.0)
    y = lax.reduce_window(y, -jnp.inf, lax.max, (1, 1, 2, 2), (1, 1, 2, 2),
                          "VALID")
    y = lax.conv_general_dilated(y, params["w2"], (1, 1), "VALID",
                                 dimension_numbers=dn)
    y = jnp.maximum(y + params["b2"][None, :, None, None], 0.0)
    y = lax.reduce_window(y, -jnp.inf, lax.max, (1, 1, 2, 2), (1, 1, 2, 2),
                          "VALID")
    y = y.reshape(y.shape[0], -1)                      # torch .view on NCHW
    y = jnp.maximum(y @ params["wf1"] + params["bf1"], 0.0)
    return y @ params["wf2"] + params["bf2"]


# ---------------------------------------------------------------------------
# Parameters (deterministic, PyTorch-default-style uniform init)
# ---------------------------------------------------------------------------
def init_params(key):
    ks = jax.random.split(key, 8)

    def u(k, shape, fan_in):
        lim = 1.0 / (fan_in ** 0.5)
        return jax.random.uniform(k, shape, jnp.float32, -lim, lim)

    return {
        "w1": u(ks[0], (64, 1, 5, 5), 1 * 5 * 5),
        "b1": u(ks[1], (64,), 1 * 5 * 5),
        "w2": u(ks[2], (128, 64, 5, 5), 64 * 5 * 5),
        "b2": u(ks[3], (128,), 64 * 5 * 5),
        "wf1": u(ks[4], (128 * 4 * 4, 64), 128 * 4 * 4),
        "bf1": u(ks[5], (64,), 128 * 4 * 4),
        "wf2": u(ks[6], (64, 10), 64),
        "bf2": u(ks[7], (10,), 64),
    }


if __name__ == "__main__":
    key = jax.random.PRNGKey(0)
    pkey, xkey = jax.random.split(key)
    params = init_params(pkey)

    # input spatial size is pinned to 28x28 by fc1 (128*4*4 flatten)
    x = jax.random.normal(xkey, (2, 1, 28, 28), dtype=jnp.float32)

    out = jax.jit(convnet_forward)(params, x)
    out = jax.block_until_ready(out)
    assert out.shape == (2, 10) and out.dtype == jnp.float32

    ref = jax.block_until_ready(jax.jit(convnet_reference)(params, x))
    assert bool(jnp.allclose(out, ref, rtol=0.2, atol=0.05)), \
        "kernel output mismatch vs f32 reference"

    print("KERNEL_OK")
</pallas_src>

<mosaic_0001>
module attributes {stable_mosaic.version = 11 : i64} {
  func.func @_matmul_bias_act_kernel(%arg0: i32, %arg1: memref<1152x25xbf16, #tpu.memory_space<vmem>>, %arg2: memref<25x64xbf16, #tpu.memory_space<vmem>>, %arg3: memref<1x64xf32, #tpu.memory_space<vmem>>, %arg4: memref<1152x64xbf16, #tpu.memory_space<vmem>>) attributes {dimension_semantics = [#tpu.dimension_semantics<parallel>], iteration_bounds = array<i64: 1>, scalar_prefetch = 0 : i64, scratch_operands = 0 : i64, tpu.core_type = #tpu.core_type<tc>, window_params = [{transform_indices = @transform_0, window_bounds = array<i64: 1152, 25>}, {pipeline_mode = #tpu.pipeline_mode<synchronous>, transform_indices = @transform_1, window_bounds = array<i64: 25, 64>}, {pipeline_mode = #tpu.pipeline_mode<synchronous>, transform_indices = @transform_2, window_bounds = array<i64: 1, 64>}, {transform_indices = @transform_3, window_bounds = array<i64: 1152, 64>}]} {
    %c0 = arith.constant 0 : index
    %c0_0 = arith.constant 0 : index
    %0 = vector.load %arg1[%c0, %c0_0] : memref<1152x25xbf16, #tpu.memory_space<vmem>>, vector<1152x25xbf16>
    %c0_1 = arith.constant 0 : index
    %c0_2 = arith.constant 0 : index
    %1 = vector.load %arg2[%c0_1, %c0_2] : memref<25x64xbf16, #tpu.memory_space<vmem>>, vector<25x64xbf16>
    %cst = arith.constant dense<0.000000e+00> : vector<1152x64xf32>
    %2 = tpu.matmul %0, %1, %cst {dimension_numbers = #tpu.dot_dimension_numbers<[1], [0], [0], [1], [0, 0, 1, 1], [], []>} : vector<1152x25xbf16>, vector<25x64xbf16>, vector<1152x64xf32> -> vector<1152x64xf32>
    %c0_3 = arith.constant 0 : index
    %c0_4 = arith.constant 0 : index
    %3 = vector.load %arg3[%c0_3, %c0_4] : memref<1x64xf32, #tpu.memory_space<vmem>>, vector<1x64xf32>
    %4 = vector.broadcast %3 : vector<1x64xf32> to vector<1152x64xf32>
    %5 = arith.addf %2, %4 : vector<1152x64xf32>
    %cst_5 = arith.constant 0.000000e+00 : f32
    %6 = vector.broadcast %cst_5 : f32 to vector<1152x64xf32>
    %7 = arith.maximumf %5, %6 : vector<1152x64xf32>
    %8 = arith.truncf %7 : vector<1152x64xf32> to vector<1152x64xbf16>
    %c0_6 = arith.constant 0 : index
    %c0_7 = arith.constant 0 : index
    %9 = vector.load %arg4[%c0_6, %c0_7] : memref<1152x64xbf16, #tpu.memory_space<vmem>>, vector<1152x64xbf16>
    tpu.vector_store %arg4[%c0_6, %c0_7], %8 {strides = array<i32>} : memref<1152x64xbf16, #tpu.memory_space<vmem>>, vector<1152x64xbf16>,
    return
  }
  func.func @transform_0(%arg0: i32) -> (i32, i32) {
    %c0_i32 = arith.constant 0 : i32
    %c0_i32_0 = arith.constant 0 : i32
    return %arg0, %c0_i32 : i32, i32
  }
  func.func @transform_1(%arg0: i32) -> (i32, i32) {
    %c0_i32 = arith.constant 0 : i32
    %c0_i32_0 = arith.constant 0 : i32
    %c0_i32_1 = arith.constant 0 : i32
    return %c0_i32, %c0_i32_0 : i32, i32
  }
  func.func @transform_2(%arg0: i32) -> (i32, i32) {
    %c0_i32 = arith.constant 0 : i32
    %c0_i32_0 = arith.constant 0 : i32
    %c0_i32_1 = arith.constant 0 : i32
    return %c0_i32, %c0_i32_0 : i32, i32
  }
  func.func @transform_3(%arg0: i32) -> (i32, i32) {
    %c0_i32 = arith.constant 0 : i32
    %c0_i32_0 = arith.constant 0 : i32
    return %arg0, %c0_i32 : i32, i32
  }
}

module attributes {stable_mosaic.version = 11 : i64} {
  func.func @_max4_kernel(%arg0: i32, %arg1: memref<2x12x768xbf16, #tpu.memory_space<vmem>>, %arg2: memref<2x12x768xbf16, #tpu.memory_space<vmem>>, %arg3: memref<2x12x768xbf16, #tpu.memory_space<vmem>>, %arg4: memref<2x12x768xbf16, #tpu.memory_space<vmem>>, %arg5: memref<2x12x768xbf16, #tpu.memory_space<vmem>>) attributes {dimension_semantics = [#tpu.dimension_semantics<parallel>], iteration_bounds = array<i64: 1>, scalar_prefetch = 0 : i64, scratch_operands = 0 : i64, tpu.core_type = #tpu.core_type<tc>, window_params = [{transform_indices = @transform_0, window_bounds = array<i64: 2, 12, 768>}, {transform_indices = @transform_1, window_bounds = array<i64: 2, 12, 768>}, {transform_indices = @transform_2, window_bounds = array<i64: 2, 12, 768>}, {transform_indices = @transform_3, window_bounds = array<i64: 2, 12, 768>}, {transform_indices = @transform_4, window_bounds = array<i64: 2, 12, 768>}]} {
    %c0 = arith.constant 0 : index
    %c0_0 = arith.constant 0 : index
    %c0_1 = arith.constant 0 : index
    %0 = vector.load %arg1[%c0, %c0_0, %c0_1] : memref<2x12x768xbf16, #tpu.memory_space<vmem>>, vector<2x12x768xbf16>
    %c0_2 = arith.constant 0 : index
    %c0_3 = arith.constant 0 : index
    %c0_4 = arith.constant 0 : index
    %1 = vector.load %arg2[%c0_2, %c0_3, %c0_4] : memref<2x12x768xbf16, #tpu.memory_space<vmem>>, vector<2x12x768xbf16>
    %2 = arith.maximumf %0, %1 : vector<2x12x768xbf16>
    %c0_5 = arith.constant 0 : index
    %c0_6 = arith.constant 0 : index
    %c0_7 = arith.constant 0 : index
    %3 = vector.load %arg3[%c0_5, %c0_6, %c0_7] : memref<2x12x768xbf16, #tpu.memory_space<vmem>>, vector<2x12x768xbf16>
    %c0_8 = arith.constant 0 : index
    %c0_9 = arith.constant 0 : index
    %c0_10 = arith.constant 0 : index
    %4 = vector.load %arg4[%c0_8, %c0_9, %c0_10] : memref<2x12x768xbf16, #tpu.memory_space<vmem>>, vector<2x12x768xbf16>
    %5 = arith.maximumf %3, %4 : vector<2x12x768xbf16>
    %6 = arith.maximumf %2, %5 : vector<2x12x768xbf16>
    %c0_11 = arith.constant 0 : index
    %c0_12 = arith.constant 0 : index
    %c0_13 = arith.constant 0 : index
    %7 = vector.load %arg5[%c0_11, %c0_12, %c0_13] : memref<2x12x768xbf16, #tpu.memory_space<vmem>>, vector<2x12x768xbf16>
    tpu.vector_store %arg5[%c0_11, %c0_12, %c0_13], %6 {strides = array<i32>} : memref<2x12x768xbf16, #tpu.memory_space<vmem>>, vector<2x12x768xbf16>,
    return
  }
  func.func @transform_0(%arg0: i32) -> (i32, i32, i32) {
    %c0_i32 = arith.constant 0 : i32
    %c0_i32_0 = arith.constant 0 : i32
    %c0_i32_1 = arith.constant 0 : i32
    return %arg0, %c0_i32, %c0_i32_0 : i32, i32, i32
  }
  func.func @transform_1(%arg0: i32) -> (i32, i32, i32) {
    %c0_i32 = arith.constant 0 : i32
    %c0_i32_0 = arith.constant 0 : i32
    %c0_i32_1 = arith.constant 0 : i32
    return %arg0, %c0_i32, %c0_i32_0 : i32, i32, i32
  }
  func.func @transform_2(%arg0: i32) -> (i32, i32, i32) {
    %c0_i32 = arith.constant 0 : i32
    %c0_i32_0 = arith.constant 0 : i32
    %c0_i32_1 = arith.constant 0 : i32
    return %arg0, %c0_i32, %c0_i32_0 : i32, i32, i32
  }
  func.func @transform_3(%arg0: i32) -> (i32, i32, i32) {
    %c0_i32 = arith.constant 0 : i32
    %c0_i32_0 = arith.constant 0 : i32
    %c0_i32_1 = arith.constant 0 : i32
    return %arg0, %c0_i32, %c0_i32_0 : i32, i32, i32
  }
  func.func @transform_4(%arg0: i32) -> (i32, i32, i32) {
    %c0_i32 = arith.constant 0 : i32
    %c0_i32_0 = arith.constant 0 : i32
    %c0_i32_1 = arith.constant 0 : i32
    return %arg0, %c0_i32, %c0_i32_0 : i32, i32, i32
  }
}

module attributes {stable_mosaic.version = 11 : i64} {
  func.func @_conv_rowtap_kernel(%arg0: i32, %arg1: memref<2x12x8x320xbf16, #tpu.memory_space<vmem>>, %arg2: memref<5x320x128xbf16, #tpu.memory_space<vmem>>, %arg3: memref<1x128xf32, #tpu.memory_space<vmem>>, %arg4: memref<128x128xbf16, #tpu.memory_space<vmem>>) attributes {dimension_semantics = [#tpu.dimension_semantics<parallel>], iteration_bounds = array<i64: 1>, scalar_prefetch = 0 : i64, scratch_operands = 0 : i64, tpu.core_type = #tpu.core_type<tc>, window_params = [{transform_indices = @transform_0, window_bounds = array<i64: 2, 12, 8, 320>}, {pipeline_mode = #tpu.pipeline_mode<synchronous>, transform_indices = @transform_1, window_bounds = array<i64: 5, 320, 128>}, {pipeline_mode = #tpu.pipeline_mode<synchronous>, transform_indices = @transform_2, window_bounds = array<i64: 1, 128>}, {transform_indices = @transform_3, window_bounds = array<i64: 128, 128>}]} {
    %cst = arith.constant 0.000000e+00 : f32
    %0 = vector.broadcast %cst : f32 to vector<128x128xf32>
    %c0 = arith.constant 0 : index
    %c0_0 = arith.constant 0 : index
    %c0_1 = arith.constant 0 : index
    %c0_2 = arith.constant 0 : index
    %1 = vector.load %arg1[%c0, %c0_0, %c0_1, %c0_2] : memref<2x12x8x320xbf16, #tpu.memory_space<vmem>>, vector<2x8x8x320xbf16>
    %2 = arith.extf %1 : vector<2x8x8x320xbf16> to vector<2x8x8x320xf32>
    %3 = vector.shape_cast %2 : vector<2x8x8x320xf32> to vector<128x320xf32>
    %4 = arith.truncf %3 : vector<128x320xf32> to vector<128x320xbf16>
    %c0_3 = arith.constant 0 : index
    %c0_4 = arith.constant 0 : index
    %c0_5 = arith.constant 0 : index
    %5 = vector.load %arg2[%c0_3, %c0_4, %c0_5] : memref<5x320x128xbf16, #tpu.memory_space<vmem>>, vector<1x320x128xbf16>
    %6 = vector.shape_cast %5 : vector<1x320x128xbf16> to vector<320x128xbf16>
    %cst_6 = arith.constant dense<0.000000e+00> : vector<128x128xf32>
    %7 = tpu.matmul %4, %6, %cst_6 {dimension_numbers = #tpu.dot_dimension_numbers<[1], [0], [0], [1], [0, 0, 1, 1], [], []>} : vector<128x320xbf16>, vector<320x128xbf16>, vector<128x128xf32> -> vector<128x128xf32>
    %8 = arith.addf %0, %7 : vector<128x128xf32>
    %c0_7 = arith.constant 0 : index
    %c1 = arith.constant 1 : index
    %c0_8 = arith.constant 0 : index
    %c0_9 = arith.constant 0 : index
    %9 = vector.load %arg1[%c0_7, %c1, %c0_8, %c0_9] : memref<2x12x8x320xbf16, #tpu.memory_space<vmem>>, vector<2x8x8x320xbf16>
    %10 = arith.extf %9 : vector<2x8x8x320xbf16> to vector<2x8x8x320xf32>
    %11 = vector.shape_cast %10 : vector<2x8x8x320xf32> to vector<128x320xf32>
    %12 = arith.truncf %11 : vector<128x320xf32> to vector<128x320xbf16>
    %c1_10 = arith.constant 1 : index
    %c0_11 = arith.constant 0 : index
    %c0_12 = arith.constant 0 : index
    %13 = vector.load %arg2[%c1_10, %c0_11, %c0_12] : memref<5x320x128xbf16, #tpu.memory_space<vmem>>, vector<1x320x128xbf16>
    %14 = vector.shape_cast %13 : vector<1x320x128xbf16> to vector<320x128xbf16>
    %cst_13 = arith.constant dense<0.000000e+00> : vector<128x128xf32>
    %15 = tpu.matmul %12, %14, %cst_13 {dimension_numbers = #tpu.dot_dimension_numbers<[1], [0], [0], [1], [0, 0, 1, 1], [], []>} : vector<128x320xbf16>, vector<320x128xbf16>, vector<128x128xf32> -> vector<128x128xf32>
    %16 = arith.addf %8, %15 : vector<128x128xf32>
    %c0_14 = arith.constant 0 : index
    %c2 = arith.constant 2 : index
    %c0_15 = arith.constant 0 : index
    %c0_16 = arith.constant 0 : index
    %17 = vector.load %arg1[%c0_14, %c2, %c0_15, %c0_16] : memref<2x12x8x320xbf16, #tpu.memory_space<vmem>>, vector<2x8x8x320xbf16>
    %18 = arith.extf %17 : vector<2x8x8x320xbf16> to vector<2x8x8x320xf32>
    %19 = vector.shape_cast %18 : vector<2x8x8x320xf32> to vector<128x320xf32>
    %20 = arith.truncf %19 : vector<128x320xf32> to vector<128x320xbf16>
    %c2_17 = arith.constant 2 : index
    %c0_18 = arith.constant 0 : index
    %c0_19 = arith.constant 0 : index
    %21 = vector.load %arg2[%c2_17, %c0_18, %c0_19] : memref<5x320x128xbf16, #tpu.memory_space<vmem>>, vector<1x320x128xbf16>
    %22 = vector.shape_cast %21 : vector<1x320x128xbf16> to vector<320x128xbf16>
    %cst_20 = arith.constant dense<0.000000e+00> : vector<128x128xf32>
    %23 = tpu.matmul %20, %22, %cst_20 {dimension_numbers = #tpu.dot_dimension_numbers<[1], [0], [0], [1], [0, 0, 1, 1], [], []>} : vector<128x320xbf16>, vector<320x128xbf16>, vector<128x128xf32> -> vector<128x128xf32>
    %24 = arith.addf %16, %23 : vector<128x128xf32>
    %c0_21 = arith.constant 0 : index
    %c3 = arith.constant 3 : index
    %c0_22 = arith.constant 0 : index
    %c0_23 = arith.constant 0 : index
    %25 = vector.load %arg1[%c0_21, %c3, %c0_22, %c0_23] : memref<2x12x8x320xbf16, #tpu.memory_space<vmem>>, vector<2x8x8x320xbf16>
    %26 = arith.extf %25 : vector<2x8x8x320xbf16> to vector<2x8x8x320xf32>
    %27 = vector.shape_cast %26 : vector<2x8x8x320xf32> to vector<128x320xf32>
    %28 = arith.truncf %27 : vector<128x320xf32> to vector<128x320xbf16>
    %c3_24 = arith.constant 3 : index
    %c0_25 = arith.constant 0 : index
    %c0_26 = arith.constant 0 : index
    %29 = vector.load %arg2[%c3_24, %c0_25, %c0_26] : memref<5x320x128xbf16, #tpu.memory_space<vmem>>, vector<1x320x128xbf16>
    %30 = vector.shape_cast %29 : vector<1x320x128xbf16> to vector<320x128xbf16>
    %cst_27 = arith.constant dense<0.000000e+00> : vector<128x128xf32>
    %31 = tpu.matmul %28, %30, %cst_27 {dimension_numbers = #tpu.dot_dimension_numbers<[1], [0], [0], [1], [0, 0, 1, 1], [], []>} : vector<128x320xbf16>, vector<320x128xbf16>, vector<128x128xf32> -> vector<128x128xf32>
    %32 = arith.addf %24, %31 : vector<128x128xf32>
    %c0_28 = arith.constant 0 : index
    %c4 = arith.constant 4 : index
    %c0_29 = arith.constant 0 : index
    %c0_30 = arith.constant 0 : index
    %33 = vector.load %arg1[%c0_28, %c4, %c0_29, %c0_30] : memref<2x12x8x320xbf16, #tpu.memory_space<vmem>>, vector<2x8x8x320xbf16>
    %34 = arith.extf %33 : vector<2x8x8x320xbf16> to vector<2x8x8x320xf32>
    %35 = vector.shape_cast %34 : vector<2x8x8x320xf32> to vector<128x320xf32>
    %36 = arith.truncf %35 : vector<128x320xf32> to vector<128x320xbf16>
    %c4_31 = arith.constant 4 : index
    %c0_32 = arith.constant 0 : index
    %c0_33 = arith.constant 0 : index
    %37 = vector.load %arg2[%c4_31, %c0_32, %c0_33] : memref<5x320x128xbf16, #tpu.memory_space<vmem>>, vector<1x320x128xbf16>
    %38 = vector.shape_cast %37 : vector<1x320x128xbf16> to vector<320x128xbf16>
    %cst_34 = arith.constant dense<0.000000e+00> : vector<128x128xf32>
    %39 = tpu.matmul %36, %38, %cst_34 {dimension_numbers = #tpu.dot_dimension_numbers<[1], [0], [0], [1], [0, 0, 1, 1], [], []>} : vector<128x320xbf16>, vector<320x128xbf16>, vector<128x128xf32> -> vector<128x128xf32>
    %40 = arith.addf %32, %39 : vector<128x128xf32>
    %c0_35 = arith.constant 0 : index
    %c0_36 = arith.constant 0 : index
    %41 = vector.load %arg3[%c0_35, %c0_36] : memref<1x128xf32, #tpu.memory_space<vmem>>, vector<1x128xf32>
    %42 = vector.broadcast %41 : vector<1x128xf32> to vector<128x128xf32>
    %43 = arith.addf %40, %42 : vector<128x128xf32>
    %cst_37 = arith.constant 0.000000e+00 : f32
    %44 = vector.broadcast %cst_37 : f32 to vector<128x128xf32>
    %45 = arith.maximumf %43, %44 : vector<128x128xf32>
    %46 = arith.truncf %45 : vector<128x128xf32> to vector<128x128xbf16>
    %c0_38 = arith.constant 0 : index
    %c0_39 = arith.constant 0 : index
    %47 = vector.load %arg4[%c0_38, %c0_39] : memref<128x128xbf16, #tpu.memory_space<vmem>>, vector<128x128xbf16>
    tpu.vector_store %arg4[%c0_38, %c0_39], %46 {strides = array<i32>} : memref<128x128xbf16, #tpu.memory_space<vmem>>, vector<128x128xbf16>,
    return
  }
  func.func @transform_0(%arg0: i32) -> (i32, i32, i32, i32) {
    %c0_i32 = arith.constant 0 : i32
    %c0_i32_0 = arith.constant 0 : i32
    %c0_i32_1 = arith.constant 0 : i32
    %c0_i32_2 = arith.constant 0 : i32
    return %arg0, %c0_i32, %c0_i32_0, %c0_i32_1 : i32, i32, i32, i32
  }
  func.func @transform_1(%arg0: i32) -> (i32, i32, i32) {
    %c0_i32 = arith.constant 0 : i32
    %c0_i32_0 = arith.constant 0 : i32
    %c0_i32_1 = arith.constant 0 : i32
    %c0_i32_2 = arith.constant 0 : i32
    return %c0_i32, %c0_i32_0, %c0_i32_1 : i32, i32, i32
  }
  func.func @transform_2(%arg0: i32) -> (i32, i32) {
    %c0_i32 = arith.constant 0 : i32
    %c0_i32_0 = arith.constant 0 : i32
    %c0_i32_1 = arith.constant 0 : i32
    return %c0_i32, %c0_i32_0 : i32, i32
  }
  func.func @transform_3(%arg0: i32) -> (i32, i32) {
    %c0_i32 = arith.constant 0 : i32
    %c0_i32_0 = arith.constant 0 : i32
    return %arg0, %c0_i32 : i32, i32
  }
}

module attributes {stable_mosaic.version = 11 : i64} {
  func.func @_max4_kernel(%arg0: i32, %arg1: memref<2x4x512xbf16, #tpu.memory_space<vmem>>, %arg2: memref<2x4x512xbf16, #tpu.memory_space<vmem>>, %arg3: memref<2x4x512xbf16, #tpu.memory_space<vmem>>, %arg4: memref<2x4x512xbf16, #tpu.memory_space<vmem>>, %arg5: memref<2x4x512xbf16, #tpu.memory_space<vmem>>) attributes {dimension_semantics = [#tpu.dimension_semantics<parallel>], iteration_bounds = array<i64: 1>, scalar_prefetch = 0 : i64, scratch_operands = 0 : i64, tpu.core_type = #tpu.core_type<tc>, window_params = [{transform_indices = @transform_0, window_bounds = array<i64: 2, 4, 512>}, {transform_indices = @transform_1, window_bounds = array<i64: 2, 4, 512>}, {transform_indices = @transform_2, window_bounds = array<i64: 2, 4, 512>}, {transform_indices = @transform_3, window_bounds = array<i64: 2, 4, 512>}, {transform_indices = @transform_4, window_bounds = array<i64: 2, 4, 512>}]} {
    %c0 = arith.constant 0 : index
    %c0_0 = arith.constant 0 : index
    %c0_1 = arith.constant 0 : index
    %0 = vector.load %arg1[%c0, %c0_0, %c0_1] : memref<2x4x512xbf16, #tpu.memory_space<vmem>>, vector<2x4x512xbf16>
    %c0_2 = arith.constant 0 : index
    %c0_3 = arith.constant 0 : index
    %c0_4 = arith.constant 0 : index
    %1 = vector.load %arg2[%c0_2, %c0_3, %c0_4] : memref<2x4x512xbf16, #tpu.memory_space<vmem>>, vector<2x4x512xbf16>
    %2 = arith.maximumf %0, %1 : vector<2x4x512xbf16>
    %c0_5 = arith.constant 0 : index
    %c0_6 = arith.constant 0 : index
    %c0_7 = arith.constant 0 : index
    %3 = vector.load %arg3[%c0_5, %c0_6, %c0_7] : memref<2x4x512xbf16, #tpu.memory_space<vmem>>, vector<2x4x512xbf16>
    %c0_8 = arith.constant 0 : index
    %c0_9 = arith.constant 0 : index
    %c0_10 = arith.constant 0 : index
    %4 = vector.load %arg4[%c0_8, %c0_9, %c0_10] : memref<2x4x512xbf16, #tpu.memory_space<vmem>>, vector<2x4x512xbf16>
    %5 = arith.maximumf %3, %4 : vector<2x4x512xbf16>
    %6 = arith.maximumf %2, %5 : vector<2x4x512xbf16>
    %c0_11 = arith.constant 0 : index
    %c0_12 = arith.constant 0 : index
    %c0_13 = arith.constant 0 : index
    %7 = vector.load %arg5[%c0_11, %c0_12, %c0_13] : memref<2x4x512xbf16, #tpu.memory_space<vmem>>, vector<2x4x512xbf16>
    tpu.vector_store %arg5[%c0_11, %c0_12, %c0_13], %6 {strides = array<i32>} : memref<2x4x512xbf16, #tpu.memory_space<vmem>>, vector<2x4x512xbf16>,
    return
  }
  func.func @transform_0(%arg0: i32) -> (i32, i32, i32) {
    %c0_i32 = arith.constant 0 : i32
    %c0_i32_0 = arith.constant 0 : i32
    %c0_i32_1 = arith.constant 0 : i32
    return %arg0, %c0_i32, %c0_i32_0 : i32, i32, i32
  }
  func.func @transform_1(%arg0: i32) -> (i32, i32, i32) {
    %c0_i32 = arith.constant 0 : i32
    %c0_i32_0 = arith.constant 0 : i32
    %c0_i32_1 = arith.constant 0 : i32
    return %arg0, %c0_i32, %c0_i32_0 : i32, i32, i32
  }
  func.func @transform_2(%arg0: i32) -> (i32, i32, i32) {
    %c0_i32 = arith.constant 0 : i32
    %c0_i32_0 = arith.constant 0 : i32
    %c0_i32_1 = arith.constant 0 : i32
    return %arg0, %c0_i32, %c0_i32_0 : i32, i32, i32
  }
  func.func @transform_3(%arg0: i32) -> (i32, i32, i32) {
    %c0_i32 = arith.constant 0 : i32
    %c0_i32_0 = arith.constant 0 : i32
    %c0_i32_1 = arith.constant 0 : i32
    return %arg0, %c0_i32, %c0_i32_0 : i32, i32, i32
  }
  func.func @transform_4(%arg0: i32) -> (i32, i32, i32) {
    %c0_i32 = arith.constant 0 : i32
    %c0_i32_0 = arith.constant 0 : i32
    %c0_i32_1 = arith.constant 0 : i32
    return %arg0, %c0_i32, %c0_i32_0 : i32, i32, i32
  }
}

module attributes {stable_mosaic.version = 11 : i64} {
  func.func @_mlp_kernel(%arg0: i32, %arg1: memref<8x2048xbf16, #tpu.memory_space<vmem>>, %arg2: memref<2048x64xbf16, #tpu.memory_space<vmem>>, %arg3: memref<1x64xf32, #tpu.memory_space<vmem>>, %arg4: memref<64x128xbf16, #tpu.memory_space<vmem>>, %arg5: memref<1x128xf32, #tpu.memory_space<vmem>>, %arg6: memref<8x128xf32, #tpu.memory_space<vmem>>) attributes {dimension_semantics = [#tpu.dimension_semantics<parallel>], iteration_bounds = array<i64: 1>, scalar_prefetch = 0 : i64, scratch_operands = 0 : i64, tpu.core_type = #tpu.core_type<tc>, window_params = [{transform_indices = @transform_0, window_bounds = array<i64: 8, 2048>}, {pipeline_mode = #tpu.pipeline_mode<synchronous>, transform_indices = @transform_1, window_bounds = array<i64: 2048, 64>}, {pipeline_mode = #tpu.pipeline_mode<synchronous>, transform_indices = @transform_2, window_bounds = array<i64: 1, 64>}, {pipeline_mode = #tpu.pipeline_mode<synchronous>, transform_indices = @transform_3, window_bounds = array<i64: 64, 128>}, {pipeline_mode = #tpu.pipeline_mode<synchronous>, transform_indices = @transform_4, window_bounds = array<i64: 1, 128>}, {transform_indices = @transform_5, window_bounds = array<i64: 8, 128>}]} {
    %c0 = arith.constant 0 : index
    %c0_0 = arith.constant 0 : index
    %0 = vector.load %arg1[%c0, %c0_0] : memref<8x2048xbf16, #tpu.memory_space<vmem>>, vector<8x2048xbf16>
    %c0_1 = arith.constant 0 : index
    %c0_2 = arith.constant 0 : index
    %1 = vector.load %arg2[%c0_1, %c0_2] : memref<2048x64xbf16, #tpu.memory_space<vmem>>, vector<2048x64xbf16>
    %cst = arith.constant dense<0.000000e+00> : vector<8x64xf32>
    %2 = tpu.matmul %0, %1, %cst {dimension_numbers = #tpu.dot_dimension_numbers<[1], [0], [0], [1], [0, 0, 1, 1], [], []>} : vector<8x2048xbf16>, vector<2048x64xbf16>, vector<8x64xf32> -> vector<8x64xf32>
    %c0_3 = arith.constant 0 : index
    %c0_4 = arith.constant 0 : index
    %3 = vector.load %arg3[%c0_3, %c0_4] : memref<1x64xf32, #tpu.memory_space<vmem>>, vector<1x64xf32>
    %4 = vector.broadcast %3 : vector<1x64xf32> to vector<8x64xf32>
    %5 = arith.addf %2, %4 : vector<8x64xf32>
    %cst_5 = arith.constant 0.000000e+00 : f32
    %6 = vector.broadcast %cst_5 : f32 to vector<8x64xf32>
    %7 = arith.maximumf %5, %6 : vector<8x64xf32>
    %8 = arith.truncf %7 : vector<8x64xf32> to vector<8x64xbf16>
    %c0_6 = arith.constant 0 : index
    %c0_7 = arith.constant 0 : index
    %9 = vector.load %arg4[%c0_6, %c0_7] : memref<64x128xbf16, #tpu.memory_space<vmem>>, vector<64x128xbf16>
    %cst_8 = arith.constant dense<0.000000e+00> : vector<8x128xf32>
    %10 = tpu.matmul %8, %9, %cst_8 {dimension_numbers = #tpu.dot_dimension_numbers<[1], [0], [0], [1], [0, 0, 1, 1], [], []>} : vector<8x64xbf16>, vector<64x128xbf16>, vector<8x128xf32> -> vector<8x128xf32>
    %c0_9 = arith.constant 0 : index
    %c0_10 = arith.constant 0 : index
    %11 = vector.load %arg5[%c0_9, %c0_10] : memref<1x128xf32, #tpu.memory_space<vmem>>, vector<1x128xf32>
    %12 = vector.broadcast %11 : vector<1x128xf32> to vector<8x128xf32>
    %13 = arith.addf %10, %12 : vector<8x128xf32>
    %c0_11 = arith.constant 0 : index
    %c0_12 = arith.constant 0 : index
    %14 = vector.load %arg6[%c0_11, %c0_12] : memref<8x128xf32, #tpu.memory_space<vmem>>, vector<8x128xf32>
    tpu.vector_store %arg6[%c0_11, %c0_12], %13 {strides = array<i32>} : memref<8x128xf32, #tpu.memory_space<vmem>>, vector<8x128xf32>,
    return
  }
  func.func @transform_0(%arg0: i32) -> (i32, i32) {
    %c0_i32 = arith.constant 0 : i32
    %c0_i32_0 = arith.constant 0 : i32
    return %arg0, %c0_i32 : i32, i32
  }
  func.func @transform_1(%arg0: i32) -> (i32, i32) {
    %c0_i32 = arith.constant 0 : i32
    %c0_i32_0 = arith.constant 0 : i32
    %c0_i32_1 = arith.constant 0 : i32
    return %c0_i32, %c0_i32_0 : i32, i32
  }
  func.func @transform_2(%arg0: i32) -> (i32, i32) {
    %c0_i32 = arith.constant 0 : i32
    %c0_i32_0 = arith.constant 0 : i32
    %c0_i32_1 = arith.constant 0 : i32
    return %c0_i32, %c0_i32_0 : i32, i32
  }
  func.func @transform_3(%arg0: i32) -> (i32, i32) {
    %c0_i32 = arith.constant 0 : i32
    %c0_i32_0 = arith.constant 0 : i32
    %c0_i32_1 = arith.constant 0 : i32
    return %c0_i32, %c0_i32_0 : i32, i32
  }
  func.func @transform_4(%arg0: i32) -> (i32, i32) {
    %c0_i32 = arith.constant 0 : i32
    %c0_i32_0 = arith.constant 0 : i32
    %c0_i32_1 = arith.constant 0 : i32
    return %c0_i32, %c0_i32_0 : i32, i32
  }
  func.func @transform_5(%arg0: i32) -> (i32, i32) {
    %c0_i32 = arith.constant 0 : i32
    %c0_i32_0 = arith.constant 0 : i32
    return %arg0, %c0_i32 : i32, i32
  }
}

</mosaic_0001>

<bundles_post_ra>
// kernel: convnet_forward.6
= control target key start
LH: loop header
LB: loop body
LE: loop exit
PB: predicated region body
PF: predicated region fallthrough
CT: control target
= control target key end

     0   :  { %s538_s0 = inlined_call_operand.vmem [shape: bf16[2,12,768], index: 0, kind: input, shape index: {}]   ;;  %s539_s1 = inlined_call_operand.vmem [shape: bf16[2,12,768], index: 1, kind: input, shape index: {}]   ;;  %s540_s2 = inlined_call_operand.vmem [shape: bf16[2,12,768], index: 2, kind: input, shape index: {}]   ;;  %s541_s3 = inlined_call_operand.vmem [shape: bf16[2,12,768], index: 3, kind: input, shape index: {}]   ;;  %s542_s4 = inlined_call_operand.vmem [shape: bf16[2,12,768], index: 4, kind: output, shape index: {}]  }
   0x1   :  { %v17_v0 = vld [vmem:[%s538_s0] sm:$0xff]  ;;  %v18_v8 = vld [vmem:[%s538_s0 + $0x8] sm:$0xff]  ;;  %v19_v24 = vld [vmem:[%s538_s0 + $0x10] sm:$0xff] }
   0x2   :  { %v29_v1 = vld [vmem:[%s539_s1] sm:$0xff]  ;;  %v41_v3 = vunpack.c.l.bf16 %v17_v0  ;;  %v42_v4 = vunpack.c.h.bf16 %v17_v0  ;;  %v30_v9 = vld [vmem:[%s539_s1 + $0x8] sm:$0xff]  ;;  %v43_v18 = vunpack.c.l.bf16 %v18_v8  ;;  %v44_v19 = vunpack.c.h.bf16 %v18_v8  ;;  %v31_v29 = vld [vmem:[%s539_s1 + $0x10] sm:$0xff] }
   0x3   :  { %v125_v2 = vld [vmem:[%s540_s2] sm:$0xff]  ;;  %v65_v5 = vunpack.c.l.bf16 %v29_v1  ;;  %v66_v6 = vunpack.c.h.bf16 %v29_v1  ;;  %v126_v14 = vld [vmem:[%s540_s2 + $0x8] sm:$0xff]  ;;  %v67_v22 = vunpack.c.l.bf16 %v30_v9  ;;  %v68_v23 = vunpack.c.h.bf16 %v30_v9  ;;  %v127_v30 = vld [vmem:[%s540_s2 + $0x10] sm:$0xff] }
   0x4   :  { %v137_v7 = vld [vmem:[%s541_s3] sm:$0xff]  ;;  %v149_v10 = vunpack.c.l.bf16 %v125_v2  ;;  %v150_v11 = vunpack.c.h.bf16 %v125_v2  ;;  %v138_v15 = vld [vmem:[%s541_s3 + $0x8] sm:$0xff]  ;;  %v151_v25 = vunpack.c.l.bf16 %v126_v14  ;;  %v152_v26 = vunpack.c.h.bf16 %v126_v14  ;;  %v139_v35 = vld [vmem:[%s541_s3 + $0x10] sm:$0xff] }
   0x5   :  { %v173_v12 = vunpack.c.l.bf16 %v137_v7  ;;  %v174_v13 = vunpack.c.h.bf16 %v137_v7  ;;  %v89_v16 = vmax.f32 %v41_v3, %v65_v5  ;;  %v90_v17 = vmax.f32 %v42_v4, %v66_v6  ;;  %v20_v40 = vld [vmem:[%s538_s0 + $0x18] sm:$0x33]  ;;  %v21_v60 = vld [vmem:[%s538_s0 + $0x20] sm:$0x33] }
   0x6   :  { %v175_v27 = vunpack.c.l.bf16 %v138_v15  ;;  %v176_v28 = vunpack.c.h.bf16 %v138_v15  ;;  %v91_v33 = vmax.f32 %v43_v18, %v67_v22  ;;  %v92_v34 = vmax.f32 %v44_v19, %v68_v23  ;;  %v32_v45 = vld [vmem:[%s539_s1 + $0x18] sm:$0x33]  ;;  %v33_v1 = vld [vmem:[%s539_s1 + $0x20] sm:$0x33]  ;;  %v130_v22 = vld [vmem:[%s540_s2 + $0x28] sm:$0x33] }
   0x7   :  { %v197_v20 = vmax.f32 %v149_v10, %v173_v12  ;;  %v198_v21 = vmax.f32 %v150_v11, %v174_v13  ;;  %v45_v38 = vunpack.c.l.bf16 %v19_v24  ;;  %v46_v39 = vunpack.c.h.bf16 %v19_v24  ;;  %v128_v50 = vld [vmem:[%s540_s2 + $0x18] sm:$0x33]  ;;  %v129_v6 = vld [vmem:[%s540_s2 + $0x20] sm:$0x33] }
   0x8   :  { %v199_v36 = vmax.f32 %v151_v25, %v175_v27  ;;  %v200_v37 = vmax.f32 %v152_v26, %v176_v28  ;;  %v69_v42 = vunpack.c.l.bf16 %v31_v29  ;;  %v70_v43 = vunpack.c.h.bf16 %v31_v29  ;;  %v140_v55 = vld [vmem:[%s541_s3 + $0x18] sm:$0x33]  ;;  %v141_v7 = vld [vmem:[%s541_s3 + $0x20] sm:$0x33]  ;;  %v142_v27 = vld [vmem:[%s541_s3 + $0x28] sm:$0x33] }
   0x9   :  { %v281_v31 = vmax.f32 %v89_v16, %v197_v20  ;;  %v282_v32 = vmax.f32 %v90_v17, %v198_v21  ;;  %v153_v44 = vunpack.c.l.bf16 %v127_v30  ;;  %v154_v48 = vunpack.c.h.bf16 %v127_v30  ;;  %v22_v16 = vld [vmem:[%s538_s0 + $0x28] sm:$0x33] }
   0xa   :  { %v283_v46 = vmax.f32 %v91_v33, %v199_v36  ;;  %v284_v47 = vmax.f32 %v92_v34, %v200_v37  ;;  %v177_v49 = vunpack.c.l.bf16 %v139_v35  ;;  %v93_v51 = vmax.f32 %v45_v38, %v69_v42  ;;  %v34_v21 = vld [vmem:[%s539_s1 + $0x28] sm:$0x33]  ;;  %v35_v37 = vld [vmem:[%s539_s1 + $0x30] sm:$0xff] }
   0xb   :  { %v305_v41 = vpack.c.bf16 %v282_v32, %v281_v31  ;;  %v94_v52 = vmax.f32 %v46_v39, %v70_v43  ;;  %v178_v53 = vunpack.c.h.bf16 %v139_v35  ;;  %v47_v54 = vunpack.c.l.bf16 %v20_v40  ;;  %v23_v32 = vld [vmem:[%s538_s0 + $0x30] sm:$0xff] }
   0xc   :  { %v306_v56 = vpack.c.bf16 %v284_v47, %v283_v46  ;;  %v201_v57 = vmax.f32 %v153_v44, %v177_v49  ;;  %v48_v58 = vunpack.c.h.bf16 %v20_v40  ;;  %v71_v59 = vunpack.c.l.bf16 %v32_v45  ;;  %v131_v42 = vld [vmem:[%s540_s2 + $0x30] sm:$0xff] }
   0xd   :  { %317 = vst [vmem:[%s542_s4] sm:$0xff] %v305_v41  ;;  %v202_v61 = vmax.f32 %v154_v48, %v178_v53  ;;  %v72_v62 = vunpack.c.h.bf16 %v32_v45  ;;  %v155_v63 = vunpack.c.l.bf16 %v128_v50  ;;  %v156_v0 = vunpack.c.h.bf16 %v128_v50  ;;  %v143_v47 = vld [vmem:[%s541_s3 + $0x30] sm:$0xff] }
   0xe   :  { %318 = vst [vmem:[%s542_s4 + $0x8] sm:$0xff] %v306_v56  ;;  %v285_v2 = vmax.f32 %v93_v51, %v201_v57  ;;  %v95_v3 = vmax.f32 %v47_v54, %v71_v59  ;;  %v179_v4 = vunpack.c.l.bf16 %v140_v55  ;;  %v180_v5 = vunpack.c.h.bf16 %v140_v55  ;;  %v36_v57 = vld [vmem:[%s539_s1 + $0x38] sm:$0xff] }
   0xf   :  { %v286_v8 = vmax.f32 %v94_v52, %v202_v61  ;;  %v96_v9 = vmax.f32 %v48_v58, %v72_v62  ;;  %v49_v10 = vunpack.c.l.bf16 %v21_v60  ;;  %v50_v11 = vunpack.c.h.bf16 %v21_v60  ;;  %v24_v52 = vld [vmem:[%s538_s0 + $0x38] sm:$0xff] }
  0x10   :  { %v203_v12 = vmax.f32 %v155_v63, %v179_v4  ;;  %v204_v13 = vmax.f32 %v156_v0, %v180_v5  ;;  %v73_v14 = vunpack.c.l.bf16 %v33_v1  ;;  %v74_v15 = vunpack.c.h.bf16 %v33_v1  ;;  %v132_v62 = vld [vmem:[%s540_s2 + $0x38] sm:$0xff] }
  0x11   :  { %v307_v17 = vpack.c.bf16 %v286_v8, %v285_v2  ;;  %v157_v18 = vunpack.c.l.bf16 %v129_v6  ;;  %v158_v19 = vunpack.c.h.bf16 %v129_v6  ;;  %v181_v20 = vunpack.c.l.bf16 %v141_v7  ;;  %v25_v8 = vld [vmem:[%s538_s0 + $0x40] sm:$0xff] }
  0x12   :  { %v287_v23 = vmax.f32 %v95_v3, %v203_v12  ;;  %v288_v24 = vmax.f32 %v96_v9, %v204_v13  ;;  %v97_v25 = vmax.f32 %v49_v10, %v73_v14  ;;  %v98_v26 = vmax.f32 %v50_v11, %v74_v15  ;;  %v144_v3 = vld [vmem:[%s541_s3 + $0x38] sm:$0xff]  ;;  %v37_v13 = vld [vmem:[%s539_s1 + $0x40] sm:$0xff] }
  0x13   :  { %319 = vst [vmem:[%s542_s4 + $0x10] sm:$0xff] %v307_v17  ;;  %v182_v28 = vunpack.c.h.bf16 %v141_v7  ;;  %v205_v29 = vmax.f32 %v157_v18, %v181_v20  ;;  %v51_v30 = vunpack.c.l.bf16 %v22_v16  ;;  %v52_v31 = vunpack.c.h.bf16 %v22_v16  ;;  %v133_v14 = vld [vmem:[%s540_s2 + $0x40] sm:$0xff] }
  0x14   :  { %v308_v33 = vpack.c.bf16 %v288_v24, %v287_v23  ;;  %v75_v34 = vunpack.c.l.bf16 %v34_v21  ;;  %v76_v35 = vunpack.c.h.bf16 %v34_v21  ;;  %v159_v36 = vunpack.c.l.bf16 %v130_v22 }
  0x15   :  { %v206_v38 = vmax.f32 %v158_v19, %v182_v28  ;;  %v289_v39 = vmax.f32 %v97_v25, %v205_v29  ;;  %v160_v40 = vunpack.c.h.bf16 %v130_v22  ;;  %v183_v41 = vunpack.c.l.bf16 %v142_v27  ;;  %v145_v19 = vld [vmem:[%s541_s3 + $0x40] sm:$0xff]  ;;  %v26_v28 = vld [vmem:[%s538_s0 + $0x48] sm:$0x33] }
  0x16   :  { %320 = vst [vmem:[%s542_s4 + $0x18] sm:$0x33] %v308_v33  ;;  %v99_v43 = vmax.f32 %v51_v30, %v75_v34  ;;  %v100_v44 = vmax.f32 %v52_v31, %v76_v35  ;;  %v184_v45 = vunpack.c.h.bf16 %v142_v27  ;;  %v53_v46 = vunpack.c.l.bf16 %v23_v32  ;;  %v38_v33 = vld [vmem:[%s539_s1 + $0x48] sm:$0x33] }
  0x17   :  { %v290_v48 = vmax.f32 %v98_v26, %v206_v38  ;;  %v207_v49 = vmax.f32 %v159_v36, %v183_v41  ;;  %v54_v50 = vunpack.c.h.bf16 %v23_v32  ;;  %v77_v51 = vunpack.c.l.bf16 %v35_v37  ;;  %v134_v34 = vld [vmem:[%s540_s2 + $0x48] sm:$0x33] }
  0x18   :  { %v208_v53 = vmax.f32 %v160_v40, %v184_v45  ;;  %v78_v54 = vunpack.c.h.bf16 %v35_v37  ;;  %v161_v55 = vunpack.c.l.bf16 %v131_v42  ;;  %v162_v56 = vunpack.c.h.bf16 %v131_v42 }
  0x19   :  { %v309_v58 = vpack.c.bf16 %v290_v48, %v289_v39  ;;  %v291_v59 = vmax.f32 %v99_v43, %v207_v49  ;;  %v101_v60 = vmax.f32 %v53_v46, %v77_v51  ;;  %v185_v61 = vunpack.c.l.bf16 %v143_v47  ;;  %v146_v39 = vld [vmem:[%s541_s3 + $0x48] sm:$0x33]  ;;  %v27_v48 = vld [vmem:[%s538_s0 + $0x50] sm:$0x33] }
  0x1a   :  { %v292_v63 = vmax.f32 %v100_v44, %v208_v53  ;;  %v102_v0 = vmax.f32 %v54_v50, %v78_v54  ;;  %v186_v1 = vunpack.c.h.bf16 %v143_v47  ;;  %v55_v2 = vunpack.c.l.bf16 %v24_v52  ;;  %v39_v49 = vld [vmem:[%s539_s1 + $0x50] sm:$0x33] }
  0x1b   :  { %321 = vst [vmem:[%s542_s4 + $0x20] sm:$0x33] %v309_v58  ;;  %v209_v4 = vmax.f32 %v161_v55, %v185_v61  ;;  %v56_v5 = vunpack.c.h.bf16 %v24_v52  ;;  %v79_v6 = vunpack.c.l.bf16 %v36_v57  ;;  %v80_v7 = vunpack.c.h.bf16 %v36_v57  ;;  %v135_v54 = vld [vmem:[%s540_s2 + $0x50] sm:$0x33] }
  0x1c   :  { %v310_v9 = vpack.c.bf16 %v292_v63, %v291_v59  ;;  %v210_v10 = vmax.f32 %v162_v56, %v186_v1  ;;  %v163_v11 = vunpack.c.l.bf16 %v132_v62  ;;  %v164_v12 = vunpack.c.h.bf16 %v132_v62  ;;  %v147_v59 = vld [vmem:[%s541_s3 + $0x50] sm:$0x33] }
  0x1d   :  { %v293_v15 = vmax.f32 %v101_v60, %v209_v4  ;;  %v103_v16 = vmax.f32 %v55_v2, %v79_v6  ;;  %v104_v17 = vmax.f32 %v56_v5, %v80_v7  ;;  %v187_v18 = vunpack.c.l.bf16 %v144_v3  ;;  %v40_v5 = vld [vmem:[%s539_s1 + $0x58] sm:$0x33] }
  0x1e   :  { %322 = vst [vmem:[%s542_s4 + $0x28] sm:$0x33] %v310_v9  ;;  %v294_v20 = vmax.f32 %v102_v0, %v210_v10  ;;  %v188_v21 = vunpack.c.h.bf16 %v144_v3  ;;  %v57_v22 = vunpack.c.l.bf16 %v25_v8  ;;  %v58_v23 = vunpack.c.h.bf16 %v25_v8  ;;  %v28_v0 = vld [vmem:[%s538_s0 + $0x58] sm:$0x33] }
  0x1f   :  { %v211_v24 = vmax.f32 %v163_v11, %v187_v18  ;;  %v81_v25 = vunpack.c.l.bf16 %v37_v13  ;;  %v82_v26 = vunpack.c.h.bf16 %v37_v13  ;;  %v165_v27 = vunpack.c.l.bf16 %v133_v14  ;;  %v136_v10 = vld [vmem:[%s540_s2 + $0x58] sm:$0x33] }
  0x20   :  { %v311_v29 = vpack.c.bf16 %v294_v20, %v293_v15  ;;  %v212_v30 = vmax.f32 %v164_v12, %v188_v21  ;;  %v166_v31 = vunpack.c.h.bf16 %v133_v14  ;;  %v189_v32 = vunpack.c.l.bf16 %v145_v19  ;;  %v148_v15 = vld [vmem:[%s541_s3 + $0x58] sm:$0x33] }
  0x21   :  { %v295_v35 = vmax.f32 %v103_v16, %v211_v24  ;;  %v105_v36 = vmax.f32 %v57_v22, %v81_v25  ;;  %v106_v37 = vmax.f32 %v58_v23, %v82_v26  ;;  %v190_v38 = vunpack.c.h.bf16 %v145_v19 }
  0x22   :  { %323 = vst [vmem:[%s542_s4 + $0x30] sm:$0xff] %v311_v29  ;;  %v296_v40 = vmax.f32 %v104_v17, %v212_v30  ;;  %v213_v41 = vmax.f32 %v165_v27, %v189_v32  ;;  %v59_v42 = vunpack.c.l.bf16 %v26_v28  ;;  %v60_v43 = vunpack.c.h.bf16 %v26_v28 }
  0x23   :  { %v214_v44 = vmax.f32 %v166_v31, %v190_v38  ;;  %v83_v45 = vunpack.c.l.bf16 %v38_v33  ;;  %v84_v46 = vunpack.c.h.bf16 %v38_v33  ;;  %v167_v47 = vunpack.c.l.bf16 %v134_v34 }
  0x24   :  { %v312_v50 = vpack.c.bf16 %v296_v40, %v295_v35  ;;  %v297_v51 = vmax.f32 %v105_v36, %v213_v41  ;;  %v168_v52 = vunpack.c.h.bf16 %v134_v34  ;;  %v191_v53 = vunpack.c.l.bf16 %v146_v39 }
  0x25   :  { %v298_v55 = vmax.f32 %v106_v37, %v214_v44  ;;  %v107_v56 = vmax.f32 %v59_v42, %v83_v45  ;;  %v108_v57 = vmax.f32 %v60_v43, %v84_v46  ;;  %v192_v58 = vunpack.c.h.bf16 %v146_v39 }
  0x26   :  { %324 = vst [vmem:[%s542_s4 + $0x38] sm:$0xff] %v312_v50  ;;  %v215_v60 = vmax.f32 %v167_v47, %v191_v53  ;;  %v61_v61 = vunpack.c.l.bf16 %v27_v48  ;;  %v62_v62 = vunpack.c.h.bf16 %v27_v48  ;;  %v85_v63 = vunpack.c.l.bf16 %v39_v49 }
  0x27   :  { %v313_v1 = vpack.c.bf16 %v298_v55, %v297_v51  ;;  %v216_v2 = vmax.f32 %v168_v52, %v192_v58  ;;  %v86_v3 = vunpack.c.h.bf16 %v39_v49  ;;  %v169_v4 = vunpack.c.l.bf16 %v135_v54 }
  0x28   :  { %v299_v6 = vmax.f32 %v107_v56, %v215_v60  ;;  %v109_v7 = vmax.f32 %v61_v61, %v85_v63  ;;  %v170_v8 = vunpack.c.h.bf16 %v135_v54  ;;  %v193_v9 = vunpack.c.l.bf16 %v147_v59 }
  0x29   :  { %325 = vst [vmem:[%s542_s4 + $0x40] sm:$0xff] %v313_v1  ;;  %v300_v11 = vmax.f32 %v108_v57, %v216_v2  ;;  %v110_v12 = vmax.f32 %v62_v62, %v86_v3  ;;  %v194_v13 = vunpack.c.h.bf16 %v147_v59  ;;  %v63_v14 = vunpack.c.l.bf16 %v28_v0 }
  0x2a   :  { %v217_v16 = vmax.f32 %v169_v4, %v193_v9  ;;  %v64_v17 = vunpack.c.h.bf16 %v28_v0  ;;  %v87_v18 = vunpack.c.l.bf16 %v40_v5  ;;  %v88_v19 = vunpack.c.h.bf16 %v40_v5 }
  0x2b   :  { %v314_v20 = vpack.c.bf16 %v300_v11, %v299_v6  ;;  %v218_v21 = vmax.f32 %v170_v8, %v194_v13  ;;  %v171_v22 = vunpack.c.l.bf16 %v136_v10  ;;  %v172_v23 = vunpack.c.h.bf16 %v136_v10 }
  0x2c   :  { %v301_v24 = vmax.f32 %v109_v7, %v217_v16  ;;  %v111_v25 = vmax.f32 %v63_v14, %v87_v18  ;;  %v195_v26 = vunpack.c.l.bf16 %v148_v15  ;;  %v112_v28 = vmax.f32 %v64_v17, %v88_v19 }
  0x2d   :  { %326 = vst [vmem:[%s542_s4 + $0x48] sm:$0x33] %v314_v20  ;;  %v302_v27 = vmax.f32 %v110_v12, %v218_v21  ;;  %v196_v29 = vunpack.c.h.bf16 %v148_v15 }
  0x2e   :  { %v219_v30 = vmax.f32 %v171_v22, %v195_v26 }
  0x2f   :  { %v315_v31 = vpack.c.bf16 %v302_v27, %v301_v24  ;;  %v220_v32 = vmax.f32 %v172_v23, %v196_v29 }
  0x30   :  { %v303_v33 = vmax.f32 %v111_v25, %v219_v30 }
  0x31   :  { %327 = vst [vmem:[%s542_s4 + $0x50] sm:$0x33] %v315_v31  ;;  %v304_v34 = vmax.f32 %v112_v28, %v220_v32 }
  0x33   :  { %v316_v35 = vpack.c.bf16 %v304_v34, %v303_v33 }
  0x35   :  { %328 = vst [vmem:[%s542_s4 + $0x58] sm:$0x33] %v316_v35 }

// kernel: convnet_forward.5
= control target key start
LH: loop header
LB: loop body
LE: loop exit
PB: predicated region body
PF: predicated region fallthrough
CT: control target
= control target key end

     0   :  { %vm755_vm0 = vcmask 1043456   ;;  %vm756_vm1 = vcmask 1044480   ;;  %v2019_v2 = vmov 65535   ;;  %vm538_vm2 = vcmask 203776   ;;  %s3067_s1 = inlined_call_operand.vmem [shape: bf16[25,64], index: 1, kind: input, shape index: {}]   ;;  %s3068_s2 = inlined_call_operand.vmem [shape: f32[1,64], index: 2, kind: input, shape index: {}]   ;;  %s3069_s0 = inlined_call_operand.vmem [shape: bf16[1152,25], index: 0, kind: input, shape index: {}]   ;;  %s3070_s3 = inlined_call_operand.vmem [shape: bf16[1152,64], index: 3, kind: output, shape index: {}]  }
   0x1   :  { %v1862_v0 = vld [vmem:[%s3067_s1 + $0x8] sm:$0xf]  ;;  %v2009_v1 = vld [vmem:[%s3067_s1 + $0x8] sm:$0x10]  ;;  %v757_v3 = vsel %vm755_vm0, 4294967295, %v2019_v2  ;;  %v2008_v7 = vld [vmem:[%s3067_s1] sm:$0xff] }
   0x2   :  { %v1863_v4 = vor.u32 %v2009_v1, %v1862_v0  ;;  %v758_v5 = vsel %vm756_vm1, %v757_v3, 0  ;;  %v1936_v8 = vld [vmem:[%s3069_s0] sm:$0xff]  ;;  %v1954_v9 = vld [vmem:[%s3069_s0 + $0x90] sm:$0xff]  ;;  %v1937_v12 = vld [vmem:[%s3069_s0 + $0x8] sm:$0xff]  ;;  %vm1419_vm3 = vcmask 519168  }
   0x3   :  { %v1972_v10 = vld [vmem:[%s3069_s0 + $0x120] sm:$0xff]  ;;  %v1990_v11 = vld [vmem:[%s3069_s0 + $0x1b0] sm:$0xff]  ;;  %v1955_v13 = vld [vmem:[%s3069_s0 + $0x98] sm:$0xff] }
   0x4   :  { %v760_v6 = vand.u32 %v1863_v4, %v758_v5  ;;  %v1973_v14 = vld [vmem:[%s3069_s0 + $0x128] sm:$0xff]  ;;  %v1991_v15 = vld [vmem:[%s3069_s0 + $0x1b8] sm:$0xff]  ;;  %v1938_v16 = vld [vmem:[%s3069_s0 + $0x10] sm:$0xff] }
   0x5   :  { %v1956_v17 = vld [vmem:[%s3069_s0 + $0xa0] sm:$0xff]  ;;  %v1974_v18 = vld [vmem:[%s3069_s0 + $0x130] sm:$0xff]  ;;  %v1939_v20 = vld [vmem:[%s3069_s0 + $0x18] sm:$0xff] }
   0x6   :  { %768 = vmatpush.bf16.msra.mxu0 %v760_v6  ;;  %2010 = vmatpush.bf16.msra.mxu1 %v760_v6  ;;  %v1992_v19 = vld [vmem:[%s3069_s0 + $0x1c0] sm:$0xff]  ;;  %v1957_v21 = vld [vmem:[%s3069_s0 + $0xa8] sm:$0xff]  ;;  %v1975_v22 = vld [vmem:[%s3069_s0 + $0x138] sm:$0xff] }
   0x7   :  { %2011 = vmatpush.bf16.msra.mxu2 %v760_v6  ;;  %2012 = vmatpush.bf16.msra.mxu3 %v760_v6  ;;  %v1993_v23 = vld [vmem:[%s3069_s0 + $0x1c8] sm:$0xff]  ;;  %v1940_v24 = vld [vmem:[%s3069_s0 + $0x20] sm:$0xff]  ;;  %v1958_v25 = vld [vmem:[%s3069_s0 + $0xb0] sm:$0xff] }
   0x8   :  { %v1976_v26 = vld [vmem:[%s3069_s0 + $0x140] sm:$0xff]  ;;  %v1994_v27 = vld [vmem:[%s3069_s0 + $0x1d0] sm:$0xff]  ;;  %v1941_v28 = vld [vmem:[%s3069_s0 + $0x28] sm:$0xff] }
   0x9   :  { %v1959_v29 = vld [vmem:[%s3069_s0 + $0xb8] sm:$0xff]  ;;  %v1977_v30 = vld [vmem:[%s3069_s0 + $0x148] sm:$0xff]  ;;  %v1942_v32 = vld [vmem:[%s3069_s0 + $0x30] sm:$0xff] }
   0xa   :  { %769 = vmatpush.bf16.msra.mxu0 %v2008_v7  ;;  %2013 = vmatpush.bf16.msra.mxu1 %v2008_v7  ;;  %v1995_v31 = vld [vmem:[%s3069_s0 + $0x1d8] sm:$0xff]  ;;  %v1960_v33 = vld [vmem:[%s3069_s0 + $0xc0] sm:$0xff]  ;;  %v1978_v34 = vld [vmem:[%s3069_s0 + $0x150] sm:$0xff] }
   0xb   :  { %2014 = vmatpush.bf16.msra.mxu2 %v2008_v7  ;;  %2015 = vmatpush.bf16.msra.mxu3 %v2008_v7  ;;  %v1996_v35 = vld [vmem:[%s3069_s0 + $0x1e0] sm:$0xff]  ;;  %v1943_v36 = vld [vmem:[%s3069_s0 + $0x38] sm:$0xff]  ;;  %v1961_v37 = vld [vmem:[%s3069_s0 + $0xc8] sm:$0xff] }
   0xc   :  { %v1979_v38 = vld [vmem:[%s3069_s0 + $0x158] sm:$0xff]  ;;  %v1997_v39 = vld [vmem:[%s3069_s0 + $0x1e8] sm:$0xff]  ;;  %v2180_v40 = vld [vmem:[%s3068_s2] ss:$0 sm:$0xff] }
   0xd   :  { %1864 = vmatmul.msk.bf16.vlgmr.msra.gmra.mxu0 %vm538_vm2, %v1936_v8  ;;  %1882 = vmatmul.msk.bf16.vlgmr.msra.gmra.mxu1 %vm538_vm2, %v1954_v9  ;;  %v1944_v41 = vld [vmem:[%s3069_s0 + $0x40] sm:$0xff]  ;;  %v1962_v42 = vld [vmem:[%s3069_s0 + $0xd0] sm:$0xff]  ;;  %v1945_v7 = vld [vmem:[%s3069_s0 + $0x48] sm:$0xff] }
   0xe   :  { %1900 = vmatmul.msk.bf16.vlgmr.msra.gmra.mxu2 %vm538_vm2, %v1972_v10  ;;  %1918 = vmatmul.msk.bf16.vlgmr.msra.gmra.mxu3 %vm538_vm2, %v1990_v11  ;;  %v1980_v45 = vld [vmem:[%s3069_s0 + $0x160] sm:$0xff]  ;;  %v1998_v46 = vld [vmem:[%s3069_s0 + $0x1f0] sm:$0xff]  ;;  %v1963_v8 = vld [vmem:[%s3069_s0 + $0xd8] sm:$0xff] }
  0x1d   :  { %1865 = vmatmul.msk.bf16.gmra.mxu0 %vm538_vm2, %v1937_v12  ;;  %1883 = vmatmul.msk.bf16.gmra.mxu1 %vm538_vm2, %v1955_v13  ;;  %v1981_v13 = vld [vmem:[%s3069_s0 + $0x168] sm:$0xff] }
  0x1e   :  { %1901 = vmatmul.msk.bf16.gmra.mxu2 %vm538_vm2, %v1973_v14  ;;  %1919 = vmatmul.msk.bf16.gmra.mxu3 %vm538_vm2, %v1991_v15  ;;  %v1999_v14 = vld [vmem:[%s3069_s0 + $0x1f8] sm:$0xff] }
  0x2d   :  { %1866 = vmatmul.msk.bf16.gmra.mxu0 %vm538_vm2, %v1938_v16  ;;  %1884 = vmatmul.msk.bf16.gmra.mxu1 %vm538_vm2, %v1956_v17 }
  0x2e   :  { %1902 = vmatmul.msk.bf16.gmra.mxu2 %vm538_vm2, %v1974_v18  ;;  %1920 = vmatmul.msk.bf16.gmra.mxu3 %vm538_vm2, %v1992_v19 }
  0x3d   :  { %1867 = vmatmul.msk.bf16.gmra.mxu0 %vm538_vm2, %v1939_v20  ;;  %1885 = vmatmul.msk.bf16.gmra.mxu1 %vm538_vm2, %v1957_v21 }
  0x3e   :  { %1903 = vmatmul.msk.bf16.gmra.mxu2 %vm538_vm2, %v1975_v22  ;;  %1921 = vmatmul.msk.bf16.gmra.mxu3 %vm538_vm2, %v1993_v23 }
  0x4d   :  { %1868 = vmatmul.msk.bf16.gmra.mxu0 %vm538_vm2, %v1940_v24  ;;  %1886 = vmatmul.msk.bf16.gmra.mxu1 %vm538_vm2, %v1958_v25 }
  0x4e   :  { %1904 = vmatmul.msk.bf16.gmra.mxu2 %vm538_vm2, %v1976_v26  ;;  %1922 = vmatmul.msk.bf16.gmra.mxu3 %vm538_vm2, %v1994_v27 }
  0x5d   :  { %1869 = vmatmul.msk.bf16.gmra.mxu0 %vm538_vm2, %v1941_v28  ;;  %1887 = vmatmul.msk.bf16.gmra.mxu1 %vm538_vm2, %v1959_v29 }
  0x5e   :  { %1905 = vmatmul.msk.bf16.gmra.mxu2 %vm538_vm2, %v1977_v30  ;;  %1923 = vmatmul.msk.bf16.gmra.mxu3 %vm538_vm2, %v1995_v31 }
  0x6d   :  { %1870 = vmatmul.msk.bf16.gmra.mxu0 %vm538_vm2, %v1942_v32  ;;  %1888 = vmatmul.msk.bf16.gmra.mxu1 %vm538_vm2, %v1960_v33 }
  0x6e   :  { %1906 = vmatmul.msk.bf16.gmra.mxu2 %vm538_vm2, %v1978_v34  ;;  %1924 = vmatmul.msk.bf16.gmra.mxu3 %vm538_vm2, %v1996_v35 }
  0x7d   :  { %1871 = vmatmul.msk.bf16.gmra.mxu0 %vm538_vm2, %v1943_v36  ;;  %1889 = vmatmul.msk.bf16.gmra.mxu1 %vm538_vm2, %v1961_v37 }
  0x7e   :  { %1907 = vmatmul.msk.bf16.gmra.mxu2 %vm538_vm2, %v1979_v38  ;;  %1925 = vmatmul.msk.bf16.gmra.mxu3 %vm538_vm2, %v1997_v39 }
  0x8a   :  { %v771_v43 = vpop.f32.mrf.mxu0  ;;  %v861_v44 = vpop.f32.mrf.mxu1 }
  0x8b   :  { %v772_v47 = vadd.f32 %v2180_v40, %v771_v43  ;;  %v862_v48 = vadd.f32 %v2180_v40, %v861_v44  ;;  %v1946_v44 = vld [vmem:[%s3069_s0 + $0x50] sm:$0xff] }
  0x8d   :  { %v1131_v49 = vmax.f32 %v772_v47, 0.0  ;;  %v1167_v50 = vmax.f32 %v862_v48, 0.0  ;;  %1872 = vmatmul.msk.bf16.gmra.mxu0 %vm538_vm2, %v1944_v41  ;;  %1890 = vmatmul.msk.bf16.gmra.mxu1 %vm538_vm2, %v1962_v42 }
  0x8e   :  { %1908 = vmatmul.msk.bf16.gmra.mxu2 %vm538_vm2, %v1980_v45  ;;  %1926 = vmatmul.msk.bf16.gmra.mxu3 %vm538_vm2, %v1998_v46  ;;  %v1964_v45 = vld [vmem:[%s3069_s0 + $0xe0] sm:$0xff] }
  0x8f   :  { %v1275_v51 = vpack.c.bf16 %v1131_v49, %v1131_v49  ;;  %v1311_v52 = vpack.c.bf16 %v1167_v50, %v1167_v50  ;;  %v1982_v50 = vld [vmem:[%s3069_s0 + $0x170] sm:$0xff] }
  0x91   :  { %1420 = vst.msk [vmem:[%s3070_s3] sm:$0xf] %vm1419_vm3, %v1275_v51  ;;  %v951_v53 = vpop.f32.mrf.mxu2  ;;  %v1041_v54 = vpop.f32.mrf.mxu3  ;;  %v2000_v51 = vld [vmem:[%s3069_s0 + $0x200] sm:$0xff] }
  0x92   :  { %1456 = vst.msk [vmem:[%s3070_s3 + $0x90] sm:$0xf] %vm1419_vm3, %v1311_v52  ;;  %v952_v55 = vadd.f32 %v2180_v40, %v951_v53  ;;  %v1042_v56 = vadd.f32 %v2180_v40, %v1041_v54  ;;  %v773_v57 = vpop.f32.mrf.mxu0  ;;  %v863_v58 = vpop.f32.mrf.mxu1 }
  0x93   :  { %v774_v59 = vadd.f32 %v2180_v40, %v773_v57  ;;  %v864_v60 = vadd.f32 %v2180_v40, %v863_v58 }
  0x94   :  { %v1203_v61 = vmax.f32 %v952_v55, 0.0  ;;  %v1239_v62 = vmax.f32 %v1042_v56, 0.0 }
  0x95   :  { %v1132_v63 = vmax.f32 %v774_v59, 0.0  ;;  %v1168_v0 = vmax.f32 %v864_v60, 0.0 }
  0x96   :  { %v1347_v1 = vpack.c.bf16 %v1203_v61, %v1203_v61  ;;  %v1383_v2 = vpack.c.bf16 %v1239_v62, %v1239_v62 }
  0x97   :  { %v1276_v3 = vpack.c.bf16 %v1132_v63, %v1132_v63  ;;  %v1312_v4 = vpack.c.bf16 %v1168_v0, %v1168_v0 }
  0x98   :  { %1492 = vst.msk [vmem:[%s3070_s3 + $0x120] sm:$0xf] %vm1419_vm3, %v1347_v1 }
  0x99   :  { %1528 = vst.msk [vmem:[%s3070_s3 + $0x1b0] sm:$0xf] %vm1419_vm3, %v1383_v2  ;;  %v953_v5 = vpop.f32.mrf.mxu2  ;;  %v1043_v6 = vpop.f32.mrf.mxu3 }
  0x9a   :  { %1421 = vst.msk [vmem:[%s3070_s3 + $0x4] sm:$0xf] %vm1419_vm3, %v1276_v3  ;;  %v954_v9 = vadd.f32 %v2180_v40, %v953_v5  ;;  %v1044_v10 = vadd.f32 %v2180_v40, %v1043_v6  ;;  %v776_v11 = vpop.f32.mrf.mxu0  ;;  %v866_v12 = vpop.f32.mrf.mxu1 }
  0x9b   :  { %1457 = vst.msk [vmem:[%s3070_s3 + $0x94] sm:$0xf] %vm1419_vm3, %v1312_v4  ;;  %v777_v15 = vadd.f32 %v2180_v40, %v776_v11  ;;  %v867_v16 = vadd.f32 %v2180_v40, %v866_v12 }
  0x9c   :  { %v1204_v17 = vmax.f32 %v954_v9, 0.0  ;;  %v1240_v18 = vmax.f32 %v1044_v10, 0.0 }
  0x9d   :  { %v1133_v19 = vmax.f32 %v777_v15, 0.0  ;;  %v1169_v20 = vmax.f32 %v867_v16, 0.0  ;;  %1873 = vmatmul.msk.bf16.gmra.mxu0 %vm538_vm2, %v1945_v7  ;;  %1891 = vmatmul.msk.bf16.gmra.mxu1 %vm538_vm2, %v1963_v8  ;;  %v1947_v16 = vld [vmem:[%s3069_s0 + $0x58] sm:$0xff] }
  0x9e   :  { %v1348_v21 = vpack.c.bf16 %v1204_v17, %v1204_v17  ;;  %v1384_v22 = vpack.c.bf16 %v1240_v18, %v1240_v18  ;;  %1909 = vmatmul.msk.bf16.gmra.mxu2 %vm538_vm2, %v1981_v13  ;;  %1927 = vmatmul.msk.bf16.gmra.mxu3 %vm538_vm2, %v1999_v14  ;;  %v1965_v17 = vld [vmem:[%s3069_s0 + $0xe8] sm:$0xff] }
  0x9f   :  { %v1277_v23 = vpack.c.bf16 %v1133_v19, %v1133_v19  ;;  %v1313_v24 = vpack.c.bf16 %v1169_v20, %v1169_v20 }
  0xa0   :  { %1493 = vst.msk [vmem:[%s3070_s3 + $0x124] sm:$0xf] %vm1419_vm3, %v1348_v21 }
  0xa1   :  { %1529 = vst.msk [vmem:[%s3070_s3 + $0x1b4] sm:$0xf] %vm1419_vm3, %v1384_v22  ;;  %v956_v25 = vpop.f32.mrf.mxu2  ;;  %v1046_v26 = vpop.f32.mrf.mxu3  ;;  %v1983_v22 = vld [vmem:[%s3069_s0 + $0x178] sm:$0xff] }
  0xa2   :  { %1422 = vst.msk [vmem:[%s3070_s3 + $0x8] sm:$0xf] %vm1419_vm3, %v1277_v23  ;;  %v957_v27 = vadd.f32 %v2180_v40, %v956_v25  ;;  %v1047_v28 = vadd.f32 %v2180_v40, %v1046_v26  ;;  %v778_v29 = vpop.f32.mrf.mxu0  ;;  %v868_v30 = vpop.f32.mrf.mxu1  ;;  %v2001_v23 = vld [vmem:[%s3069_s0 + $0x208] sm:$0xff] }
  0xa3   :  { %1458 = vst.msk [vmem:[%s3070_s3 + $0x98] sm:$0xf] %vm1419_vm3, %v1313_v24  ;;  %v779_v31 = vadd.f32 %v2180_v40, %v778_v29  ;;  %v869_v32 = vadd.f32 %v2180_v40, %v868_v30 }
  0xa4   :  { %v1205_v33 = vmax.f32 %v957_v27, 0.0  ;;  %v1241_v34 = vmax.f32 %v1047_v28, 0.0 }
  0xa5   :  { %v1134_v35 = vmax.f32 %v779_v31, 0.0  ;;  %v1170_v36 = vmax.f32 %v869_v32, 0.0 }
  0xa6   :  { %v1349_v37 = vpack.c.bf16 %v1205_v33, %v1205_v33  ;;  %v1385_v38 = vpack.c.bf16 %v1241_v34, %v1241_v34 }
  0xa7   :  { %v1278_v39 = vpack.c.bf16 %v1134_v35, %v1134_v35  ;;  %v1314_v41 = vpack.c.bf16 %v1170_v36, %v1170_v36 }
  0xa8   :  { %1494 = vst.msk [vmem:[%s3070_s3 + $0x128] sm:$0xf] %vm1419_vm3, %v1349_v37 }
  0xa9   :  { %1530 = vst.msk [vmem:[%s3070_s3 + $0x1b8] sm:$0xf] %vm1419_vm3, %v1385_v38  ;;  %v958_v42 = vpop.f32.mrf.mxu2  ;;  %v1048_v43 = vpop.f32.mrf.mxu3 }
  0xaa   :  { %1423 = vst.msk [vmem:[%s3070_s3 + $0xc] sm:$0xf] %vm1419_vm3, %v1278_v39  ;;  %v959_v46 = vadd.f32 %v2180_v40, %v958_v42  ;;  %v1049_v47 = vadd.f32 %v2180_v40, %v1048_v43  ;;  %v781_v48 = vpop.f32.mrf.mxu0  ;;  %v871_v49 = vpop.f32.mrf.mxu1 }
  0xab   :  { %1459 = vst.msk [vmem:[%s3070_s3 + $0x9c] sm:$0xf] %vm1419_vm3, %v1314_v41  ;;  %v782_v52 = vadd.f32 %v2180_v40, %v781_v48  ;;  %v872_v53 = vadd.f32 %v2180_v40, %v871_v49 }
  0xac   :  { %v1206_v54 = vmax.f32 %v959_v46, 0.0  ;;  %v1242_v55 = vmax.f32 %v1049_v47, 0.0 }
  0xad   :  { %v1135_v56 = vmax.f32 %v782_v52, 0.0  ;;  %v1171_v57 = vmax.f32 %v872_v53, 0.0  ;;  %1874 = vmatmul.msk.bf16.gmra.mxu0 %vm538_vm2, %v1946_v44  ;;  %1892 = vmatmul.msk.bf16.gmra.mxu1 %vm538_vm2, %v1964_v45  ;;  %v1948_v53 = vld [vmem:[%s3069_s0 + $0x60] sm:$0xff] }
  0xae   :  { %v1350_v58 = vpack.c.bf16 %v1206_v54, %v1206_v54  ;;  %v1386_v59 = vpack.c.bf16 %v1242_v55, %v1242_v55  ;;  %1910 = vmatmul.msk.bf16.gmra.mxu2 %vm538_vm2, %v1982_v50  ;;  %1928 = vmatmul.msk.bf16.gmra.mxu3 %vm538_vm2, %v2000_v51  ;;  %v1966_v54 = vld [vmem:[%s3069_s0 + $0xf0] sm:$0xff] }
  0xaf   :  { %v1279_v60 = vpack.c.bf16 %v1135_v56, %v1135_v56  ;;  %v1315_v61 = vpack.c.bf16 %v1171_v57, %v1171_v57 }
  0xb0   :  { %1495 = vst.msk [vmem:[%s3070_s3 + $0x12c] sm:$0xf] %vm1419_vm3, %v1350_v58 }
  0xb1   :  { %1531 = vst.msk [vmem:[%s3070_s3 + $0x1bc] sm:$0xf] %vm1419_vm3, %v1386_v59  ;;  %v961_v62 = vpop.f32.mrf.mxu2  ;;  %v1051_v63 = vpop.f32.mrf.mxu3  ;;  %v1984_v59 = vld [vmem:[%s3069_s0 + $0x180] sm:$0xff] }
  0xb2   :  { %1424 = vst.msk [vmem:[%s3070_s3 + $0x10] sm:$0xf] %vm1419_vm3, %v1279_v60  ;;  %v962_v0 = vadd.f32 %v2180_v40, %v961_v62  ;;  %v1052_v1 = vadd.f32 %v2180_v40, %v1051_v63  ;;  %v783_v2 = vpop.f32.mrf.mxu0  ;;  %v873_v3 = vpop.f32.mrf.mxu1  ;;  %v2002_v60 = vld [vmem:[%s3069_s0 + $0x210] sm:$0xff] }
  0xb3   :  { %1460 = vst.msk [vmem:[%s3070_s3 + $0xa0] sm:$0xf] %vm1419_vm3, %v1315_v61  ;;  %v784_v4 = vadd.f32 %v2180_v40, %v783_v2  ;;  %v874_v5 = vadd.f32 %v2180_v40, %v873_v3 }
  0xb4   :  { %v1207_v6 = vmax.f32 %v962_v0, 0.0  ;;  %v1243_v7 = vmax.f32 %v1052_v1, 0.0 }
  0xb5   :  { %v1136_v8 = vmax.f32 %v784_v4, 0.0  ;;  %v1172_v9 = vmax.f32 %v874_v5, 0.0 }
  0xb6   :  { %v1351_v10 = vpack.c.bf16 %v1207_v6, %v1207_v6  ;;  %v1387_v11 = vpack.c.bf16 %v1243_v7, %v1243_v7 }
  0xb7   :  { %v1280_v12 = vpack.c.bf16 %v1136_v8, %v1136_v8  ;;  %v1316_v13 = vpack.c.bf16 %v1172_v9, %v1172_v9 }
  0xb8   :  { %1496 = vst.msk [vmem:[%s3070_s3 + $0x130] sm:$0xf] %vm1419_vm3, %v1351_v10 }
  0xb9   :  { %1532 = vst.msk [vmem:[%s3070_s3 + $0x1c0] sm:$0xf] %vm1419_vm3, %v1387_v11  ;;  %v963_v14 = vpop.f32.mrf.mxu2  ;;  %v1053_v15 = vpop.f32.mrf.mxu3 }
  0xba   :  { %1425 = vst.msk [vmem:[%s3070_s3 + $0x14] sm:$0xf] %vm1419_vm3, %v1280_v12  ;;  %v964_v18 = vadd.f32 %v2180_v40, %v963_v14  ;;  %v1054_v19 = vadd.f32 %v2180_v40, %v1053_v15  ;;  %v786_v20 = vpop.f32.mrf.mxu0  ;;  %v876_v21 = vpop.f32.mrf.mxu1 }
  0xbb   :  { %1461 = vst.msk [vmem:[%s3070_s3 + $0xa4] sm:$0xf] %vm1419_vm3, %v1316_v13  ;;  %v787_v24 = vadd.f32 %v2180_v40, %v786_v20  ;;  %v877_v25 = vadd.f32 %v2180_v40, %v876_v21 }
  0xbc   :  { %v1208_v26 = vmax.f32 %v964_v18, 0.0  ;;  %v1244_v27 = vmax.f32 %v1054_v19, 0.0 }
  0xbd   :  { %v1137_v28 = vmax.f32 %v787_v24, 0.0  ;;  %v1173_v29 = vmax.f32 %v877_v25, 0.0  ;;  %1875 = vmatmul.msk.bf16.gmra.mxu0 %vm538_vm2, %v1947_v16  ;;  %1893 = vmatmul.msk.bf16.gmra.mxu1 %vm538_vm2, %v1965_v17  ;;  %v1949_v25 = vld [vmem:[%s3069_s0 + $0x68] sm:$0xff] }
  0xbe   :  { %v1352_v30 = vpack.c.bf16 %v1208_v26, %v1208_v26  ;;  %v1388_v31 = vpack.c.bf16 %v1244_v27, %v1244_v27  ;;  %1911 = vmatmul.msk.bf16.gmra.mxu2 %vm538_vm2, %v1983_v22  ;;  %1929 = vmatmul.msk.bf16.gmra.mxu3 %vm538_vm2, %v2001_v23  ;;  %v1967_v26 = vld [vmem:[%s3069_s0 + $0xf8] sm:$0xff] }
  0xbf   :  { %v1281_v32 = vpack.c.bf16 %v1137_v28, %v1137_v28  ;;  %v1317_v33 = vpack.c.bf16 %v1173_v29, %v1173_v29 }
  0xc0   :  { %1497 = vst.msk [vmem:[%s3070_s3 + $0x134] sm:$0xf] %vm1419_vm3, %v1352_v30 }
  0xc1   :  { %1533 = vst.msk [vmem:[%s3070_s3 + $0x1c4] sm:$0xf] %vm1419_vm3, %v1388_v31  ;;  %v966_v34 = vpop.f32.mrf.mxu2  ;;  %v1056_v35 = vpop.f32.mrf.mxu3  ;;  %v1985_v31 = vld [vmem:[%s3069_s0 + $0x188] sm:$0xff] }
  0xc2   :  { %1426 = vst.msk [vmem:[%s3070_s3 + $0x18] sm:$0xf] %vm1419_vm3, %v1281_v32  ;;  %v967_v36 = vadd.f32 %v2180_v40, %v966_v34  ;;  %v1057_v37 = vadd.f32 %v2180_v40, %v1056_v35  ;;  %v788_v38 = vpop.f32.mrf.mxu0  ;;  %v878_v39 = vpop.f32.mrf.mxu1  ;;  %v2003_v32 = vld [vmem:[%s3069_s0 + $0x218] sm:$0xff] }
  0xc3   :  { %1462 = vst.msk [vmem:[%s3070_s3 + $0xa8] sm:$0xf] %vm1419_vm3, %v1317_v33  ;;  %v789_v41 = vadd.f32 %v2180_v40, %v788_v38  ;;  %v879_v42 = vadd.f32 %v2180_v40, %v878_v39 }
  0xc4   :  { %v1209_v43 = vmax.f32 %v967_v36, 0.0  ;;  %v1245_v44 = vmax.f32 %v1057_v37, 0.0 }
  0xc5   :  { %v1138_v45 = vmax.f32 %v789_v41, 0.0  ;;  %v1174_v46 = vmax.f32 %v879_v42, 0.0 }
  0xc6   :  { %v1353_v47 = vpack.c.bf16 %v1209_v43, %v1209_v43  ;;  %v1389_v48 = vpack.c.bf16 %v1245_v44, %v1245_v44 }
  0xc7   :  { %v1282_v49 = vpack.c.bf16 %v1138_v45, %v1138_v45  ;;  %v1318_v50 = vpack.c.bf16 %v1174_v46, %v1174_v46 }
  0xc8   :  { %1498 = vst.msk [vmem:[%s3070_s3 + $0x138] sm:$0xf] %vm1419_vm3, %v1353_v47 }
  0xc9   :  { %1534 = vst.msk [vmem:[%s3070_s3 + $0x1c8] sm:$0xf] %vm1419_vm3, %v1389_v48  ;;  %v968_v51 = vpop.f32.mrf.mxu2  ;;  %v1058_v52 = vpop.f32.mrf.mxu3 }
  0xca   :  { %1427 = vst.msk [vmem:[%s3070_s3 + $0x1c] sm:$0xf] %vm1419_vm3, %v1282_v49  ;;  %v969_v55 = vadd.f32 %v2180_v40, %v968_v51  ;;  %v1059_v56 = vadd.f32 %v2180_v40, %v1058_v52  ;;  %v791_v57 = vpop.f32.mrf.mxu0  ;;  %v881_v58 = vpop.f32.mrf.mxu1 }
  0xcb   :  { %1463 = vst.msk [vmem:[%s3070_s3 + $0xac] sm:$0xf] %vm1419_vm3, %v1318_v50  ;;  %v792_v61 = vadd.f32 %v2180_v40, %v791_v57  ;;  %v882_v62 = vadd.f32 %v2180_v40, %v881_v58 }
  0xcc   :  { %v1210_v63 = vmax.f32 %v969_v55, 0.0  ;;  %v1246_v0 = vmax.f32 %v1059_v56, 0.0 }
  0xcd   :  { %v1139_v1 = vmax.f32 %v792_v61, 0.0  ;;  %v1175_v2 = vmax.f32 %v882_v62, 0.0  ;;  %1876 = vmatmul.msk.bf16.gmra.mxu0 %vm538_vm2, %v1948_v53  ;;  %1894 = vmatmul.msk.bf16.gmra.mxu1 %vm538_vm2, %v1966_v54  ;;  %v1950_v62 = vld [vmem:[%s3069_s0 + $0x70] sm:$0xff] }
  0xce   :  { %v1354_v3 = vpack.c.bf16 %v1210_v63, %v1210_v63  ;;  %v1390_v4 = vpack.c.bf16 %v1246_v0, %v1246_v0  ;;  %1912 = vmatmul.msk.bf16.gmra.mxu2 %vm538_vm2, %v1984_v59  ;;  %1930 = vmatmul.msk.bf16.gmra.mxu3 %vm538_vm2, %v2002_v60  ;;  %v1968_v63 = vld [vmem:[%s3069_s0 + $0x100] sm:$0xff] }
  0xcf   :  { %v1283_v5 = vpack.c.bf16 %v1139_v1, %v1139_v1  ;;  %v1319_v6 = vpack.c.bf16 %v1175_v2, %v1175_v2 }
  0xd0   :  { %1499 = vst.msk [vmem:[%s3070_s3 + $0x13c] sm:$0xf] %vm1419_vm3, %v1354_v3 }
  0xd1   :  { %1535 = vst.msk [vmem:[%s3070_s3 + $0x1cc] sm:$0xf] %vm1419_vm3, %v1390_v4  ;;  %v971_v7 = vpop.f32.mrf.mxu2  ;;  %v1061_v8 = vpop.f32.mrf.mxu3  ;;  %v1986_v4 = vld [vmem:[%s3069_s0 + $0x190] sm:$0xff] }
  0xd2   :  { %1428 = vst.msk [vmem:[%s3070_s3 + $0x20] sm:$0xf] %vm1419_vm3, %v1283_v5  ;;  %v972_v9 = vadd.f32 %v2180_v40, %v971_v7  ;;  %v1062_v10 = vadd.f32 %v2180_v40, %v1061_v8  ;;  %v793_v11 = vpop.f32.mrf.mxu0  ;;  %v883_v12 = vpop.f32.mrf.mxu1  ;;  %v2004_v5 = vld [vmem:[%s3069_s0 + $0x220] sm:$0xff] }
  0xd3   :  { %1464 = vst.msk [vmem:[%s3070_s3 + $0xb0] sm:$0xf] %vm1419_vm3, %v1319_v6  ;;  %v794_v13 = vadd.f32 %v2180_v40, %v793_v11  ;;  %v884_v14 = vadd.f32 %v2180_v40, %v883_v12 }
  0xd4   :  { %v1211_v15 = vmax.f32 %v972_v9, 0.0  ;;  %v1247_v16 = vmax.f32 %v1062_v10, 0.0 }
  0xd5   :  { %v1140_v17 = vmax.f32 %v794_v13, 0.0  ;;  %v1176_v18 = vmax.f32 %v884_v14, 0.0 }
  0xd6   :  { %v1355_v19 = vpack.c.bf16 %v1211_v15, %v1211_v15  ;;  %v1391_v20 = vpack.c.bf16 %v1247_v16, %v1247_v16 }
  0xd7   :  { %v1284_v21 = vpack.c.bf16 %v1140_v17, %v1140_v17  ;;  %v1320_v22 = vpack.c.bf16 %v1176_v18, %v1176_v18 }
  0xd8   :  { %1500 = vst.msk [vmem:[%s3070_s3 + $0x140] sm:$0xf] %vm1419_vm3, %v1355_v19 }
  0xd9   :  { %1536 = vst.msk [vmem:[%s3070_s3 + $0x1d0] sm:$0xf] %vm1419_vm3, %v1391_v20  ;;  %v973_v23 = vpop.f32.mrf.mxu2  ;;  %v1063_v24 = vpop.f32.mrf.mxu3 }
  0xda   :  { %1429 = vst.msk [vmem:[%s3070_s3 + $0x24] sm:$0xf] %vm1419_vm3, %v1284_v21  ;;  %v974_v27 = vadd.f32 %v2180_v40, %v973_v23  ;;  %v1064_v28 = vadd.f32 %v2180_v40, %v1063_v24  ;;  %v796_v29 = vpop.f32.mrf.mxu0  ;;  %v886_v30 = vpop.f32.mrf.mxu1 }
  0xdb   :  { %1465 = vst.msk [vmem:[%s3070_s3 + $0xb4] sm:$0xf] %vm1419_vm3, %v1320_v22  ;;  %v797_v33 = vadd.f32 %v2180_v40, %v796_v29  ;;  %v887_v34 = vadd.f32 %v2180_v40, %v886_v30 }
  0xdc   :  { %v1212_v35 = vmax.f32 %v974_v27, 0.0  ;;  %v1248_v36 = vmax.f32 %v1064_v28, 0.0 }
  0xdd   :  { %v1141_v37 = vmax.f32 %v797_v33, 0.0  ;;  %v1177_v38 = vmax.f32 %v887_v34, 0.0  ;;  %1877 = vmatmul.msk.bf16.gmra.mxu0 %vm538_vm2, %v1949_v25  ;;  %1895 = vmatmul.msk.bf16.gmra.mxu1 %vm538_vm2, %v1967_v26  ;;  %v1951_v34 = vld [vmem:[%s3069_s0 + $0x78] sm:$0xff] }
  0xde   :  { %v1356_v39 = vpack.c.bf16 %v1212_v35, %v1212_v35  ;;  %v1392_v41 = vpack.c.bf16 %v1248_v36, %v1248_v36  ;;  %1913 = vmatmul.msk.bf16.gmra.mxu2 %vm538_vm2, %v1985_v31  ;;  %1931 = vmatmul.msk.bf16.gmra.mxu3 %vm538_vm2, %v2003_v32  ;;  %v1969_v35 = vld [vmem:[%s3069_s0 + $0x108] sm:$0xff] }
  0xdf   :  { %v1285_v42 = vpack.c.bf16 %v1141_v37, %v1141_v37  ;;  %v1321_v43 = vpack.c.bf16 %v1177_v38, %v1177_v38 }
  0xe0   :  { %1501 = vst.msk [vmem:[%s3070_s3 + $0x144] sm:$0xf] %vm1419_vm3, %v1356_v39 }
  0xe1   :  { %1537 = vst.msk [vmem:[%s3070_s3 + $0x1d4] sm:$0xf] %vm1419_vm3, %v1392_v41  ;;  %v976_v44 = vpop.f32.mrf.mxu2  ;;  %v1066_v45 = vpop.f32.mrf.mxu3  ;;  %v1987_v41 = vld [vmem:[%s3069_s0 + $0x198] sm:$0xff] }
  0xe2   :  { %1430 = vst.msk [vmem:[%s3070_s3 + $0x28] sm:$0xf] %vm1419_vm3, %v1285_v42  ;;  %v977_v46 = vadd.f32 %v2180_v40, %v976_v44  ;;  %v1067_v47 = vadd.f32 %v2180_v40, %v1066_v45  ;;  %v798_v48 = vpop.f32.mrf.mxu0  ;;  %v888_v49 = vpop.f32.mrf.mxu1  ;;  %v2005_v42 = vld [vmem:[%s3069_s0 + $0x228] sm:$0xff] }
  0xe3   :  { %1466 = vst.msk [vmem:[%s3070_s3 + $0xb8] sm:$0xf] %vm1419_vm3, %v1321_v43  ;;  %v799_v50 = vadd.f32 %v2180_v40, %v798_v48  ;;  %v889_v51 = vadd.f32 %v2180_v40, %v888_v49 }
  0xe4   :  { %v1213_v52 = vmax.f32 %v977_v46, 0.0  ;;  %v1249_v53 = vmax.f32 %v1067_v47, 0.0 }
  0xe5   :  { %v1142_v54 = vmax.f32 %v799_v50, 0.0  ;;  %v1178_v55 = vmax.f32 %v889_v51, 0.0 }
  0xe6   :  { %v1357_v56 = vpack.c.bf16 %v1213_v52, %v1213_v52  ;;  %v1393_v57 = vpack.c.bf16 %v1249_v53, %v1249_v53 }
  0xe7   :  { %v1286_v58 = vpack.c.bf16 %v1142_v54, %v1142_v54  ;;  %v1322_v59 = vpack.c.bf16 %v1178_v55, %v1178_v55 }
  0xe8   :  { %1502 = vst.msk [vmem:[%s3070_s3 + $0x148] sm:$0xf] %vm1419_vm3, %v1357_v56 }
  0xe9   :  { %1538 = vst.msk [vmem:[%s3070_s3 + $0x1d8] sm:$0xf] %vm1419_vm3, %v1393_v57  ;;  %v978_v60 = vpop.f32.mrf.mxu2  ;;  %v1068_v61 = vpop.f32.mrf.mxu3 }
  0xea   :  { %1431 = vst.msk [vmem:[%s3070_s3 + $0x2c] sm:$0xf] %vm1419_vm3, %v1286_v58  ;;  %v979_v0 = vadd.f32 %v2180_v40, %v978_v60  ;;  %v1069_v1 = vadd.f32 %v2180_v40, %v1068_v61  ;;  %v801_v2 = vpop.f32.mrf.mxu0  ;;  %v891_v3 = vpop.f32.mrf.mxu1 }
  0xeb   :  { %1467 = vst.msk [vmem:[%s3070_s3 + $0xbc] sm:$0xf] %vm1419_vm3, %v1322_v59  ;;  %v802_v6 = vadd.f32 %v2180_v40, %v801_v2  ;;  %v892_v7 = vadd.f32 %v2180_v40, %v891_v3 }
  0xec   :  { %v1214_v8 = vmax.f32 %v979_v0, 0.0  ;;  %v1250_v9 = vmax.f32 %v1069_v1, 0.0 }
  0xed   :  { %v1143_v10 = vmax.f32 %v802_v6, 0.0  ;;  %v1179_v11 = vmax.f32 %v892_v7, 0.0  ;;  %1878 = vmatmul.msk.bf16.gmra.mxu0 %vm538_vm2, %v1950_v62  ;;  %1896 = vmatmul.msk.bf16.gmra.mxu1 %vm538_vm2, %v1968_v63  ;;  %v1952_v7 = vld [vmem:[%s3069_s0 + $0x80] sm:$0xff] }
  0xee   :  { %v1358_v12 = vpack.c.bf16 %v1214_v8, %v1214_v8  ;;  %v1394_v13 = vpack.c.bf16 %v1250_v9, %v1250_v9  ;;  %1914 = vmatmul.msk.bf16.gmra.mxu2 %vm538_vm2, %v1986_v4  ;;  %1932 = vmatmul.msk.bf16.gmra.mxu3 %vm538_vm2, %v2004_v5  ;;  %v1970_v8 = vld [vmem:[%s3069_s0 + $0x110] sm:$0xff] }
  0xef   :  { %v1287_v14 = vpack.c.bf16 %v1143_v10, %v1143_v10  ;;  %v1323_v15 = vpack.c.bf16 %v1179_v11, %v1179_v11 }
  0xf0   :  { %1503 = vst.msk [vmem:[%s3070_s3 + $0x14c] sm:$0xf] %vm1419_vm3, %v1358_v12 }
  0xf1   :  { %1539 = vst.msk [vmem:[%s3070_s3 + $0x1dc] sm:$0xf] %vm1419_vm3, %v1394_v13  ;;  %v981_v16 = vpop.f32.mrf.mxu2  ;;  %v1071_v17 = vpop.f32.mrf.mxu3  ;;  %v1988_v13 = vld [vmem:[%s3069_s0 + $0x1a0] sm:$0xff] }
  0xf2   :  { %1432 = vst.msk [vmem:[%s3070_s3 + $0x30] sm:$0xf] %vm1419_vm3, %v1287_v14  ;;  %v982_v18 = vadd.f32 %v2180_v40, %v981_v16  ;;  %v1072_v19 = vadd.f32 %v2180_v40, %v1071_v17  ;;  %v803_v20 = vpop.f32.mrf.mxu0  ;;  %v893_v21 = vpop.f32.mrf.mxu1  ;;  %v2006_v14 = vld [vmem:[%s3069_s0 + $0x230] sm:$0xff] }
  0xf3   :  { %1468 = vst.msk [vmem:[%s3070_s3 + $0xc0] sm:$0xf] %vm1419_vm3, %v1323_v15  ;;  %v804_v22 = vadd.f32 %v2180_v40, %v803_v20  ;;  %v894_v23 = vadd.f32 %v2180_v40, %v893_v21 }
  0xf4   :  { %v1215_v24 = vmax.f32 %v982_v18, 0.0  ;;  %v1251_v25 = vmax.f32 %v1072_v19, 0.0 }
  0xf5   :  { %v1144_v26 = vmax.f32 %v804_v22, 0.0  ;;  %v1180_v27 = vmax.f32 %v894_v23, 0.0 }
  0xf6   :  { %v1359_v28 = vpack.c.bf16 %v1215_v24, %v1215_v24  ;;  %v1395_v29 = vpack.c.bf16 %v1251_v25, %v1251_v25 }
  0xf7   :  { %v1288_v30 = vpack.c.bf16 %v1144_v26, %v1144_v26  ;;  %v1324_v31 = vpack.c.bf16 %v1180_v27, %v1180_v27 }
  0xf8   :  { %1504 = vst.msk [vmem:[%s3070_s3 + $0x150] sm:$0xf] %vm1419_vm3, %v1359_v28 }
  0xf9   :  { %1540 = vst.msk [vmem:[%s3070_s3 + $0x1e0] sm:$0xf] %vm1419_vm3, %v1395_v29  ;;  %v983_v32 = vpop.f32.mrf.mxu2  ;;  %v1073_v33 = vpop.f32.mrf.mxu3 }
  0xfa   :  { %1433 = vst.msk [vmem:[%s3070_s3 + $0x34] sm:$0xf] %vm1419_vm3, %v1288_v30  ;;  %v984_v36 = vadd.f32 %v2180_v40, %v983_v32  ;;  %v1074_v37 = vadd.f32 %v2180_v40, %v1073_v33  ;;  %v806_v38 = vpop.f32.mrf.mxu0  ;;  %v896_v39 = vpop.f32.mrf.mxu1 }
  0xfb   :  { %1469 = vst.msk [vmem:[%s3070_s3 + $0xc4] sm:$0xf] %vm1419_vm3, %v1324_v31  ;;  %v807_v43 = vadd.f32 %v2180_v40, %v806_v38  ;;  %v897_v44 = vadd.f32 %v2180_v40, %v896_v39 }
  0xfc   :  { %v1216_v45 = vmax.f32 %v984_v36, 0.0  ;;  %v1252_v46 = vmax.f32 %v1074_v37, 0.0 }
  0xfd   :  { %v1145_v47 = vmax.f32 %v807_v43, 0.0  ;;  %v1181_v48 = vmax.f32 %v897_v44, 0.0  ;;  %1879 = vmatmul.msk.bf16.gmra.mxu0 %vm538_vm2, %v1951_v34  ;;  %1897 = vmatmul.msk.bf16.gmra.mxu1 %vm538_vm2, %v1969_v35  ;;  %v1953_v44 = vld [vmem:[%s3069_s0 + $0x88] sm:$0xff] }
  0xfe   :  { %v1360_v49 = vpack.c.bf16 %v1216_v45, %v1216_v45  ;;  %v1396_v50 = vpack.c.bf16 %v1252_v46, %v1252_v46  ;;  %1915 = vmatmul.msk.bf16.gmra.mxu2 %vm538_vm2, %v1987_v41  ;;  %1933 = vmatmul.msk.bf16.gmra.mxu3 %vm538_vm2, %v2005_v42  ;;  %v1971_v45 = vld [vmem:[%s3069_s0 + $0x118] sm:$0xff] }
  0xff   :  { %v1289_v51 = vpack.c.bf16 %v1145_v47, %v1145_v47  ;;  %v1325_v52 = vpack.c.bf16 %v1181_v48, %v1181_v48 }
 0x100   :  { %1505 = vst.msk [vmem:[%s3070_s3 + $0x154] sm:$0xf] %vm1419_vm3, %v1360_v49 }
 0x101   :  { %1541 = vst.msk [vmem:[%s3070_s3 + $0x1e4] sm:$0xf] %vm1419_vm3, %v1396_v50  ;;  %v986_v53 = vpop.f32.mrf.mxu2  ;;  %v1076_v54 = vpop.f32.mrf.mxu3  ;;  %v1989_v50 = vld [vmem:[%s3069_s0 + $0x1a8] sm:$0xff] }
 0x102   :  { %1434 = vst.msk [vmem:[%s3070_s3 + $0x38] sm:$0xf] %vm1419_vm3, %v1289_v51  ;;  %v987_v55 = vadd.f32 %v2180_v40, %v986_v53  ;;  %v1077_v56 = vadd.f32 %v2180_v40, %v1076_v54  ;;  %v808_v57 = vpop.f32.mrf.mxu0  ;;  %v898_v58 = vpop.f32.mrf.mxu1  ;;  %v2007_v51 = vld [vmem:[%s3069_s0 + $0x238] sm:$0xff] }
 0x103   :  { %1470 = vst.msk [vmem:[%s3070_s3 + $0xc8] sm:$0xf] %vm1419_vm3, %v1325_v52  ;;  %v809_v59 = vadd.f32 %v2180_v40, %v808_v57  ;;  %v899_v60 = vadd.f32 %v2180_v40, %v898_v58 }
 0x104   :  { %v1217_v61 = vmax.f32 %v987_v55, 0.0  ;;  %v1253_v62 = vmax.f32 %v1077_v56, 0.0 }
 0x105   :  { %v1146_v63 = vmax.f32 %v809_v59, 0.0  ;;  %v1182_v0 = vmax.f32 %v899_v60, 0.0 }
 0x106   :  { %v1361_v1 = vpack.c.bf16 %v1217_v61, %v1217_v61  ;;  %v1397_v2 = vpack.c.bf16 %v1253_v62, %v1253_v62 }
 0x107   :  { %v1290_v3 = vpack.c.bf16 %v1146_v63, %v1146_v63  ;;  %v1326_v4 = vpack.c.bf16 %v1182_v0, %v1182_v0 }
 0x108   :  { %1506 = vst.msk [vmem:[%s3070_s3 + $0x158] sm:$0xf] %vm1419_vm3, %v1361_v1 }
 0x109   :  { %1542 = vst.msk [vmem:[%s3070_s3 + $0x1e8] sm:$0xf] %vm1419_vm3, %v1397_v2  ;;  %v988_v5 = vpop.f32.mrf.mxu2  ;;  %v1078_v6 = vpop.f32.mrf.mxu3 }
 0x10a   :  { %1435 = vst.msk [vmem:[%s3070_s3 + $0x3c] sm:$0xf] %vm1419_vm3, %v1290_v3  ;;  %v989_v9 = vadd.f32 %v2180_v40, %v988_v5  ;;  %v1079_v10 = vadd.f32 %v2180_v40, %v1078_v6  ;;  %v811_v11 = vpop.f32.mrf.mxu0  ;;  %v901_v12 = vpop.f32.mrf.mxu1 }
 0x10b   :  { %1471 = vst.msk [vmem:[%s3070_s3 + $0xcc] sm:$0xf] %vm1419_vm3, %v1326_v4  ;;  %v812_v15 = vadd.f32 %v2180_v40, %v811_v11  ;;  %v902_v16 = vadd.f32 %v2180_v40, %v901_v12 }
 0x10c   :  { %v1218_v17 = vmax.f32 %v989_v9, 0.0  ;;  %v1254_v18 = vmax.f32 %v1079_v10, 0.0 }
 0x10d   :  { %v1147_v19 = vmax.f32 %v812_v15, 0.0  ;;  %v1183_v20 = vmax.f32 %v902_v16, 0.0  ;;  %1880 = vmatmul.msk.bf16.gmra.mxu0 %vm538_vm2, %v1952_v7  ;;  %1898 = vmatmul.msk.bf16.gmra.mxu1 %vm538_vm2, %v1970_v8 }
 0x10e   :  { %v1362_v21 = vpack.c.bf16 %v1218_v17, %v1218_v17  ;;  %v1398_v22 = vpack.c.bf16 %v1254_v18, %v1254_v18  ;;  %1916 = vmatmul.msk.bf16.gmra.mxu2 %vm538_vm2, %v1988_v13  ;;  %1934 = vmatmul.msk.bf16.gmra.mxu3 %vm538_vm2, %v2006_v14 }
 0x10f   :  { %v1291_v23 = vpack.c.bf16 %v1147_v19, %v1147_v19  ;;  %v1327_v24 = vpack.c.bf16 %v1183_v20, %v1183_v20 }
 0x110   :  { %1507 = vst.msk [vmem:[%s3070_s3 + $0x15c] sm:$0xf] %vm1419_vm3, %v1362_v21 }
 0x111   :  { %1543 = vst.msk [vmem:[%s3070_s3 + $0x1ec] sm:$0xf] %vm1419_vm3, %v1398_v22  ;;  %v991_v25 = vpop.f32.mrf.mxu2  ;;  %v1081_v26 = vpop.f32.mrf.mxu3 }
 0x112   :  { %1436 = vst.msk [vmem:[%s3070_s3 + $0x40] sm:$0xf] %vm1419_vm3, %v1291_v23  ;;  %v992_v27 = vadd.f32 %v2180_v40, %v991_v25  ;;  %v1082_v28 = vadd.f32 %v2180_v40, %v1081_v26  ;;  %v813_v29 = vpop.f32.mrf.mxu0  ;;  %v903_v30 = vpop.f32.mrf.mxu1 }
 0x113   :  { %1472 = vst.msk [vmem:[%s3070_s3 + $0xd0] sm:$0xf] %vm1419_vm3, %v1327_v24  ;;  %v814_v31 = vadd.f32 %v2180_v40, %v813_v29  ;;  %v904_v32 = vadd.f32 %v2180_v40, %v903_v30 }
 0x114   :  { %v1219_v33 = vmax.f32 %v992_v27, 0.0  ;;  %v1255_v34 = vmax.f32 %v1082_v28, 0.0 }
 0x115   :  { %v1148_v35 = vmax.f32 %v814_v31, 0.0  ;;  %v1184_v36 = vmax.f32 %v904_v32, 0.0 }
 0x116   :  { %v1363_v37 = vpack.c.bf16 %v1219_v33, %v1219_v33  ;;  %v1399_v38 = vpack.c.bf16 %v1255_v34, %v1255_v34 }
 0x117   :  { %v1292_v39 = vpack.c.bf16 %v1148_v35, %v1148_v35  ;;  %v1328_v41 = vpack.c.bf16 %v1184_v36, %v1184_v36 }
 0x118   :  { %1508 = vst.msk [vmem:[%s3070_s3 + $0x160] sm:$0xf] %vm1419_vm3, %v1363_v37 }
 0x119   :  { %1544 = vst.msk [vmem:[%s3070_s3 + $0x1f0] sm:$0xf] %vm1419_vm3, %v1399_v38  ;;  %v993_v42 = vpop.f32.mrf.mxu2  ;;  %v1083_v43 = vpop.f32.mrf.mxu3 }
 0x11a   :  { %1437 = vst.msk [vmem:[%s3070_s3 + $0x44] sm:$0xf] %vm1419_vm3, %v1292_v39  ;;  %v994_v46 = vadd.f32 %v2180_v40, %v993_v42  ;;  %v1084_v47 = vadd.f32 %v2180_v40, %v1083_v43  ;;  %v816_v48 = vpop.f32.mrf.mxu0  ;;  %v906_v49 = vpop.f32.mrf.mxu1 }
 0x11b   :  { %1473 = vst.msk [vmem:[%s3070_s3 + $0xd4] sm:$0xf] %vm1419_vm3, %v1328_v41  ;;  %v817_v52 = vadd.f32 %v2180_v40, %v816_v48  ;;  %v907_v53 = vadd.f32 %v2180_v40, %v906_v49  ;;  %v2771_v48 = vld [vmem:[%s3068_s2] ss:$0 sm:$0xff] }
 0x11c   :  { %v1220_v54 = vmax.f32 %v994_v46, 0.0  ;;  %v1256_v55 = vmax.f32 %v1084_v47, 0.0 }
 0x11d   :  { %v1149_v56 = vmax.f32 %v817_v52, 0.0  ;;  %v1185_v57 = vmax.f32 %v907_v53, 0.0  ;;  %1881 = vmatmul.msk.bf16.gmra.mxu0 %vm538_vm2, %v1953_v44  ;;  %1899 = vmatmul.msk.bf16.gmra.mxu1 %vm538_vm2, %v1971_v45 }
 0x11e   :  { %v1364_v58 = vpack.c.bf16 %v1220_v54, %v1220_v54  ;;  %v1400_v59 = vpack.c.bf16 %v1256_v55, %v1256_v55  ;;  %1917 = vmatmul.msk.bf16.gmra.mxu2 %vm538_vm2, %v1989_v50  ;;  %1935 = vmatmul.msk.bf16.gmra.mxu3 %vm538_vm2, %v2007_v51 }
 0x11f   :  { %v1293_v60 = vpack.c.bf16 %v1149_v56, %v1149_v56  ;;  %v1329_v61 = vpack.c.bf16 %v1185_v57, %v1185_v57 }
 0x120   :  { %1509 = vst.msk [vmem:[%s3070_s3 + $0x164] sm:$0xf] %vm1419_vm3, %v1364_v58 }
 0x121   :  { %1545 = vst.msk [vmem:[%s3070_s3 + $0x1f4] sm:$0xf] %vm1419_vm3, %v1400_v59  ;;  %v996_v62 = vpop.f32.mrf.mxu2  ;;  %v1086_v63 = vpop.f32.mrf.mxu3 }
 0x122   :  { %1438 = vst.msk [vmem:[%s3070_s3 + $0x48] sm:$0xf] %vm1419_vm3, %v1293_v60  ;;  %v997_v0 = vadd.f32 %v2180_v40, %v996_v62  ;;  %v1087_v1 = vadd.f32 %v2180_v40, %v1086_v63  ;;  %v818_v2 = vpop.f32.mrf.mxu0  ;;  %v908_v3 = vpop.f32.mrf.mxu1 }
 0x123   :  { %1474 = vst.msk [vmem:[%s3070_s3 + $0xd8] sm:$0xf] %vm1419_vm3, %v1329_v61  ;;  %v819_v4 = vadd.f32 %v2180_v40, %v818_v2  ;;  %v909_v5 = vadd.f32 %v2180_v40, %v908_v3 }
 0x124   :  { %v1221_v6 = vmax.f32 %v997_v0, 0.0  ;;  %v1257_v7 = vmax.f32 %v1087_v1, 0.0 }
 0x125   :  { %v1150_v8 = vmax.f32 %v819_v4, 0.0  ;;  %v1186_v9 = vmax.f32 %v909_v5, 0.0 }
 0x126   :  { %v1365_v10 = vpack.c.bf16 %v1221_v6, %v1221_v6  ;;  %v1401_v11 = vpack.c.bf16 %v1257_v7, %v1257_v7 }
 0x127   :  { %v1294_v12 = vpack.c.bf16 %v1150_v8, %v1150_v8  ;;  %v1330_v13 = vpack.c.bf16 %v1186_v9, %v1186_v9 }
 0x128   :  { %1510 = vst.msk [vmem:[%s3070_s3 + $0x168] sm:$0xf] %vm1419_vm3, %v1365_v10 }
 0x129   :  { %1546 = vst.msk [vmem:[%s3070_s3 + $0x1f8] sm:$0xf] %vm1419_vm3, %v1401_v11  ;;  %v998_v14 = vpop.f32.mrf.mxu2  ;;  %v1088_v15 = vpop.f32.mrf.mxu3 }
 0x12a   :  { %1439 = vst.msk [vmem:[%s3070_s3 + $0x4c] sm:$0xf] %vm1419_vm3, %v1294_v12  ;;  %v999_v16 = vadd.f32 %v2180_v40, %v998_v14  ;;  %v1089_v17 = vadd.f32 %v2180_v40, %v1088_v15  ;;  %v821_v18 = vpop.f32.mrf.mxu0  ;;  %v911_v19 = vpop.f32.mrf.mxu1 }
 0x12b   :  { %1475 = vst.msk [vmem:[%s3070_s3 + $0xdc] sm:$0xf] %vm1419_vm3, %v1330_v13  ;;  %v822_v20 = vadd.f32 %v2180_v40, %v821_v18  ;;  %v912_v21 = vadd.f32 %v2180_v40, %v911_v19 }
 0x12c   :  { %v1222_v22 = vmax.f32 %v999_v16, 0.0  ;;  %v1258_v23 = vmax.f32 %v1089_v17, 0.0 }
 0x12d   :  { %v1151_v24 = vmax.f32 %v822_v20, 0.0  ;;  %v1187_v25 = vmax.f32 %v912_v21, 0.0 }
 0x12e   :  { %v1366_v26 = vpack.c.bf16 %v1222_v22, %v1222_v22  ;;  %v1402_v27 = vpack.c.bf16 %v1258_v23, %v1258_v23 }
 0x12f   :  { %v1295_v28 = vpack.c.bf16 %v1151_v24, %v1151_v24  ;;  %v1331_v29 = vpack.c.bf16 %v1187_v25, %v1187_v25 }
 0x130   :  { %1511 = vst.msk [vmem:[%s3070_s3 + $0x16c] sm:$0xf] %vm1419_vm3, %v1366_v26 }
 0x131   :  { %1547 = vst.msk [vmem:[%s3070_s3 + $0x1fc] sm:$0xf] %vm1419_vm3, %v1402_v27  ;;  %v1001_v30 = vpop.f32.mrf.mxu2  ;;  %v1091_v31 = vpop.f32.mrf.mxu3 }
 0x132   :  { %1440 = vst.msk [vmem:[%s3070_s3 + $0x50] sm:$0xf] %vm1419_vm3, %v1295_v28  ;;  %v1002_v32 = vadd.f32 %v2180_v40, %v1001_v30  ;;  %v1092_v33 = vadd.f32 %v2180_v40, %v1091_v31  ;;  %v823_v34 = vpop.f32.mrf.mxu0  ;;  %v913_v35 = vpop.f32.mrf.mxu1 }
 0x133   :  { %1476 = vst.msk [vmem:[%s3070_s3 + $0xe0] sm:$0xf] %vm1419_vm3, %v1331_v29  ;;  %v824_v36 = vadd.f32 %v2180_v40, %v823_v34  ;;  %v914_v37 = vadd.f32 %v2180_v40, %v913_v35 }
 0x134   :  { %v1223_v38 = vmax.f32 %v1002_v32, 0.0  ;;  %v1259_v39 = vmax.f32 %v1092_v33, 0.0 }
 0x135   :  { %v1152_v41 = vmax.f32 %v824_v36, 0.0  ;;  %v1188_v42 = vmax.f32 %v914_v37, 0.0 }
 0x136   :  { %v1367_v43 = vpack.c.bf16 %v1223_v38, %v1223_v38  ;;  %v1403_v44 = vpack.c.bf16 %v1259_v39, %v1259_v39 }
 0x137   :  { %v1296_v45 = vpack.c.bf16 %v1152_v41, %v1152_v41  ;;  %v1332_v46 = vpack.c.bf16 %v1188_v42, %v1188_v42 }
 0x138   :  { %1512 = vst.msk [vmem:[%s3070_s3 + $0x170] sm:$0xf] %vm1419_vm3, %v1367_v43 }
 0x139   :  { %1548 = vst.msk [vmem:[%s3070_s3 + $0x200] sm:$0xf] %vm1419_vm3, %v1403_v44  ;;  %v1003_v47 = vpop.f32.mrf.mxu2  ;;  %v1093_v40 = vpop.f32.mrf.mxu3 }
 0x13a   :  { %1441 = vst.msk [vmem:[%s3070_s3 + $0x54] sm:$0xf] %vm1419_vm3, %v1296_v45  ;;  %v1004_v49 = vadd.f32 %v2771_v48, %v1003_v47  ;;  %v1094_v50 = vadd.f32 %v2771_v48, %v1093_v40  ;;  %v826_v51 = vpop.f32.mrf.mxu0  ;;  %v916_v52 = vpop.f32.mrf.mxu1 }
 0x13b   :  { %1477 = vst.msk [vmem:[%s3070_s3 + $0xe4] sm:$0xf] %vm1419_vm3, %v1332_v46  ;;  %v827_v53 = vadd.f32 %v2771_v48, %v826_v51  ;;  %v917_v54 = vadd.f32 %v2771_v48, %v916_v52 }
 0x13c   :  { %v1224_v55 = vmax.f32 %v1004_v49, 0.0  ;;  %v1260_v56 = vmax.f32 %v1094_v50, 0.0 }
 0x13d   :  { %v1153_v57 = vmax.f32 %v827_v53, 0.0  ;;  %v1189_v58 = vmax.f32 %v917_v54, 0.0 }
 0x13e   :  { %v1368_v59 = vpack.c.bf16 %v1224_v55, %v1224_v55  ;;  %v1404_v60 = vpack.c.bf16 %v1260_v56, %v1260_v56 }
 0x13f   :  { %v1297_v61 = vpack.c.bf16 %v1153_v57, %v1153_v57  ;;  %v1333_v62 = vpack.c.bf16 %v1189_v58, %v1189_v58 }
 0x140   :  { %1513 = vst.msk [vmem:[%s3070_s3 + $0x174] sm:$0xf] %vm1419_vm3, %v1368_v59 }
 0x141   :  { %1549 = vst.msk [vmem:[%s3070_s3 + $0x204] sm:$0xf] %vm1419_vm3, %v1404_v60  ;;  %v1006_v63 = vpop.f32.mrf.mxu2  ;;  %v1096_v0 = vpop.f32.mrf.mxu3 }
 0x142   :  { %1442 = vst.msk [vmem:[%s3070_s3 + $0x58] sm:$0xf] %vm1419_vm3, %v1297_v61  ;;  %v1007_v1 = vadd.f32 %v2771_v48, %v1006_v63  ;;  %v1097_v2 = vadd.f32 %v2771_v48, %v1096_v0  ;;  %v828_v3 = vpop.f32.mrf.mxu0  ;;  %v918_v4 = vpop.f32.mrf.mxu1 }
 0x143   :  { %1478 = vst.msk [vmem:[%s3070_s3 + $0xe8] sm:$0xf] %vm1419_vm3, %v1333_v62  ;;  %v829_v5 = vadd.f32 %v2771_v48, %v828_v3  ;;  %v919_v6 = vadd.f32 %v2771_v48, %v918_v4 }
 0x144   :  { %v1225_v7 = vmax.f32 %v1007_v1, 0.0  ;;  %v1261_v8 = vmax.f32 %v1097_v2, 0.0 }
 0x145   :  { %v1154_v9 = vmax.f32 %v829_v5, 0.0  ;;  %v1190_v10 = vmax.f32 %v919_v6, 0.0 }
 0x146   :  { %v1369_v11 = vpack.c.bf16 %v1225_v7, %v1225_v7  ;;  %v1405_v12 = vpack.c.bf16 %v1261_v8, %v1261_v8 }
 0x147   :  { %v1298_v13 = vpack.c.bf16 %v1154_v9, %v1154_v9  ;;  %v1334_v14 = vpack.c.bf16 %v1190_v10, %v1190_v10 }
 0x148   :  { %1514 = vst.msk [vmem:[%s3070_s3 + $0x178] sm:$0xf] %vm1419_vm3, %v1369_v11 }
 0x149   :  { %1550 = vst.msk [vmem:[%s3070_s3 + $0x208] sm:$0xf] %vm1419_vm3, %v1405_v12  ;;  %v1008_v15 = vpop.f32.mrf.mxu2  ;;  %v1098_v16 = vpop.f32.mrf.mxu3 }
 0x14a   :  { %1443 = vst.msk [vmem:[%s3070_s3 + $0x5c] sm:$0xf] %vm1419_vm3, %v1298_v13  ;;  %v1009_v17 = vadd.f32 %v2771_v48, %v1008_v15  ;;  %v1099_v18 = vadd.f32 %v2771_v48, %v1098_v16  ;;  %v831_v19 = vpop.f32.mrf.mxu0  ;;  %v921_v20 = vpop.f32.mrf.mxu1 }
 0x14b   :  { %1479 = vst.msk [vmem:[%s3070_s3 + $0xec] sm:$0xf] %vm1419_vm3, %v1334_v14  ;;  %v832_v21 = vadd.f32 %v2771_v48, %v831_v19  ;;  %v922_v22 = vadd.f32 %v2771_v48, %v921_v20 }
 0x14c   :  { %v1226_v23 = vmax.f32 %v1009_v17, 0.0  ;;  %v1262_v24 = vmax.f32 %v1099_v18, 0.0 }
 0x14d   :  { %v1155_v25 = vmax.f32 %v832_v21, 0.0  ;;  %v1191_v26 = vmax.f32 %v922_v22, 0.0 }
 0x14e   :  { %v1370_v27 = vpack.c.bf16 %v1226_v23, %v1226_v23  ;;  %v1406_v28 = vpack.c.bf16 %v1262_v24, %v1262_v24 }
 0x14f   :  { %v1299_v29 = vpack.c.bf16 %v1155_v25, %v1155_v25  ;;  %v1335_v30 = vpack.c.bf16 %v1191_v26, %v1191_v26 }
 0x150   :  { %1515 = vst.msk [vmem:[%s3070_s3 + $0x17c] sm:$0xf] %vm1419_vm3, %v1370_v27 }
 0x151   :  { %1551 = vst.msk [vmem:[%s3070_s3 + $0x20c] sm:$0xf] %vm1419_vm3, %v1406_v28  ;;  %v1011_v31 = vpop.f32.mrf.mxu2  ;;  %v1101_v32 = vpop.f32.mrf.mxu3 }
 0x152   :  { %1444 = vst.msk [vmem:[%s3070_s3 + $0x60] sm:$0xf] %vm1419_vm3, %v1299_v29  ;;  %v1012_v33 = vadd.f32 %v2771_v48, %v1011_v31  ;;  %v1102_v34 = vadd.f32 %v2771_v48, %v1101_v32  ;;  %v833_v35 = vpop.f32.mrf.mxu0  ;;  %v923_v36 = vpop.f32.mrf.mxu1 }
 0x153   :  { %1480 = vst.msk [vmem:[%s3070_s3 + $0xf0] sm:$0xf] %vm1419_vm3, %v1335_v30  ;;  %v834_v37 = vadd.f32 %v2771_v48, %v833_v35  ;;  %v924_v38 = vadd.f32 %v2771_v48, %v923_v36 }
 0x154   :  { %v1227_v39 = vmax.f32 %v1012_v33, 0.0  ;;  %v1263_v41 = vmax.f32 %v1102_v34, 0.0 }
 0x155   :  { %v1156_v42 = vmax.f32 %v834_v37, 0.0  ;;  %v1192_v43 = vmax.f32 %v924_v38, 0.0 }
 0x156   :  { %v1371_v44 = vpack.c.bf16 %v1227_v39, %v1227_v39  ;;  %v1407_v45 = vpack.c.bf16 %v1263_v41, %v1263_v41 }
 0x157   :  { %v1300_v46 = vpack.c.bf16 %v1156_v42, %v1156_v42  ;;  %v1336_v47 = vpack.c.bf16 %v1192_v43, %v1192_v43 }
 0x158   :  { %1516 = vst.msk [vmem:[%s3070_s3 + $0x180] sm:$0xf] %vm1419_vm3, %v1371_v44 }
 0x159   :  { %1552 = vst.msk [vmem:[%s3070_s3 + $0x210] sm:$0xf] %vm1419_vm3, %v1407_v45  ;;  %v1013_v40 = vpop.f32.mrf.mxu2  ;;  %v1103_v49 = vpop.f32.mrf.mxu3 }
 0x15a   :  { %1445 = vst.msk [vmem:[%s3070_s3 + $0x64] sm:$0xf] %vm1419_vm3, %v1300_v46  ;;  %v1014_v50 = vadd.f32 %v2771_v48, %v1013_v40  ;;  %v1104_v51 = vadd.f32 %v2771_v48, %v1103_v49  ;;  %v836_v52 = vpop.f32.mrf.mxu0  ;;  %v926_v53 = vpop.f32.mrf.mxu1 }
 0x15b   :  { %1481 = vst.msk [vmem:[%s3070_s3 + $0xf4] sm:$0xf] %vm1419_vm3, %v1336_v47  ;;  %v837_v54 = vadd.f32 %v2771_v48, %v836_v52  ;;  %v927_v55 = vadd.f32 %v2771_v48, %v926_v53 }
 0x15c   :  { %v1228_v56 = vmax.f32 %v1014_v50, 0.0  ;;  %v1264_v57 = vmax.f32 %v1104_v51, 0.0 }
 0x15d   :  { %v1157_v58 = vmax.f32 %v837_v54, 0.0  ;;  %v1193_v59 = vmax.f32 %v927_v55, 0.0 }
 0x15e   :  { %v1372_v60 = vpack.c.bf16 %v1228_v56, %v1228_v56  ;;  %v1408_v61 = vpack.c.bf16 %v1264_v57, %v1264_v57 }
 0x15f   :  { %v1301_v62 = vpack.c.bf16 %v1157_v58, %v1157_v58  ;;  %v1337_v63 = vpack.c.bf16 %v1193_v59, %v1193_v59 }
 0x160   :  { %1517 = vst.msk [vmem:[%s3070_s3 + $0x184] sm:$0xf] %vm1419_vm3, %v1372_v60 }
 0x161   :  { %1553 = vst.msk [vmem:[%s3070_s3 + $0x214] sm:$0xf] %vm1419_vm3, %v1408_v61  ;;  %v1016_v0 = vpop.f32.mrf.mxu2  ;;  %v1106_v1 = vpop.f32.mrf.mxu3 }
 0x162   :  { %1446 = vst.msk [vmem:[%s3070_s3 + $0x68] sm:$0xf] %vm1419_vm3, %v1301_v62  ;;  %v1017_v2 = vadd.f32 %v2771_v48, %v1016_v0  ;;  %v1107_v3 = vadd.f32 %v2771_v48, %v1106_v1  ;;  %v838_v4 = vpop.f32.mrf.mxu0  ;;  %v928_v5 = vpop.f32.mrf.mxu1 }
 0x163   :  { %1482 = vst.msk [vmem:[%s3070_s3 + $0xf8] sm:$0xf] %vm1419_vm3, %v1337_v63  ;;  %v839_v6 = vadd.f32 %v2771_v48, %v838_v4  ;;  %v929_v7 = vadd.f32 %v2771_v48, %v928_v5 }
 0x164   :  { %v1229_v8 = vmax.f32 %v1017_v2, 0.0  ;;  %v1265_v9 = vmax.f32 %v1107_v3, 0.0 }
 0x165   :  { %v1158_v10 = vmax.f32 %v839_v6, 0.0  ;;  %v1194_v11 = vmax.f32 %v929_v7, 0.0 }
 0x166   :  { %v1373_v12 = vpack.c.bf16 %v1229_v8, %v1229_v8  ;;  %v1409_v13 = vpack.c.bf16 %v1265_v9, %v1265_v9 }
 0x167   :  { %v1302_v14 = vpack.c.bf16 %v1158_v10, %v1158_v10  ;;  %v1338_v15 = vpack.c.bf16 %v1194_v11, %v1194_v11 }
 0x168   :  { %1518 = vst.msk [vmem:[%s3070_s3 + $0x188] sm:$0xf] %vm1419_vm3, %v1373_v12 }
 0x169   :  { %1554 = vst.msk [vmem:[%s3070_s3 + $0x218] sm:$0xf] %vm1419_vm3, %v1409_v13  ;;  %v1018_v16 = vpop.f32.mrf.mxu2  ;;  %v1108_v17 = vpop.f32.mrf.mxu3 }
 0x16a   :  { %1447 = vst.msk [vmem:[%s3070_s3 + $0x6c] sm:$0xf] %vm1419_vm3, %v1302_v14  ;;  %v1019_v18 = vadd.f32 %v2771_v48, %v1018_v16  ;;  %v1109_v19 = vadd.f32 %v2771_v48, %v1108_v17  ;;  %v841_v20 = vpop.f32.mrf.mxu0  ;;  %v931_v21 = vpop.f32.mrf.mxu1 }
 0x16b   :  { %1483 = vst.msk [vmem:[%s3070_s3 + $0xfc] sm:$0xf] %vm1419_vm3, %v1338_v15  ;;  %v842_v22 = vadd.f32 %v2771_v48, %v841_v20  ;;  %v932_v23 = vadd.f32 %v2771_v48, %v931_v21 }
 0x16c   :  { %v1230_v24 = vmax.f32 %v1019_v18, 0.0  ;;  %v1266_v25 = vmax.f32 %v1109_v19, 0.0 }
 0x16d   :  { %v1159_v26 = vmax.f32 %v842_v22, 0.0  ;;  %v1195_v27 = vmax.f32 %v932_v23, 0.0 }
 0x16e   :  { %v1374_v28 = vpack.c.bf16 %v1230_v24, %v1230_v24  ;;  %v1410_v29 = vpack.c.bf16 %v1266_v25, %v1266_v25 }
 0x16f   :  { %v1303_v30 = vpack.c.bf16 %v1159_v26, %v1159_v26  ;;  %v1339_v31 = vpack.c.bf16 %v1195_v27, %v1195_v27 }
 0x170   :  { %1519 = vst.msk [vmem:[%s3070_s3 + $0x18c] sm:$0xf] %vm1419_vm3, %v1374_v28 }
 0x171   :  { %1555 = vst.msk [vmem:[%s3070_s3 + $0x21c] sm:$0xf] %vm1419_vm3, %v1410_v29  ;;  %v1021_v32 = vpop.f32.mrf.mxu2  ;;  %v1111_v33 = vpop.f32.mrf.mxu3 }
 0x172   :  { %1448 = vst.msk [vmem:[%s3070_s3 + $0x70] sm:$0xf] %vm1419_vm3, %v1303_v30  ;;  %v1022_v34 = vadd.f32 %v2771_v48, %v1021_v32  ;;  %v1112_v35 = vadd.f32 %v2771_v48, %v1111_v33  ;;  %v843_v36 = vpop.f32.mrf.mxu0  ;;  %v933_v37 = vpop.f32.mrf.mxu1 }
 0x173   :  { %1484 = vst.msk [vmem:[%s3070_s3 + $0x100] sm:$0xf] %vm1419_vm3, %v1339_v31  ;;  %v844_v38 = vadd.f32 %v2771_v48, %v843_v36  ;;  %v934_v39 = vadd.f32 %v2771_v48, %v933_v37 }
 0x174   :  { %v1231_v41 = vmax.f32 %v1022_v34, 0.0  ;;  %v1267_v42 = vmax.f32 %v1112_v35, 0.0 }
 0x175   :  { %v1160_v43 = vmax.f32 %v844_v38, 0.0  ;;  %v1196_v44 = vmax.f32 %v934_v39, 0.0 }
 0x176   :  { %v1375_v45 = vpack.c.bf16 %v1231_v41, %v1231_v41  ;;  %v1411_v46 = vpack.c.bf16 %v1267_v42, %v1267_v42 }
 0x177   :  { %v1304_v47 = vpack.c.bf16 %v1160_v43, %v1160_v43  ;;  %v1340_v40 = vpack.c.bf16 %v1196_v44, %v1196_v44 }
 0x178   :  { %1520 = vst.msk [vmem:[%s3070_s3 + $0x190] sm:$0xf] %vm1419_vm3, %v1375_v45 }
 0x179   :  { %1556 = vst.msk [vmem:[%s3070_s3 + $0x220] sm:$0xf] %vm1419_vm3, %v1411_v46  ;;  %v1023_v49 = vpop.f32.mrf.mxu2  ;;  %v1113_v50 = vpop.f32.mrf.mxu3 }
 0x17a   :  { %1449 = vst.msk [vmem:[%s3070_s3 + $0x74] sm:$0xf] %vm1419_vm3, %v1304_v47  ;;  %v1024_v51 = vadd.f32 %v2771_v48, %v1023_v49  ;;  %v1114_v52 = vadd.f32 %v2771_v48, %v1113_v50  ;;  %v846_v53 = vpop.f32.mrf.mxu0  ;;  %v936_v54 = vpop.f32.mrf.mxu1 }
 0x17b   :  { %1485 = vst.msk [vmem:[%s3070_s3 + $0x104] sm:$0xf] %vm1419_vm3, %v1340_v40  ;;  %v847_v55 = vadd.f32 %v2771_v48, %v846_v53  ;;  %v937_v56 = vadd.f32 %v2771_v48, %v936_v54 }
 0x17c   :  { %v1232_v57 = vmax.f32 %v1024_v51, 0.0  ;;  %v1268_v58 = vmax.f32 %v1114_v52, 0.0 }
 0x17d   :  { %v1161_v59 = vmax.f32 %v847_v55, 0.0  ;;  %v1197_v60 = vmax.f32 %v937_v56, 0.0 }
 0x17e   :  { %v1376_v61 = vpack.c.bf16 %v1232_v57, %v1232_v57  ;;  %v1412_v62 = vpack.c.bf16 %v1268_v58, %v1268_v58 }
 0x17f   :  { %v1305_v63 = vpack.c.bf16 %v1161_v59, %v1161_v59  ;;  %v1341_v0 = vpack.c.bf16 %v1197_v60, %v1197_v60 }
 0x180   :  { %1521 = vst.msk [vmem:[%s3070_s3 + $0x194] sm:$0xf] %vm1419_vm3, %v1376_v61 }
 0x181   :  { %1557 = vst.msk [vmem:[%s3070_s3 + $0x224] sm:$0xf] %vm1419_vm3, %v1412_v62  ;;  %v1026_v1 = vpop.f32.mrf.mxu2  ;;  %v1116_v2 = vpop.f32.mrf.mxu3 }
 0x182   :  { %1450 = vst.msk [vmem:[%s3070_s3 + $0x78] sm:$0xf] %vm1419_vm3, %v1305_v63  ;;  %v1027_v3 = vadd.f32 %v2771_v48, %v1026_v1  ;;  %v1117_v4 = vadd.f32 %v2771_v48, %v1116_v2  ;;  %v848_v5 = vpop.f32.mrf.mxu0  ;;  %v938_v6 = vpop.f32.mrf.mxu1 }
 0x183   :  { %1486 = vst.msk [vmem:[%s3070_s3 + $0x108] sm:$0xf] %vm1419_vm3, %v1341_v0  ;;  %v849_v7 = vadd.f32 %v2771_v48, %v848_v5  ;;  %v939_v8 = vadd.f32 %v2771_v48, %v938_v6 }
 0x184   :  { %v1233_v9 = vmax.f32 %v1027_v3, 0.0  ;;  %v1269_v10 = vmax.f32 %v1117_v4, 0.0 }
 0x185   :  { %v1162_v11 = vmax.f32 %v849_v7, 0.0  ;;  %v1198_v12 = vmax.f32 %v939_v8, 0.0 }
 0x186   :  { %v1377_v13 = vpack.c.bf16 %v1233_v9, %v1233_v9  ;;  %v1413_v14 = vpack.c.bf16 %v1269_v10, %v1269_v10 }
 0x187   :  { %v1306_v15 = vpack.c.bf16 %v1162_v11, %v1162_v11  ;;  %v1342_v16 = vpack.c.bf16 %v1198_v12, %v1198_v12 }
 0x188   :  { %1522 = vst.msk [vmem:[%s3070_s3 + $0x198] sm:$0xf] %vm1419_vm3, %v1377_v13 }
 0x189   :  { %1558 = vst.msk [vmem:[%s3070_s3 + $0x228] sm:$0xf] %vm1419_vm3, %v1413_v14  ;;  %v1028_v17 = vpop.f32.mrf.mxu2  ;;  %v1118_v18 = vpop.f32.mrf.mxu3 }
 0x18a   :  { %1451 = vst.msk [vmem:[%s3070_s3 + $0x7c] sm:$0xf] %vm1419_vm3, %v1306_v15  ;;  %v1029_v19 = vadd.f32 %v2771_v48, %v1028_v17  ;;  %v1119_v20 = vadd.f32 %v2771_v48, %v1118_v18  ;;  %v851_v21 = vpop.f32.mrf.mxu0  ;;  %v941_v22 = vpop.f32.mrf.mxu1 }
 0x18b   :  { %1487 = vst.msk [vmem:[%s3070_s3 + $0x10c] sm:$0xf] %vm1419_vm3, %v1342_v16  ;;  %v852_v23 = vadd.f32 %v2771_v48, %v851_v21  ;;  %v942_v24 = vadd.f32 %v2771_v48, %v941_v22 }
 0x18c   :  { %v1234_v25 = vmax.f32 %v1029_v19, 0.0  ;;  %v1270_v26 = vmax.f32 %v1119_v20, 0.0 }
 0x18d   :  { %v1163_v27 = vmax.f32 %v852_v23, 0.0  ;;  %v1199_v28 = vmax.f32 %v942_v24, 0.0 }
 0x18e   :  { %v1378_v29 = vpack.c.bf16 %v1234_v25, %v1234_v25  ;;  %v1414_v30 = vpack.c.bf16 %v1270_v26, %v1270_v26 }
 0x18f   :  { %v1307_v31 = vpack.c.bf16 %v1163_v27, %v1163_v27  ;;  %v1343_v32 = vpack.c.bf16 %v1199_v28, %v1199_v28 }
 0x190   :  { %1523 = vst.msk [vmem:[%s3070_s3 + $0x19c] sm:$0xf] %vm1419_vm3, %v1378_v29 }
 0x191   :  { %1559 = vst.msk [vmem:[%s3070_s3 + $0x22c] sm:$0xf] %vm1419_vm3, %v1414_v30  ;;  %v1031_v33 = vpop.f32.mrf.mxu2  ;;  %v1121_v34 = vpop.f32.mrf.mxu3 }
 0x192   :  { %1452 = vst.msk [vmem:[%s3070_s3 + $0x80] sm:$0xf] %vm1419_vm3, %v1307_v31  ;;  %v1032_v35 = vadd.f32 %v2771_v48, %v1031_v33  ;;  %v1122_v36 = vadd.f32 %v2771_v48, %v1121_v34  ;;  %v853_v37 = vpop.f32.mrf.mxu0  ;;  %v943_v38 = vpop.f32.mrf.mxu1 }
 0x193   :  { %1488 = vst.msk [vmem:[%s3070_s3 + $0x110] sm:$0xf] %vm1419_vm3, %v1343_v32  ;;  %v854_v39 = vadd.f32 %v2771_v48, %v853_v37  ;;  %v944_v41 = vadd.f32 %v2771_v48, %v943_v38 }
 0x194   :  { %v1235_v42 = vmax.f32 %v1032_v35, 0.0  ;;  %v1271_v43 = vmax.f32 %v1122_v36, 0.0 }
 0x195   :  { %v1164_v44 = vmax.f32 %v854_v39, 0.0  ;;  %v1200_v45 = vmax.f32 %v944_v41, 0.0 }
 0x196   :  { %v1379_v46 = vpack.c.bf16 %v1235_v42, %v1235_v42  ;;  %v1415_v47 = vpack.c.bf16 %v1271_v43, %v1271_v43 }
 0x197   :  { %v1308_v40 = vpack.c.bf16 %v1164_v44, %v1164_v44  ;;  %v1344_v49 = vpack.c.bf16 %v1200_v45, %v1200_v45 }
 0x198   :  { %1524 = vst.msk [vmem:[%s3070_s3 + $0x1a0] sm:$0xf] %vm1419_vm3, %v1379_v46 }
 0x199   :  { %1560 = vst.msk [vmem:[%s3070_s3 + $0x230] sm:$0xf] %vm1419_vm3, %v1415_v47  ;;  %v1033_v50 = vpop.f32.mrf.mxu2  ;;  %v1123_v51 = vpop.f32.mrf.mxu3 }
 0x19a   :  { %1453 = vst.msk [vmem:[%s3070_s3 + $0x84] sm:$0xf] %vm1419_vm3, %v1308_v40  ;;  %v1034_v52 = vadd.f32 %v2771_v48, %v1033_v50  ;;  %v1124_v53 = vadd.f32 %v2771_v48, %v1123_v51  ;;  %v856_v54 = vpop.f32.mrf.mxu0  ;;  %v946_v55 = vpop.f32.mrf.mxu1 }
 0x19b   :  { %1489 = vst.msk [vmem:[%s3070_s3 + $0x114] sm:$0xf] %vm1419_vm3, %v1344_v49  ;;  %v857_v56 = vadd.f32 %v2771_v48, %v856_v54  ;;  %v947_v57 = vadd.f32 %v2771_v48, %v946_v55 }
 0x19c   :  { %v1236_v58 = vmax.f32 %v1034_v52, 0.0  ;;  %v1272_v59 = vmax.f32 %v1124_v53, 0.0 }
 0x19d   :  { %v1165_v60 = vmax.f32 %v857_v56, 0.0  ;;  %v1201_v61 = vmax.f32 %v947_v57, 0.0 }
 0x19e   :  { %v1380_v62 = vpack.c.bf16 %v1236_v58, %v1236_v58  ;;  %v1416_v63 = vpack.c.bf16 %v1272_v59, %v1272_v59 }
 0x19f   :  { %v1309_v0 = vpack.c.bf16 %v1165_v60, %v1165_v60  ;;  %v1345_v1 = vpack.c.bf16 %v1201_v61, %v1201_v61 }
 0x1a0   :  { %1525 = vst.msk [vmem:[%s3070_s3 + $0x1a4] sm:$0xf] %vm1419_vm3, %v1380_v62 }
 0x1a1   :  { %1561 = vst.msk [vmem:[%s3070_s3 + $0x234] sm:$0xf] %vm1419_vm3, %v1416_v63  ;;  %v1036_v2 = vpop.f32.mrf.mxu2  ;;  %v1126_v3 = vpop.f32.mrf.mxu3 }
 0x1a2   :  { %1454 = vst.msk [vmem:[%s3070_s3 + $0x88] sm:$0xf] %vm1419_vm3, %v1309_v0  ;;  %v1037_v4 = vadd.f32 %v2771_v48, %v1036_v2  ;;  %v1127_v5 = vadd.f32 %v2771_v48, %v1126_v3  ;;  %v858_v6 = vpop.f32.mrf.mxu0  ;;  %v948_v7 = vpop.f32.mrf.mxu1 }
 0x1a3   :  { %1490 = vst.msk [vmem:[%s3070_s3 + $0x118] sm:$0xf] %vm1419_vm3, %v1345_v1  ;;  %v859_v8 = vadd.f32 %v2771_v48, %v858_v6  ;;  %v949_v9 = vadd.f32 %v2771_v48, %v948_v7 }
 0x1a4   :  { %v1237_v10 = vmax.f32 %v1037_v4, 0.0  ;;  %v1273_v11 = vmax.f32 %v1127_v5, 0.0 }
 0x1a5   :  { %v1166_v12 = vmax.f32 %v859_v8, 0.0  ;;  %v1202_v13 = vmax.f32 %v949_v9, 0.0 }
 0x1a6   :  { %v1381_v14 = vpack.c.bf16 %v1237_v10, %v1237_v10  ;;  %v1417_v15 = vpack.c.bf16 %v1273_v11, %v1273_v11 }
 0x1a7   :  { %v1310_v16 = vpack.c.bf16 %v1166_v12, %v1166_v12  ;;  %v1346_v17 = vpack.c.bf16 %v1202_v13, %v1202_v13 }
 0x1a8   :  { %1526 = vst.msk [vmem:[%s3070_s3 + $0x1a8] sm:$0xf] %vm1419_vm3, %v1381_v14 }
 0x1a9   :  { %1562 = vst.msk [vmem:[%s3070_s3 + $0x238] sm:$0xf] %vm1419_vm3, %v1417_v15  ;;  %v1038_v18 = vpop.f32.mrf.mxu2  ;;  %v1128_v19 = vpop.f32.mrf.mxu3 }
 0x1aa   :  { %1455 = vst.msk [vmem:[%s3070_s3 + $0x8c] sm:$0xf] %vm1419_vm3, %v1310_v16  ;;  %v1039_v20 = vadd.f32 %v2771_v48, %v1038_v18  ;;  %v1129_v21 = vadd.f32 %v2771_v48, %v1128_v19 }
 0x1ab   :  { %1491 = vst.msk [vmem:[%s3070_s3 + $0x11c] sm:$0xf] %vm1419_vm3, %v1346_v17 }
 0x1ac   :  { %v1238_v22 = vmax.f32 %v1039_v20, 0.0  ;;  %v1274_v23 = vmax.f32 %v1129_v21, 0.0 }
 0x1ae   :  { %v1382_v24 = vpack.c.bf16 %v1238_v22, %v1238_v22  ;;  %v1418_v25 = vpack.c.bf16 %v1274_v23, %v1274_v23 }
 0x1b0   :  { %1527 = vst.msk [vmem:[%s3070_s3 + $0x1ac] sm:$0xf] %vm1419_vm3, %v1382_v24 }
 0x1b1   :  { %1563 = vst.msk [vmem:[%s3070_s3 + $0x23c] sm:$0xf] %vm1419_vm3, %v1418_v25 }

// kernel: convnet_forward.8
= control target key start
LH: loop header
LB: loop body
LE: loop exit
PB: predicated region body
PF: predicated region fallthrough
CT: control target
= control target key end

     0   :  { %vm149_vm0 = vcmask 1041408   ;;  %vm153_vm1 = vcmask 1045508   ;;  %vm157_vm2 = vcmask 1043456   ;;  %s233_s0 = inlined_call_operand.vmem [shape: bf16[2,4,512], index: 0, kind: input, shape index: {}]   ;;  %s234_s1 = inlined_call_operand.vmem [shape: bf16[2,4,512], index: 1, kind: input, shape index: {}]   ;;  %s235_s2 = inlined_call_operand.vmem [shape: bf16[2,4,512], index: 2, kind: input, shape index: {}]   ;;  %s236_s3 = inlined_call_operand.vmem [shape: bf16[2,4,512], index: 3, kind: input, shape index: {}]   ;;  %s237_s4 = inlined_call_operand.vmem [shape: bf16[2,4,512], index: 4, kind: output, shape index: {}]  }
   0x1   :  { %v17_v0 = vld [vmem:[%s233_s0] sm:$0xff]  ;;  %v18_v2 = vld [vmem:[%s233_s0 + $0x8] sm:$0xff] }
   0x2   :  { %v19_v1 = vld [vmem:[%s234_s1] sm:$0xff]  ;;  %v21_v3 = vunpack.c.l.bf16 %v17_v0  ;;  %v22_v5 = vunpack.c.h.bf16 %v17_v0  ;;  %v20_v7 = vld [vmem:[%s234_s1 + $0x8] sm:$0xff]  ;;  %v23_v8 = vunpack.c.l.bf16 %v18_v2  ;;  %v24_v10 = vunpack.c.h.bf16 %v18_v2 }
   0x3   :  { %v25_v4 = vunpack.c.l.bf16 %v19_v1  ;;  %v26_v6 = vunpack.c.h.bf16 %v19_v1  ;;  %v27_v9 = vunpack.c.l.bf16 %v20_v7  ;;  %v28_v11 = vunpack.c.h.bf16 %v20_v7  ;;  %v64_v12 = vld [vmem:[%s235_s2] sm:$0xff]  ;;  %v65_v20 = vld [vmem:[%s235_s2 + $0x8] sm:$0xff] }
   0x4   :  { %v66_v13 = vld [vmem:[%s236_s3] sm:$0xff]  ;;  %v68_v18 = vunpack.c.l.bf16 %v64_v12  ;;  %v67_v21 = vld [vmem:[%s236_s3 + $0x8] sm:$0xff]  ;;  %v69_v22 = vunpack.c.h.bf16 %v64_v12  ;;  %v70_v24 = vunpack.c.l.bf16 %v65_v20  ;;  %v71_v27 = vunpack.c.h.bf16 %v65_v20 }
   0x5   :  { %v29_v14 = vmax.f32 %v21_v3, %v25_v4  ;;  %v30_v15 = vmax.f32 %v22_v5, %v26_v6  ;;  %v31_v16 = vmax.f32 %v23_v8, %v27_v9  ;;  %v32_v17 = vmax.f32 %v24_v10, %v28_v11 }
   0x6   :  { %v72_v19 = vunpack.c.l.bf16 %v66_v13  ;;  %v73_v23 = vunpack.c.h.bf16 %v66_v13  ;;  %v74_v25 = vunpack.c.l.bf16 %v67_v21  ;;  %v75_v28 = vunpack.c.h.bf16 %v67_v21 }
   0x7   :  { %37 = vst [vmem:[#allocation1] ss:$2 sm:$0xff] %v29_v14 }
   0x8   :  { %39 = vst [vmem:[#allocation1 + $0x10] ss:$2 sm:$0xff] %v30_v15  ;;  %v76_v26 = vmax.f32 %v68_v18, %v72_v19  ;;  %v77_v29 = vmax.f32 %v69_v22, %v73_v23  ;;  %v78_v32 = vmax.f32 %v70_v24, %v74_v25  ;;  %v79_v36 = vmax.f32 %v71_v27, %v75_v28 }
   0x9   :  { %45 = vst [vmem:[#allocation1 + $0x20] ss:$2 sm:$0xff] %v31_v16 }
   0xa   :  { %47 = vst [vmem:[#allocation1 + $0x30] ss:$2 sm:$0xff] %v32_v17 }
   0xe   :  { %v40_v30 = vld.sshfl [vmem:[#allocation1] sm:$0xff pattern:$0x75316420]  ;;  %v41_v31 = vld.sshfl [vmem:[#allocation1 + $0x8] sm:$0xff pattern:$0x75316420] }
   0xf   :  { %84 = vst [vmem:[#allocation1] ss:$2 sm:$0xff] %v76_v26  ;;  %v42_v33 = vld.sshfl [vmem:[#allocation1 + $0x10] sm:$0xff pattern:$0x75316420] }
  0x10   :  { %v43_v34 = vld.sshfl [vmem:[#allocation1 + $0x18] sm:$0xff pattern:$0x75316420]  ;;  %v48_v35 = vld.sshfl [vmem:[#allocation1 + $0x20] sm:$0xff pattern:$0x75316420] }
  0x11   :  { %86 = vst [vmem:[#allocation1 + $0x10] ss:$2 sm:$0xff] %v77_v29  ;;  %v49_v37 = vld.sshfl [vmem:[#allocation1 + $0x28] sm:$0xff pattern:$0x75316420] }
  0x12   :  { %92 = vst [vmem:[#allocation1 + $0x20] ss:$2 sm:$0xff] %v78_v32  ;;  %v50_v38 = vld.sshfl [vmem:[#allocation1 + $0x30] sm:$0xff pattern:$0x75316420] }
  0x13   :  { %v51_v39 = vld.sshfl [vmem:[#allocation1 + $0x38] sm:$0xff pattern:$0x75316420] }
  0x14   :  { %94 = vst [vmem:[#allocation1 + $0x30] ss:$2 sm:$0xff] %v79_v36 }
  0x16   :  { %v87_v40 = vld.sshfl [vmem:[#allocation1] sm:$0xff pattern:$0x75316420]  ;;  %v88_v41 = vld.sshfl [vmem:[#allocation1 + $0x8] sm:$0xff pattern:$0x75316420] }
  0x17   :  { %v127_v42 = vmax.f32 %v40_v30, %v87_v40  ;;  %v128_v43 = vmax.f32 %v41_v31, %v88_v41 }
  0x18   :  { %v89_v44 = vld.sshfl [vmem:[#allocation1 + $0x10] sm:$0xff pattern:$0x75316420]  ;;  %v90_v45 = vld.sshfl [vmem:[#allocation1 + $0x18] sm:$0xff pattern:$0x75316420] }
  0x19   :  { %v135_v46 = vpack.c.bf16 %v128_v43, %v127_v42  ;;  %v129_v47 = vmax.f32 %v42_v33, %v89_v44  ;;  %v130_v48 = vmax.f32 %v43_v34, %v90_v45  ;;  %v95_v49 = vld.sshfl [vmem:[#allocation1 + $0x20] sm:$0xff pattern:$0x75316420]  ;;  %v96_v50 = vld.sshfl [vmem:[#allocation1 + $0x28] sm:$0xff pattern:$0x75316420] }
  0x1a   :  { %v131_v51 = vmax.f32 %v48_v35, %v95_v49  ;;  %v132_v52 = vmax.f32 %v49_v37, %v96_v50 }
  0x1b   :  { %v136_v53 = vpack.c.bf16 %v130_v48, %v129_v47  ;;  %v97_v54 = vld.sshfl [vmem:[#allocation1 + $0x30] sm:$0xff pattern:$0x75316420]  ;;  %v98_v55 = vld.sshfl [vmem:[#allocation1 + $0x38] sm:$0xff pattern:$0x75316420] }
  0x1c   :  { %v137_v56 = vpack.c.bf16 %v132_v52, %v131_v51  ;;  %v133_v57 = vmax.f32 %v50_v38, %v97_v54  ;;  %v134_v58 = vmax.f32 %v51_v39, %v98_v55  ;;  %v143_v59 = vrot.slane %v135_v46, 2 }
  0x1d   :  { %v144_v60 = vrot.slane %v136_v53, 4  ;;  %v145_v61 = vrot.slane %v136_v53, 6 }
  0x1e   :  { %v138_v62 = vpack.c.bf16 %v134_v58, %v133_v57  ;;  %v152_v63 = vsel %vm149_vm0, %v135_v46, %v143_v59  ;;  %v146_v0 = vrot.slane %v137_v56, 2 }
  0x1f   :  { %v156_v1 = vsel %vm153_vm1, %v144_v60, %v145_v61 }
  0x20   :  { %v158_v2 = vsel %vm157_vm2, %v152_v63, %v156_v1  ;;  %v147_v3 = vrot.slane %v138_v62, 4  ;;  %v148_v4 = vrot.slane %v138_v62, 6  ;;  %v161_v5 = vsel %vm149_vm0, %v137_v56, %v146_v0 }
  0x21   :  { %168 = vst [vmem:[%s237_s4] sm:$0xff] %v158_v2 }
  0x22   :  { %v164_v6 = vsel %vm153_vm1, %v147_v3, %v148_v4 }
  0x23   :  { %v165_v7 = vsel %vm157_vm2, %v161_v5, %v164_v6 }
  0x24   :  { %169 = vst [vmem:[%s237_s4 + $0x8] sm:$0xff] %v165_v7 }

// kernel: convnet_forward.7
= control target key start
LH: loop header
LB: loop body
LE: loop exit
PB: predicated region body
PF: predicated region fallthrough
CT: control target
= control target key end

     0   :  { %vm425_vm0 = vcmask 523264   ;;  %s5343_s1 = inlined_call_operand.vmem [shape: bf16[5,320,128], index: 1, kind: input, shape index: {}]   ;;  %s5344_s0 = inlined_call_operand.vmem [shape: bf16[2,12,8,320], index: 0, kind: input, shape index: {}]   ;;  %s5345_s2 = inlined_call_operand.vmem [shape: f32[1,128], index: 2, kind: input, shape index: {}]   ;;  %s5346_s3 = inlined_call_operand.vmem [shape: bf16[128,128], index: 3, kind: output, shape index: {}]  }
   0x1   :  { %v3602_v0 = vld [vmem:[%s5343_s1 + $0xd8] sm:$0xff]  ;;  %v3601_v3 = vld [vmem:[%s5343_s1 + $0xd0] sm:$0xff]  ;;  %v3600_v6 = vld [vmem:[%s5343_s1 + $0xc8] sm:$0xff] }
   0x2   :  { %v3841_v1 = vld [vmem:[%s5343_s1 + $0x118] sm:$0xff]  ;;  %450 = vmatpush.bf16.msra.mxu0 %v3602_v0  ;;  %3794 = vmatpush.bf16.msra.mxu3 %v3602_v0  ;;  %v3853_v4 = vld [vmem:[%s5343_s1 + $0x110] sm:$0xff]  ;;  %v3865_v7 = vld [vmem:[%s5343_s1 + $0x108] sm:$0xff] }
   0x3   :  { %v3614_v2 = vld [vmem:[%s5343_s1 + $0x138] sm:$0xff]  ;;  %499 = vmatpush.bf16.msra.mxu1 %v3841_v1  ;;  %v3613_v5 = vld [vmem:[%s5343_s1 + $0x130] sm:$0xff]  ;;  %v3612_v8 = vld [vmem:[%s5343_s1 + $0x128] sm:$0xff] }
   0x4   :  { %552 = vmatpush.bf16.msra.mxu2 %v3614_v2  ;;  %v3599_v9 = vld [vmem:[%s5343_s1 + $0xc0] sm:$0xff]  ;;  %v2457_v12 = vld [vmem:[%s5344_s0 + $0x14] sm:$0xf]  ;;  %v3566_v14 = vld [vmem:[%s5343_s1 + $0x78] sm:$0xff] }
   0x5   :  { %v3876_v10 = vld [vmem:[%s5343_s1 + $0x100] sm:$0xff]  ;;  %v3598_v16 = vld [vmem:[%s5343_s1 + $0xb8] sm:$0xff]  ;;  %v3565_v18 = vld [vmem:[%s5343_s1 + $0x70] sm:$0xff] }
   0x6   :  { %451 = vmatpush.bf16.msra.mxu0 %v3601_v3  ;;  %3795 = vmatpush.bf16.msra.mxu3 %v3601_v3  ;;  %v3611_v11 = vld [vmem:[%s5343_s1 + $0x120] sm:$0xff]  ;;  %v3898_v17 = vld [vmem:[%s5343_s1 + $0xf8] sm:$0xff]  ;;  %v3597_v19 = vld [vmem:[%s5343_s1 + $0xb0] sm:$0xff] }
   0x7   :  { %500 = vmatpush.bf16.msra.mxu1 %v3853_v4  ;;  %v3573_v13 = vld [vmem:[%s5344_s0 + $0x1c] sm:$0xf0]  ;;  %v3911_v20 = vld [vmem:[%s5343_s1 + $0xf0] sm:$0xff]  ;;  %v3564_v21 = vld [vmem:[%s5343_s1 + $0x68] sm:$0xff] }
   0x8   :  { %553 = vmatpush.bf16.msra.mxu2 %v3613_v5  ;;  %v2458_v15 = vor.u32 %v3573_v13, %v2457_v12  ;;  %v3596_v22 = vld [vmem:[%s5343_s1 + $0xa8] sm:$0xff]  ;;  %v3595_v24 = vld [vmem:[%s5343_s1 + $0xa0] sm:$0xff]  ;;  %v3572_v27 = vld [vmem:[%s5344_s0 + $0x14] sm:$0xf0] }
   0x9   :  { %v3923_v23 = vld [vmem:[%s5343_s1 + $0xe8] sm:$0xff]  ;;  %v3931_v25 = vld [vmem:[%s5343_s1 + $0xe0] sm:$0xff]  ;;  %v3590_v29 = vld [vmem:[%s5344_s0 + $0xd4] sm:$0xf0] }
   0xa   :  { %452 = vmatpush.bf16.msra.mxu0 %v3600_v6  ;;  %3796 = vmatpush.bf16.msra.mxu3 %v3600_v6  ;;  %v2449_v26 = vld [vmem:[%s5344_s0 + $0xc] sm:$0xf]  ;;  %v3571_v30 = vld [vmem:[%s5344_s0 + $0x10] sm:$0xf]  ;;  %v2451_v31 = vld [vmem:[%s5344_s0 + $0x18] sm:$0xf0] }
   0xb   :  { %501 = vmatpush.bf16.msra.mxu1 %v3865_v7  ;;  %v2521_v28 = vld [vmem:[%s5344_s0 + $0xcc] sm:$0xf]  ;;  %v3576_v33 = vld [vmem:[%s5344_s0 + $0x34] sm:$0xf0]  ;;  %v2450_v35 = vor.u32 %v3572_v27, %v2449_v26  ;;  %v2454_v38 = vor.u32 %v3571_v30, %v2451_v31  ;;  %v3569_v40 = vld [vmem:[%s5343_s1 + $0x90] sm:$0xff] }
   0xc   :  { %554 = vmatpush.bf16.msra.mxu2 %v3612_v8  ;;  %v2469_v32 = vld [vmem:[%s5344_s0 + $0x2c] sm:$0xf]  ;;  %v3570_v34 = vld [vmem:[%s5343_s1 + $0x98] sm:$0xff]  ;;  %v2522_v37 = vor.u32 %v3590_v29, %v2521_v28  ;;  %v3645_v41 = vld [vmem:[%s5343_s1 + $0x170] sm:$0xff] }
   0xd   :  { %v3646_v36 = vld [vmem:[%s5343_s1 + $0x178] sm:$0xff]  ;;  %v2470_v39 = vor.u32 %v3576_v33, %v2469_v32  ;;  %v3563_v42 = vld [vmem:[%s5343_s1 + $0x60] sm:$0xff]  ;;  %v3644_v43 = vld [vmem:[%s5343_s1 + $0x168] sm:$0xff] }
   0xe   :  { %453 = vmatpush.bf16.msra.mxu0 %v3599_v9  ;;  %3797 = vmatpush.bf16.msra.mxu3 %v3599_v9  ;;  %v3643_v44 = vld [vmem:[%s5343_s1 + $0x160] sm:$0xff]  ;;  %v3575_v46 = vld [vmem:[%s5344_s0 + $0x2c] sm:$0xf0]  ;;  %v3574_v49 = vld [vmem:[%s5344_s0 + $0x28] sm:$0xf] }
   0xf   :  { %502 = vmatpush.bf16.msra.mxu1 %v3876_v10  ;;  %v2461_v45 = vld [vmem:[%s5344_s0 + $0x24] sm:$0xf]  ;;  %v3593_v48 = vld [vmem:[%s5344_s0 + $0xec] sm:$0xf0]  ;;  %v2463_v50 = vld [vmem:[%s5344_s0 + $0x30] sm:$0xf0] }
  0x10   :  { %555 = vmatpush.bf16.msra.mxu2 %v3611_v11  ;;  %v2533_v47 = vld [vmem:[%s5344_s0 + $0xe4] sm:$0xf]  ;;  %v3579_v52 = vld [vmem:[%s5344_s0 + $0x4c] sm:$0xf0]  ;;  %v2462_v53 = vor.u32 %v3575_v46, %v2461_v45  ;;  %v2466_v55 = vor.u32 %v3574_v49, %v2463_v50  ;;  %v3562_v57 = vld [vmem:[%s5343_s1 + $0x58] sm:$0xff] }
  0x11   :  { %v2481_v51 = vld [vmem:[%s5344_s0 + $0x44] sm:$0xf]  ;;  %v2534_v54 = vor.u32 %v3593_v48, %v2533_v47  ;;  %v3568_v58 = vld [vmem:[%s5343_s1 + $0x88] sm:$0xff]  ;;  %v3642_v59 = vld [vmem:[%s5343_s1 + $0x158] sm:$0xff] }
  0x12   :  { %454 = vmatpush.bf16.msra.mxu0 %v3598_v16  ;;  %3798 = vmatpush.bf16.msra.mxu3 %v3598_v16  ;;  %v2482_v56 = vor.u32 %v3579_v52, %v2481_v51  ;;  %v3558_v60 = vld [vmem:[%s5343_s1 + $0x38] sm:$0xff]  ;;  %v3578_v62 = vld [vmem:[%s5344_s0 + $0x44] sm:$0xf0]  ;;  %v3577_v63 = vld [vmem:[%s5344_s0 + $0x40] sm:$0xf] }
  0x13   :  { %2663 = vmatmul.msk.bf16.vlgmr.msra.gmra.mxu2 %vm425_vm0, %v2458_v15  ;;  %503 = vmatpush.bf16.msra.mxu1 %v3898_v17  ;;  %v2473_v61 = vld [vmem:[%s5344_s0 + $0x3c] sm:$0xf]  ;;  %v2475_v0 = vld [vmem:[%s5344_s0 + $0x48] sm:$0xf0]  ;;  %v3557_v6 = vld [vmem:[%s5343_s1 + $0x30] sm:$0xff] }
  0x14   :  { %790 = vmatpush.bf16.msrb.mxu2 %v3566_v14  ;;  %v2523_v2 = vld [vmem:[%s5344_s0 + $0xd8] sm:$0xf0]  ;;  %v2474_v5 = vor.u32 %v3578_v62, %v2473_v61  ;;  %v3561_v11 = vld [vmem:[%s5343_s1 + $0x50] sm:$0xff]  ;;  %v3567_v13 = vld [vmem:[%s5343_s1 + $0x80] sm:$0xff] }
  0x15   :  { %v2493_v3 = vld [vmem:[%s5344_s0 + $0x5c] sm:$0xf]  ;;  %v3641_v12 = vld [vmem:[%s5343_s1 + $0x150] sm:$0xff]  ;;  %v3555_v14 = vld [vmem:[%s5343_s1 + $0x20] sm:$0xff] }
  0x16   :  { %455 = vmatpush.bf16.msra.mxu0 %v3597_v19  ;;  %3799 = vmatpush.bf16.msra.mxu3 %v3597_v19  ;;  %v3554_v15 = vld [vmem:[%s5343_s1 + $0x18] sm:$0xff]  ;;  %v2485_v16 = vld [vmem:[%s5344_s0 + $0x54] sm:$0xf]  ;;  %v2487_v19 = vld [vmem:[%s5344_s0 + $0x60] sm:$0xf0] }
  0x17   :  { %504 = vmatpush.bf16.msra.mxu1 %v3911_v20  ;;  %v3552_v29 = vld [vmem:[%s5343_s1 + $0x8] sm:$0xff]  ;;  %v3551_v32 = vld [vmem:[%s5343_s1] sm:$0xff]  ;;  %v3654_v33 = vld [vmem:[%s5343_s1 + $0x1b8] sm:$0xff] }
  0x18   :  { %791 = vmatpush.bf16.msrb.mxu2 %v3565_v18  ;;  %v3580_v18 = vld [vmem:[%s5344_s0 + $0x58] sm:$0xf]  ;;  %v3560_v30 = vld [vmem:[%s5343_s1 + $0x48] sm:$0xff]  ;;  %v3559_v47 = vld [vmem:[%s5343_s1 + $0x40] sm:$0xff] }
  0x19   :  { %v2490_v26 = vor.u32 %v3580_v18, %v2487_v19  ;;  %v3640_v31 = vld [vmem:[%s5343_s1 + $0x148] sm:$0xff]  ;;  %v3653_v48 = vld [vmem:[%s5343_s1 + $0x1b0] sm:$0xff]  ;;  %v3690_v49 = vld [vmem:[%s5343_s1 + $0x218] sm:$0xff] }
  0x1a   :  { %456 = vmatpush.bf16.msra.mxu0 %v3596_v22  ;;  %3800 = vmatpush.bf16.msra.mxu3 %v3596_v22  ;;  %v2505_v22 = vld [vmem:[%s5344_s0 + $0xa4] sm:$0xf]  ;;  %v3698_v50 = vld [vmem:[%s5343_s1 + $0x258] sm:$0xff]  ;;  %v2509_v51 = vld [vmem:[%s5344_s0 + $0xb4] sm:$0xf] }
  0x1b   :  { %505 = vmatpush.bf16.msra.mxu1 %v3923_v23  ;;  %v3587_v52 = vld [vmem:[%s5344_s0 + $0xbc] sm:$0xf0]  ;;  %v2357_v18 = vld [vmem:[%s5344_s0 + $0x48] sm:$0xf] }
  0x1c   :  { %792 = vmatpush.bf16.msrb.mxu2 %v3564_v21  ;;  %v2535_v21 = vld [vmem:[%s5344_s0 + $0xf0] sm:$0xf0]  ;;  %v2341_v19 = vld [vmem:[%s5344_s0 + $0x20] sm:$0xf] }
  0x1e   :  { %457 = vmatpush.bf16.msra.mxu0 %v3595_v24  ;;  %3801 = vmatpush.bf16.msra.mxu3 %v3595_v24 }
  0x1f   :  { %506 = vmatpush.bf16.msra.mxu1 %v3931_v25 }
  0x20   :  { %793 = vmatpush.bf16.msrb.mxu2 %v3563_v42  ;;  %v3588_v42 = vld [vmem:[%s5344_s0 + $0xc4] sm:$0xf0] }
  0x21   :  { %458 = vmatmul.bf16.vlgmr.msra.gmra.mxu0 %v2450_v35  ;;  %488 = vmatmul.bf16.vlgmr.msra.gmra.mxu3 %v2522_v37  ;;  %v2497_v35 = vld [vmem:[%s5344_s0 + $0x9c] sm:$0xf]  ;;  %v3583_v37 = vld [vmem:[%s5344_s0 + $0xa0] sm:$0xf] }
  0x22   :  { %3802 = vmatpush.bf16.msrb.mxu3 %v3841_v1  ;;  %843 = vmatpush.bf16.msrb.mxu0 %v3570_v34  ;;  %v3589_v1 = vld [vmem:[%s5344_s0 + $0xd0] sm:$0xf]  ;;  %v3639_v34 = vld [vmem:[%s5343_s1 + $0x140] sm:$0xff] }
  0x23   :  { %1178 = vmatpush.bf16.msrb.mxu1 %v3646_v36  ;;  %2664 = vmatmul.msk.bf16.gmra.mxu2 %vm425_vm0, %v2470_v39  ;;  %v2526_v8 = vor.u32 %v3589_v1, %v2523_v2  ;;  %v3584_v36 = vld [vmem:[%s5344_s0 + $0xa4] sm:$0xf0]  ;;  %v2321_v39 = vld [vmem:[%s5344_s0] sm:$0xf]  ;;  %v3689_v1 = vld [vmem:[%s5343_s1 + $0x210] sm:$0xff] }
  0x24   :  { %507 = vmatmul.bf16.vlgmr.msra.gmra.mxu1 %v2454_v38  ;;  %794 = vmatpush.bf16.msrb.mxu2 %v3562_v57  ;;  %v2499_v38 = vld [vmem:[%s5344_s0 + $0xa8] sm:$0xf0]  ;;  %v2529_v57 = vld [vmem:[%s5344_s0 + $0xd4] sm:$0xf] }
  0x25   :  { %v3697_v2 = vld [vmem:[%s5343_s1 + $0x250] sm:$0xff] }
  0x26   :  { %3803 = vmatpush.bf16.msrb.mxu3 %v3853_v4  ;;  %844 = vmatpush.bf16.msrb.mxu0 %v3569_v40  ;;  %v3582_v4 = vld [vmem:[%s5344_s0 + $0x64] sm:$0xf0]  ;;  %v3528_v40 = vld [vmem:[%s5344_s0 + $0x8] sm:$0xf0] }
  0x27   :  { %1179 = vmatpush.bf16.msrb.mxu1 %v3645_v41  ;;  %v2494_v9 = vor.u32 %v3582_v4, %v2493_v3  ;;  %v2517_v41 = vld [vmem:[%s5344_s0 + $0xbc] sm:$0xf]  ;;  %v2322_v45 = vor.u32 %v3528_v40, %v2321_v39  ;;  %v2345_v3 = vld [vmem:[%s5344_s0 + $0x30] sm:$0xf]  ;;  %v2329_v4 = vld [vmem:[%s5344_s0 + $0x8] sm:$0xf] }
  0x28   :  { %795 = vmatpush.bf16.msrb.mxu2 %v3561_v11  ;;  %v2518_v46 = vor.u32 %v3588_v42, %v2517_v41  ;;  %v2817_v39 = vld [vmem:[%s5344_s0 + $0x48] sm:$0xf]  ;;  %v3622_v40 = vld [vmem:[%s5344_s0 + $0x50] sm:$0xf0]  ;;  %v3530_v41 = vld [vmem:[%s5344_s0 + $0x1c] sm:$0xf] }
  0x29   :  { %v2335_v42 = vld [vmem:[%s5344_s0 + $0x24] sm:$0xf0] }
  0x2a   :  { %3804 = vmatpush.bf16.msrb.mxu3 %v3865_v7  ;;  %845 = vmatpush.bf16.msrb.mxu0 %v3568_v58  ;;  %v2478_v7 = vor.u32 %v3577_v63, %v2475_v0  ;;  %v3591_v58 = vld [vmem:[%s5344_s0 + $0xdc] sm:$0xf0]  ;;  %v3652_v63 = vld [vmem:[%s5343_s1 + $0x1a8] sm:$0xff]  ;;  %v4186_v0 = vld [vmem:[%s5343_s1 + $0x1d8] sm:$0xff] }
  0x2b   :  { %1180 = vmatpush.bf16.msrb.mxu1 %v3644_v43  ;;  %v2498_v43 = vor.u32 %v3584_v36, %v2497_v35  ;;  %v2530_v62 = vor.u32 %v3591_v58, %v2529_v57  ;;  %v2369_v35 = vld [vmem:[%s5344_s0 + $0x90] sm:$0xf]  ;;  %v2353_v36 = vld [vmem:[%s5344_s0 + $0x38] sm:$0xf] }
  0x2c   :  { %796 = vmatpush.bf16.msrb.mxu2 %v3560_v30  ;;  %v3650_v30 = vld [vmem:[%s5343_s1 + $0x198] sm:$0xff] }
  0x2d   :  { %v3686_v58 = vld [vmem:[%s5343_s1 + $0x1f8] sm:$0xff] }
  0x2e   :  { %3805 = vmatpush.bf16.msrb.mxu3 %v3876_v10  ;;  %v3556_v10 = vld [vmem:[%s5343_s1 + $0x28] sm:$0xff]  ;;  %846 = vmatpush.bf16.msrb.mxu0 %v3567_v13 }
  0x2f   :  { %1181 = vmatpush.bf16.msrb.mxu1 %v3643_v44  ;;  %v2502_v44 = vor.u32 %v3583_v37, %v2499_v38  ;;  %v3535_v37 = vld [vmem:[%s5344_s0 + $0x40] sm:$0xf0]  ;;  %v3540_v38 = vld [vmem:[%s5344_s0 + $0x98] sm:$0xf0] }
  0x30   :  { %797 = vmatpush.bf16.msrb.mxu2 %v3559_v47  ;;  %v2818_v47 = vor.u32 %v3622_v40, %v2817_v39 }
  0x31   :  { %463 = vmatmul.bf16.gmra.mxu0 %v2462_v53  ;;  %493 = vmatmul.bf16.gmra.mxu3 %v2534_v54  ;;  %v3586_v53 = vld [vmem:[%s5344_s0 + $0xb8] sm:$0xf]  ;;  %v2511_v54 = vld [vmem:[%s5344_s0 + $0xc0] sm:$0xf0] }
  0x32   :  { %3806 = vmatpush.bf16.msrb.mxu3 %v3898_v17  ;;  %v3581_v17 = vld [vmem:[%s5344_s0 + $0x5c] sm:$0xf0]  ;;  %1631 = vmatpush.bf16.msra.mxu0 %v3690_v49  ;;  %v2338_v49 = vor.u32 %v3530_v41, %v2335_v42 }
  0x33   :  { %2665 = vmatmul.msk.bf16.gmra.mxu2 %vm425_vm0, %v2482_v56  ;;  %1182 = vmatpush.bf16.msrb.mxu1 %v3642_v59  ;;  %v2486_v24 = vor.u32 %v3581_v17, %v2485_v16  ;;  %v3531_v56 = vld [vmem:[%s5344_s0 + $0x20] sm:$0xf0]  ;;  %v2510_v59 = vor.u32 %v3587_v52, %v2509_v51  ;;  %v3688_v16 = vld [vmem:[%s5343_s1 + $0x208] sm:$0xff]  ;;  %v3649_v52 = vld [vmem:[%s5343_s1 + $0x190] sm:$0xff] }
  0x34   :  { %512 = vmatmul.bf16.gmra.mxu1 %v2466_v55  ;;  %v2333_v55 = vld [vmem:[%s5344_s0 + $0x18] sm:$0xf]  ;;  %1280 = vmatpush.bf16.msra.mxu2 %v4186_v0  ;;  %v3696_v17 = vld [vmem:[%s5343_s1 + $0x248] sm:$0xff]  ;;  %v3647_v41 = vld [vmem:[%s5343_s1 + $0x180] sm:$0xff] }
  0x35   :  { %v2334_v61 = vor.u32 %v3531_v56, %v2333_v55 }
  0x36   :  { %3807 = vmatpush.bf16.msrb.mxu3 %v3911_v20  ;;  %v3592_v20 = vld [vmem:[%s5344_s0 + $0xe8] sm:$0xf]  ;;  %1632 = vmatpush.bf16.msra.mxu0 %v3689_v1  ;;  %v3543_v1 = vld [vmem:[%s5344_s0 + $0xb0] sm:$0xf0] }
  0x37   :  { %1183 = vmatpush.bf16.msrb.mxu1 %v3641_v12  ;;  %v2538_v27 = vor.u32 %v3592_v20, %v2535_v21  ;;  %v3532_v20 = vld [vmem:[%s5344_s0 + $0x28] sm:$0xf0]  ;;  %v3537_v21 = vld [vmem:[%s5344_s0 + $0x50] sm:$0xf0] }
  0x3a   :  { %3808 = vmatpush.bf16.msrb.mxu3 %v3923_v23  ;;  %v3585_v23 = vld [vmem:[%s5344_s0 + $0xac] sm:$0xf0]  ;;  %1633 = vmatpush.bf16.msra.mxu0 %v3688_v16  ;;  %v3648_v16 = vld [vmem:[%s5343_s1 + $0x188] sm:$0xff] }
  0x3b   :  { %v2506_v28 = vor.u32 %v3585_v23, %v2505_v22  ;;  %1184 = vmatpush.bf16.msrb.mxu1 %v3640_v31  ;;  %v2805_v22 = vld [vmem:[%s5344_s0 + $0x30] sm:$0xf]  ;;  %v3619_v23 = vld [vmem:[%s5344_s0 + $0x38] sm:$0xf0] }
  0x3c   :  { %v4261_v31 = vld [vmem:[%s5343_s1 + $0x1d0] sm:$0xff] }
  0x3d   :  { %1281 = vmatpush.bf16.msra.mxu2 %v4261_v31 }
  0x3e   :  { %3809 = vmatpush.bf16.msrb.mxu3 %v3931_v25  ;;  %v3553_v25 = vld [vmem:[%s5343_s1 + $0x10] sm:$0xff] }
  0x3f   :  { %1185 = vmatpush.bf16.msrb.mxu1 %v3639_v34  ;;  %v3695_v34 = vld [vmem:[%s5343_s1 + $0x240] sm:$0xff] }
  0x41   :  { %468 = vmatmul.bf16.gmra.mxu0 %v2474_v5  ;;  %537 = vmatmul.bf16.vlgmr.msrb.gmra.mxu3 %v2526_v8  ;;  %v3529_v5 = vld [vmem:[%s5344_s0 + $0x10] sm:$0xf0]  ;;  %v3616_v8 = vld [vmem:[%s5344_s0 + $0x20] sm:$0xf0] }
  0x42   :  { %741 = vmatpush.bf16.msra.mxu3 %v3558_v60  ;;  %v2514_v60 = vor.u32 %v3586_v53, %v2511_v54  ;;  %v2330_v11 = vor.u32 %v3529_v5, %v2329_v4  ;;  %v3533_v4 = vld [vmem:[%s5344_s0 + $0x34] sm:$0xf]  ;;  %v2347_v5 = vld [vmem:[%s5344_s0 + $0x3c] sm:$0xf0] }
  0x43   :  { %2666 = vmatmul.msk.bf16.gmra.mxu2 %vm425_vm0, %v2494_v9  ;;  %1680 = vmatpush.bf16.msra.mxu1 %v3698_v50  ;;  %v2541_v9 = vld [vmem:[%s5344_s0 + $0xec] sm:$0xf] }
  0x44   :  { %517 = vmatmul.bf16.gmra.mxu1 %v2478_v7  ;;  %v2793_v7 = vld [vmem:[%s5344_s0 + $0x18] sm:$0xf] }
  0x45   :  { %v2794_v13 = vor.u32 %v3616_v8, %v2793_v7 }
  0x46   :  { %742 = vmatpush.bf16.msra.mxu3 %v3557_v6  ;;  %v3534_v6 = vld [vmem:[%s5344_s0 + $0x38] sm:$0xf0] }
  0x47   :  { %1681 = vmatpush.bf16.msra.mxu1 %v3697_v2  ;;  %v2346_v12 = vor.u32 %v3534_v6, %v2345_v3  ;;  %v2829_v2 = vld [vmem:[%s5344_s0 + $0x60] sm:$0xf]  ;;  %v3625_v3 = vld [vmem:[%s5344_s0 + $0x68] sm:$0xf0] }
  0x4a   :  { %743 = vmatpush.bf16.msra.mxu3 %v3556_v10  ;;  %v3594_v10 = vld [vmem:[%s5344_s0 + $0xf4] sm:$0xf0] }
  0x4b   :  { %1682 = vmatpush.bf16.msra.mxu1 %v3696_v17  ;;  %v3656_v17 = vld [vmem:[%s5343_s1 + $0x1c8] sm:$0xff] }
  0x4c   :  { %1282 = vmatpush.bf16.msra.mxu2 %v3656_v17 }
  0x4e   :  { %744 = vmatpush.bf16.msra.mxu3 %v3555_v14  ;;  %v2542_v14 = vor.u32 %v3594_v10, %v2541_v9 }
  0x4f   :  { %1683 = vmatpush.bf16.msra.mxu1 %v3695_v34  ;;  %v2359_v34 = vld [vmem:[%s5344_s0 + $0x54] sm:$0xf0] }
  0x51   :  { %473 = vmatmul.bf16.gmra.mxu0 %v2486_v24  ;;  %542 = vmatmul.bf16.gmra.mxu3 %v2538_v27  ;;  %v3527_v24 = vld [vmem:[%s5344_s0 + $0x4] sm:$0xf]  ;;  %v2358_v27 = vor.u32 %v3537_v21, %v2357_v18 }
  0x52   :  { %745 = vmatpush.bf16.msra.mxu3 %v3554_v15  ;;  %v3651_v15 = vld [vmem:[%s5343_s1 + $0x1a0] sm:$0xff] }
  0x53   :  { %2667 = vmatmul.msk.bf16.gmra.mxu2 %vm425_vm0, %v2506_v28  ;;  %v2806_v28 = vor.u32 %v3619_v23, %v2805_v22  ;;  %v3685_v23 = vld [vmem:[%s5343_s1 + $0x1f0] sm:$0xff] }
  0x54   :  { %522 = vmatmul.bf16.gmra.mxu1 %v2490_v26  ;;  %v2342_v26 = vor.u32 %v3532_v20, %v2341_v19 }
  0x56   :  { %746 = vmatpush.bf16.msra.mxu3 %v3553_v25  ;;  %v2323_v25 = vld [vmem:[%s5344_s0 + $0xc] sm:$0xf0] }
  0x5a   :  { %747 = vmatpush.bf16.msra.mxu3 %v3552_v29  ;;  %v2326_v29 = vor.u32 %v3527_v24, %v2323_v25  ;;  %v3693_v24 = vld [vmem:[%s5343_s1 + $0x230] sm:$0xff]  ;;  %v2393_v25 = vld [vmem:[%s5344_s0 + $0xc0] sm:$0xf] }
  0x5e   :  { %748 = vmatpush.bf16.msra.mxu3 %v3551_v32 }
  0x61   :  { %478 = vmatmul.bf16.gmra.mxu0 %v2498_v43  ;;  %749 = vmatmul.bf16.vlgmr.msra.gmra.mxu3 %v2322_v45 }
  0x62   :  { %1227 = vmatpush.bf16.msrb.mxu3 %v3654_v33  ;;  %v3687_v33 = vld [vmem:[%s5343_s1 + $0x200] sm:$0xff] }
  0x63   :  { %2668 = vmatmul.msk.bf16.gmra.mxu2 %vm425_vm0, %v2518_v46  ;;  %1634 = vmatpush.bf16.msra.mxu0 %v3687_v33  ;;  %v2370_v46 = vor.u32 %v3540_v38, %v2369_v35  ;;  %v3536_v33 = vld [vmem:[%s5344_s0 + $0x4c] sm:$0xf] }
  0x64   :  { %527 = vmatmul.bf16.gmra.mxu1 %v2502_v44  ;;  %v2354_v44 = vor.u32 %v3535_v37, %v2353_v36 }
  0x66   :  { %1228 = vmatpush.bf16.msrb.mxu3 %v3653_v48 }
  0x67   :  { %1635 = vmatpush.bf16.msra.mxu0 %v3686_v58  ;;  %v2853_v58 = vld [vmem:[%s5344_s0 + $0xc0] sm:$0xf] }
  0x6a   :  { %1229 = vmatpush.bf16.msrb.mxu3 %v3652_v63 }
  0x6b   :  { %1636 = vmatpush.bf16.msra.mxu0 %v3685_v23  ;;  %v2865_v23 = vld [vmem:[%s5344_s0 + $0xd8] sm:$0xf] }
  0x6e   :  { %1230 = vmatpush.bf16.msrb.mxu3 %v3651_v15 }
  0x71   :  { %483 = vmatmul.bf16.gmra.mxu0 %v2510_v59  ;;  %754 = vmatmul.bf16.gmra.mxu3 %v2334_v61  ;;  %v3694_v59 = vld [vmem:[%s5343_s1 + $0x238] sm:$0xff]  ;;  %v2365_v61 = vld [vmem:[%s5344_s0 + $0x50] sm:$0xf] }
  0x72   :  { %1231 = vmatpush.bf16.msrb.mxu3 %v3650_v30  ;;  %1684 = vmatpush.bf16.msra.mxu1 %v3694_v59  ;;  %v2841_v30 = vld [vmem:[%s5344_s0 + $0xa8] sm:$0xf]  ;;  %v3631_v59 = vld [vmem:[%s5344_s0 + $0xc8] sm:$0xf0] }
  0x73   :  { %2669 = vmatmul.msk.bf16.gmra.mxu2 %vm425_vm0, %v2530_v62  ;;  %v3538_v62 = vld [vmem:[%s5344_s0 + $0x58] sm:$0xf0] }
  0x74   :  { %532 = vmatmul.bf16.gmra.mxu1 %v2514_v60  ;;  %v2381_v60 = vld [vmem:[%s5344_s0 + $0xa8] sm:$0xf]  ;;  %v2366_v7 = vor.u32 %v3538_v62, %v2365_v61  ;;  %v2371_v61 = vld [vmem:[%s5344_s0 + $0x9c] sm:$0xf0] }
  0x75   :  { %v2382_v10 = vor.u32 %v3543_v1, %v2381_v60  ;;  %v3539_v60 = vld [vmem:[%s5344_s0 + $0x94] sm:$0xf] }
  0x76   :  { %1232 = vmatpush.bf16.msrb.mxu3 %v3649_v52  ;;  %1685 = vmatpush.bf16.msra.mxu1 %v3693_v24 }
  0x7a   :  { %1233 = vmatpush.bf16.msrb.mxu3 %v3648_v16 }
  0x7e   :  { %1234 = vmatpush.bf16.msrb.mxu3 %v3647_v41 }
  0x81   :  { %2751 = vmatmul.msk.bf16.vlgmr.msrb.gmra.mxu0 %vm425_vm0, %v2330_v11  ;;  %759 = vmatmul.bf16.gmra.mxu3 %v2346_v12  ;;  %v2830_v11 = vor.u32 %v3625_v3, %v2829_v2 }
  0x82   :  { %3810 = vmatpush.bf16.msra.mxu3 %v4186_v0  ;;  %v3692_v0 = vld [vmem:[%s5343_s1 + $0x228] sm:$0xff] }
  0x83   :  { %2670 = vmatmul.msk.bf16.gmra.mxu2 %vm425_vm0, %v2542_v14  ;;  %1686 = vmatpush.bf16.msra.mxu1 %v3692_v0  ;;  %v2413_v0 = vld [vmem:[%s5344_s0 + $0xe0] sm:$0xf] }
  0x84   :  { %1186 = vmatmul.bf16.vlgmr.msrb.gmra.mxu1 %v2794_v13  ;;  %v2350_v13 = vor.u32 %v3533_v4, %v2347_v5 }
  0x86   :  { %3811 = vmatpush.bf16.msra.mxu3 %v4261_v31  ;;  %v2405_v31 = vld [vmem:[%s5344_s0 + $0xd8] sm:$0xf] }
  0x8a   :  { %3812 = vmatpush.bf16.msra.mxu3 %v3656_v17 }
  0x91   :  { %2752 = vmatmul.msk.bf16.gmra.mxu0 %vm425_vm0, %v2342_v26  ;;  %764 = vmatmul.bf16.gmra.mxu3 %v2358_v27  ;;  %v2377_v26 = vld [vmem:[%s5344_s0 + $0x98] sm:$0xf]  ;;  %v3541_v27 = vld [vmem:[%s5344_s0 + $0xa0] sm:$0xf0] }
  0x92   :  { %v2378_v36 = vor.u32 %v3541_v27, %v2377_v26  ;;  %v3615_v26 = vld [vmem:[%s5344_s0 + $0x1c] sm:$0xf]  ;;  %v2795_v27 = vld [vmem:[%s5344_s0 + $0x24] sm:$0xf0] }
  0x93   :  { %798 = vmatmul.bf16.vlgmr.msrb.gmra.mxu2 %v2326_v29  ;;  %v3546_v29 = vld [vmem:[%s5344_s0 + $0xc8] sm:$0xf0] }
  0x94   :  { %1191 = vmatmul.bf16.gmra.mxu1 %v2806_v28  ;;  %v2394_v39 = vor.u32 %v3546_v29, %v2393_v25  ;;  %v3634_v25 = vld [vmem:[%s5344_s0 + $0xe0] sm:$0xf0]  ;;  %v3542_v29 = vld [vmem:[%s5344_s0 + $0xac] sm:$0xf] }
  0x96   :  { %v557_v32 = vpop.f32.mrf.mxu2 }
  0x9e   :  { %v559_v43 = vpop.f32.mrf.mxu2  ;;  %v459_v45 = vpop.f32.mrf.mxu0 }
  0xa1   :  { %v508_v48 = vpop.f32.mrf.mxu1  ;;  %2753 = vmatmul.msk.bf16.gmra.mxu0 %vm425_vm0, %v2354_v44  ;;  %769 = vmatmul.bf16.gmra.mxu3 %v2370_v46 }
  0xa2   :  { %v509_v50 = vadd.f32 %v508_v48, %v459_v45 }
  0xa3   :  { %803 = vmatmul.bf16.gmra.mxu2 %v2338_v49 }
  0xa4   :  { %1196 = vmatmul.bf16.gmra.mxu1 %v2818_v47  ;;  %v4295_v51 = vadd.f32 %v557_v32, %v509_v50  ;;  %v4300_v53 = vpop.f32.mrf.mxu3  ;;  %v3628_v32 = vld [vmem:[%s5344_s0 + $0xb0] sm:$0xf0] }
  0xa5   :  { %v2842_v40 = vor.u32 %v3628_v32, %v2841_v30  ;;  %v2383_v30 = vld [vmem:[%s5344_s0 + $0xb4] sm:$0xf0] }
  0xa6   :  { %v562_v54 = vpop.f32.mrf.mxu2  ;;  %v461_v55 = vpop.f32.mrf.mxu0  ;;  %v2386_v41 = vor.u32 %v3542_v29, %v2383_v30  ;;  %v3548_v29 = vld [vmem:[%s5344_s0 + $0xdc] sm:$0xf]  ;;  %v2407_v30 = vld [vmem:[%s5344_s0 + $0xe4] sm:$0xf0] }
  0xa9   :  { %v510_v56 = vpop.f32.mrf.mxu1 }
  0xaa   :  { %v511_v57 = vadd.f32 %v510_v56, %v461_v55  ;;  %v3544_v55 = vld [vmem:[%s5344_s0 + $0xb8] sm:$0xf0] }
  0xac   :  { %v4317_v63 = vadd.f32 %v559_v43, %v511_v57  ;;  %v4334_v6 = vpop.f32.mrf.mxu3  ;;  %v2362_v43 = vor.u32 %v3536_v33, %v2359_v34  ;;  %v3549_v57 = vld [vmem:[%s5344_s0 + $0xe0] sm:$0xf0] }
  0xad   :  { %v2406_v5 = vor.u32 %v3549_v57, %v2405_v31  ;;  %v2877_v31 = vld [vmem:[%s5344_s0 + $0xf0] sm:$0xf]  ;;  %v3618_v57 = vld [vmem:[%s5344_s0 + $0x34] sm:$0xf] }
  0xae   :  { %v564_v8 = vpop.f32.mrf.mxu2  ;;  %v464_v9 = vpop.f32.mrf.mxu0 }
  0xb1   :  { %v513_v12 = vpop.f32.mrf.mxu1  ;;  %2754 = vmatmul.msk.bf16.gmra.mxu0 %vm425_vm0, %v2366_v7  ;;  %774 = vmatmul.bf16.gmra.mxu3 %v2382_v10  ;;  %v2854_v7 = vor.u32 %v3631_v59, %v2853_v58  ;;  %v2807_v58 = vld [vmem:[%s5344_s0 + $0x3c] sm:$0xf0]  ;;  %v3545_v59 = vld [vmem:[%s5344_s0 + $0xc4] sm:$0xf] }
  0xb2   :  { %v514_v14 = vadd.f32 %v513_v12, %v464_v9  ;;  %v2374_v9 = vor.u32 %v3539_v60, %v2371_v61  ;;  %v3655_v12 = vld [vmem:[%s5343_s1 + $0x1c0] sm:$0xff]  ;;  %v2395_v60 = vld [vmem:[%s5344_s0 + $0xcc] sm:$0xf0] }
  0xb3   :  { %808 = vmatmul.bf16.gmra.mxu2 %v2350_v13  ;;  %3813 = vmatpush.bf16.msra.mxu3 %v3655_v12 }
  0xb4   :  { %1201 = vmatmul.bf16.gmra.mxu1 %v2830_v11  ;;  %v4337_v15 = vadd.f32 %v562_v54, %v514_v14  ;;  %v4345_v18 = vpop.f32.mrf.mxu3  ;;  %v3684_v54 = vld [vmem:[%s5343_s1 + $0x1e8] sm:$0xff]  ;;  %1283 = vmatpush.bf16.msra.mxu2 %v3655_v12 }
  0xb5   :  { %1637 = vmatpush.bf16.msra.mxu0 %v3684_v54 }
  0xb6   :  { %v567_v19 = vpop.f32.mrf.mxu2  ;;  %v466_v20 = vpop.f32.mrf.mxu0 }
  0xb9   :  { %v515_v21 = vpop.f32.mrf.mxu1 }
  0xba   :  { %v516_v22 = vadd.f32 %v515_v21, %v466_v20  ;;  %v3683_v20 = vld [vmem:[%s5343_s1 + $0x1e0] sm:$0xff] }
  0xbb   :  { %v3691_v21 = vld [vmem:[%s5343_s1 + $0x220] sm:$0xff]  ;;  %1638 = vmatpush.bf16.msra.mxu0 %v3683_v20 }
  0xbc   :  { %v4362_v28 = vadd.f32 %v564_v8, %v516_v22  ;;  %v4379_v35 = vpop.f32.mrf.mxu3  ;;  %v2401_v22 = vld [vmem:[%s5344_s0 + $0xc8] sm:$0xf]  ;;  %1687 = vmatpush.bf16.msra.mxu1 %v3691_v21 }
  0xbe   :  { %v569_v37 = vpop.f32.mrf.mxu2  ;;  %v469_v38 = vpop.f32.mrf.mxu0 }
  0xc1   :  { %v518_v42 = vpop.f32.mrf.mxu1  ;;  %2755 = vmatmul.msk.bf16.gmra.mxu0 %vm425_vm0, %v2378_v36  ;;  %779 = vmatmul.bf16.gmra.mxu3 %v2394_v39  ;;  %v2798_v39 = vor.u32 %v3615_v26, %v2795_v27  ;;  %v3659_v26 = vld [vmem:[%s5344_s0 + $0x28] sm:$0xf]  ;;  %v3051_v27 = vld [vmem:[%s5344_s0 + $0x30] sm:$0xf0] }
  0xc2   :  { %v519_v44 = vadd.f32 %v518_v42, %v469_v38  ;;  %v2866_v38 = vor.u32 %v3634_v25, %v2865_v23  ;;  %v3049_v23 = vld [vmem:[%s5344_s0 + $0x24] sm:$0xf]  ;;  %v2819_v25 = vld [vmem:[%s5344_s0 + $0x54] sm:$0xf0] }
  0xc3   :  { %813 = vmatmul.bf16.gmra.mxu2 %v2362_v43 }
  0xc4   :  { %1206 = vmatmul.bf16.gmra.mxu1 %v2842_v40  ;;  %v4386_v45 = vadd.f32 %v567_v19, %v519_v44  ;;  %v538_v46 = vpop.f32.mrf.mxu3 }
  0xc5   :  { %v4390_v47 = vadd.f32 %v538_v46, %v4300_v53  ;;  %v2389_v53 = vld [vmem:[%s5344_s0 + $0xb0] sm:$0xf] }
  0xc6   :  { %v572_v48 = vpop.f32.mrf.mxu2  ;;  %v471_v49 = vpop.f32.mrf.mxu0  ;;  %v2390_v1 = vor.u32 %v3544_v55, %v2389_v53  ;;  %v3637_v55 = vld [vmem:[%s5344_s0 + $0xf8] sm:$0xf0] }
  0xc9   :  { %v520_v50 = vpop.f32.mrf.mxu1 }
  0xca   :  { %v521_v52 = vadd.f32 %v520_v50, %v471_v49  ;;  %v3742_v50 = vld [vmem:[%s5343_s1 + $0x2f8] sm:$0xff] }
  0xcb   :  { %2133 = vmatpush.bf16.msrb.mxu0 %v3742_v50 }
  0xcc   :  { %v4407_v56 = vadd.f32 %v569_v37, %v521_v52  ;;  %v540_v62 = vpop.f32.mrf.mxu3  ;;  %v3746_v52 = vld [vmem:[%s5343_s1 + $0x318] sm:$0xff] }
  0xcd   :  { %v4425_v2 = vadd.f32 %v540_v62, %v4334_v6  ;;  %2186 = vmatpush.bf16.msrb.mxu1 %v3746_v52 }
  0xce   :  { %v574_v3 = vpop.f32.mrf.mxu2  ;;  %v474_v4 = vpop.f32.mrf.mxu0 }
  0xd1   :  { %v523_v8 = vpop.f32.mrf.mxu1  ;;  %2756 = vmatmul.msk.bf16.gmra.mxu0 %vm425_vm0, %v2390_v1  ;;  %784 = vmatmul.bf16.gmra.mxu3 %v2406_v5  ;;  %v2878_v5 = vor.u32 %v3637_v55, %v2877_v31  ;;  %v2831_v31 = vld [vmem:[%s5344_s0 + $0x6c] sm:$0xf0]  ;;  %v3662_v55 = vld [vmem:[%s5344_s0 + $0x40] sm:$0xf] }
  0xd2   :  { %v524_v10 = vadd.f32 %v523_v8, %v474_v4 }
  0xd3   :  { %818 = vmatmul.bf16.gmra.mxu2 %v2374_v9  ;;  %v2398_v9 = vor.u32 %v3545_v59, %v2395_v60  ;;  %v3617_v59 = vld [vmem:[%s5344_s0 + $0x28] sm:$0xf0] }
  0xd4   :  { %1211 = vmatmul.bf16.gmra.mxu1 %v2854_v7  ;;  %v4428_v11 = vadd.f32 %v572_v48, %v524_v10  ;;  %v543_v6 = vpop.f32.mrf.mxu3  ;;  %v2810_v7 = vor.u32 %v3618_v57, %v2807_v58  ;;  %v3063_v57 = vld [vmem:[%s5344_s0 + $0x48] sm:$0xf0]  ;;  %v2801_v58 = vld [vmem:[%s5344_s0 + $0x20] sm:$0xf] }
  0xd5   :  { %v4434_v13 = vadd.f32 %v543_v6, %v4345_v18  ;;  %v3547_v18 = vld [vmem:[%s5344_s0 + $0xd0] sm:$0xf0]  ;;  %v3734_v6 = vld [vmem:[%s5343_s1 + $0x2b8] sm:$0xff] }
  0xd6   :  { %v577_v14 = vpop.f32.mrf.mxu2  ;;  %v476_v16 = vpop.f32.mrf.mxu0  ;;  %v2402_v33 = vor.u32 %v3547_v18, %v2401_v22  ;;  %2084 = vmatpush.bf16.msrb.mxu2 %v3734_v6  ;;  %v3741_v22 = vld [vmem:[%s5343_s1 + $0x2f0] sm:$0xff]  ;;  %v3621_v18 = vld [vmem:[%s5344_s0 + $0x4c] sm:$0xf] }
  0xd7   :  { %2134 = vmatpush.bf16.msrb.mxu0 %v3741_v22  ;;  %v3732_v6 = vld [vmem:[%s5343_s1 + $0x2a8] sm:$0xff]  ;;  %v3739_v22 = vld [vmem:[%s5343_s1 + $0x2e0] sm:$0xff] }
  0xd9   :  { %v525_v17 = vpop.f32.mrf.mxu1 }
  0xda   :  { %v526_v19 = vadd.f32 %v525_v17, %v476_v16 }
  0xdc   :  { %v4451_v24 = vadd.f32 %v574_v3, %v526_v19  ;;  %v545_v32 = vpop.f32.mrf.mxu3 }
  0xdd   :  { %v4469_v34 = vadd.f32 %v545_v32, %v4379_v35 }
  0xde   :  { %v579_v36 = vpop.f32.mrf.mxu2  ;;  %v479_v37 = vpop.f32.mrf.mxu0 }
  0xe1   :  { %v528_v40 = vpop.f32.mrf.mxu1  ;;  %2757 = vmatmul.msk.bf16.gmra.mxu0 %vm425_vm0, %v2402_v33  ;;  %1235 = vmatmul.bf16.vlgmr.msrb.gmra.mxu3 %v2798_v39  ;;  %v2822_v39 = vor.u32 %v3621_v18, %v2819_v25  ;;  %v3731_v18 = vld [vmem:[%s5343_s1 + $0x2a0] sm:$0xff]  ;;  %v3665_v25 = vld [vmem:[%s5344_s0 + $0x58] sm:$0xf] }
  0xe2   :  { %v529_v42 = vadd.f32 %v528_v40, %v479_v37  ;;  %v3054_v40 = vor.u32 %v3659_v26, %v3051_v27  ;;  %v3075_v26 = vld [vmem:[%s5344_s0 + $0x60] sm:$0xf0]  ;;  %v2813_v27 = vld [vmem:[%s5344_s0 + $0x38] sm:$0xf] }
  0xe3   :  { %823 = vmatmul.bf16.gmra.mxu2 %v2386_v41 }
  0xe4   :  { %1216 = vmatmul.bf16.gmra.mxu1 %v2866_v38  ;;  %v4472_v43 = vadd.f32 %v577_v14, %v529_v42  ;;  %v750_v44 = vpop.f32.mrf.mxu3 }
  0xe5   :  { %v4475_v48 = vadd.f32 %v750_v44, %v4295_v51  ;;  %v3550_v51 = vld [vmem:[%s5344_s0 + $0xe8] sm:$0xf0]  ;;  %v2410_v44 = vor.u32 %v3548_v29, %v2407_v30  ;;  %v3620_v29 = vld [vmem:[%s5344_s0 + $0x40] sm:$0xf0] }
  0xe6   :  { %v582_v46 = vpop.f32.mrf.mxu2  ;;  %v481_v35 = vpop.f32.mrf.mxu0  ;;  %v2414_v62 = vor.u32 %v3550_v51, %v2413_v0  ;;  %v3745_v0 = vld [vmem:[%s5343_s1 + $0x310] sm:$0xff]  ;;  %v3624_v51 = vld [vmem:[%s5344_s0 + $0x64] sm:$0xf] }
  0xe7   :  { %2187 = vmatpush.bf16.msrb.mxu1 %v3745_v0 }
  0xe9   :  { %v530_v49 = vpop.f32.mrf.mxu1 }
  0xea   :  { %v531_v54 = vadd.f32 %v530_v49, %v481_v35 }
  0xec   :  { %v4492_v53 = vadd.f32 %v579_v36, %v531_v54  ;;  %v752_v61 = vpop.f32.mrf.mxu3  ;;  %v3740_v54 = vld [vmem:[%s5343_s1 + $0x2e8] sm:$0xff] }
  0xed   :  { %v4510_v3 = vadd.f32 %v752_v61, %v4317_v63  ;;  %2135 = vmatpush.bf16.msrb.mxu0 %v3740_v54 }
  0xee   :  { %v584_v1 = vpop.f32.mrf.mxu2  ;;  %v484_v4 = vpop.f32.mrf.mxu0 }
  0xf1   :  { %v533_v8 = vpop.f32.mrf.mxu1  ;;  %2758 = vmatmul.msk.bf16.gmra.mxu0 %vm425_vm0, %v2414_v62  ;;  %1240 = vmatmul.bf16.gmra.mxu3 %v2810_v7  ;;  %v3066_v7 = vor.u32 %v3662_v55, %v3063_v57  ;;  %v3085_v55 = vld [vmem:[%s5344_s0 + $0x6c] sm:$0xf]  ;;  %v3669_v57 = vld [vmem:[%s5344_s0 + $0x74] sm:$0xf0] }
  0xf2   :  { %v534_v10 = vadd.f32 %v533_v8, %v484_v4  ;;  %2136 = vmatpush.bf16.msrb.mxu0 %v3739_v22 }
  0xf3   :  { %828 = vmatmul.bf16.gmra.mxu2 %v2398_v9 }
  0xf4   :  { %1221 = vmatmul.bf16.gmra.mxu1 %v2878_v5  ;;  %v4513_v12 = vadd.f32 %v582_v46, %v534_v10  ;;  %v755_v14 = vpop.f32.mrf.mxu3  ;;  %v3733_v46 = vld [vmem:[%s5343_s1 + $0x2b0] sm:$0xff]  ;;  %v2834_v5 = vor.u32 %v3624_v51, %v2831_v31  ;;  %v2802_v10 = vor.u32 %v3617_v59, %v2801_v58  ;;  %v3730_v31 = vld [vmem:[%s5343_s1 + $0x298] sm:$0xff] }
  0xf5   :  { %v4519_v16 = vadd.f32 %v755_v14, %v4337_v15  ;;  %v3660_v15 = vld [vmem:[%s5344_s0 + $0x2c] sm:$0xf0]  ;;  %2085 = vmatpush.bf16.msrb.mxu2 %v3733_v46 }
  0xf6   :  { %v587_v63 = vpop.f32.mrf.mxu2  ;;  %v486_v17 = vpop.f32.mrf.mxu0  ;;  %v3050_v33 = vor.u32 %v3660_v15, %v3049_v23  ;;  %v3666_v23 = vld [vmem:[%s5344_s0 + $0x5c] sm:$0xf0]  ;;  %v2843_v15 = vld [vmem:[%s5344_s0 + $0xb4] sm:$0xf0]  ;;  %v2855_v58 = vld [vmem:[%s5344_s0 + $0xcc] sm:$0xf0] }
  0xf7   :  { %v4522_v19 = vadd.f32 %v587_v63, %v4390_v47  ;;  %v3668_v59 = vld [vmem:[%s5344_s0 + $0x70] sm:$0xf] }
  0xf9   :  { %v535_v20 = vpop.f32.mrf.mxu1  ;;  %2086 = vmatpush.bf16.msrb.mxu2 %v3732_v6 }
  0xfa   :  { %v536_v21 = vadd.f32 %v535_v20, %v486_v17 }
  0xfc   :  { %v4536_v47 = vadd.f32 %v584_v1, %v536_v21  ;;  %v757_v32 = vpop.f32.mrf.mxu3 }
  0xfd   :  { %v4554_v37 = vadd.f32 %v757_v32, %v4362_v28  ;;  %2087 = vmatpush.bf16.msrb.mxu2 %v3731_v18 }
  0xfe   :  { %v589_v36 = vpop.f32.mrf.mxu2  ;;  %v848_v38 = vpop.f32.mrf.mxu0 }
  0xff   :  { %v4557_v41 = vadd.f32 %v589_v36, %v4425_v2 }
 0x101   :  { %v4559_v42 = vpop.f32.mrf.mxu1  ;;  %1639 = vmatmul.bf16.vlgmr.msra.gmra.mxu0 %v3050_v33  ;;  %1245 = vmatmul.bf16.gmra.mxu3 %v2822_v39 }
 0x102   :  { %2088 = vmatpush.bf16.msrb.mxu2 %v3730_v31 }
 0x103   :  { %833 = vmatmul.bf16.gmra.mxu2 %v2410_v44 }
 0x104   :  { %1688 = vmatmul.bf16.vlgmr.msra.gmra.mxu1 %v3054_v40  ;;  %v760_v28 = vpop.f32.mrf.mxu3  ;;  %v3078_v40 = vor.u32 %v3665_v25, %v3075_v26 }
 0x105   :  { %v4565_v49 = vadd.f32 %v760_v28, %v4386_v45  ;;  %v3061_v45 = vld [vmem:[%s5344_s0 + $0x3c] sm:$0xf]  ;;  %v2814_v28 = vor.u32 %v3620_v29, %v2813_v27  ;;  %v3737_v27 = vld [vmem:[%s5343_s1 + $0x2d0] sm:$0xff]  ;;  %v3672_v29 = vld [vmem:[%s5344_s0 + $0xbc] sm:$0xf0] }
 0x106   :  { %v592_v35 = vpop.f32.mrf.mxu2  ;;  %v850_v50 = vpop.f32.mrf.mxu0 }
 0x107   :  { %v4568_v2 = vadd.f32 %v592_v35, %v4434_v13  ;;  %v3663_v13 = vld [vmem:[%s5344_s0 + $0x44] sm:$0xf0] }
 0x108   :  { %v3062_v61 = vor.u32 %v3663_v13, %v3061_v45 }
 0x109   :  { %v4570_v52 = vpop.f32.mrf.mxu1 }
 0x10c   :  { %v762_v60 = vpop.f32.mrf.mxu3 }
 0x10d   :  { %v4603_v1 = vadd.f32 %v762_v60, %v4407_v56  ;;  %v3087_v60 = vld [vmem:[%s5344_s0 + $0x78] sm:$0xf0] }
 0x10e   :  { %v594_v62 = vpop.f32.mrf.mxu2  ;;  %v853_v4 = vpop.f32.mrf.mxu0 }
 0x10f   :  { %v4606_v8 = vadd.f32 %v594_v62, %v4469_v34  ;;  %v3623_v62 = vld [vmem:[%s5344_s0 + $0x58] sm:$0xf0] }
 0x111   :  { %v4608_v9 = vpop.f32.mrf.mxu1  ;;  %1644 = vmatmul.bf16.gmra.mxu0 %v3062_v61  ;;  %1250 = vmatmul.bf16.gmra.mxu3 %v2834_v5  ;;  %v2825_v61 = vld [vmem:[%s5344_s0 + $0x50] sm:$0xf]  ;;  %v3086_v5 = vor.u32 %v3669_v57, %v3085_v55 }
 0x112   :  { %v2826_v18 = vor.u32 %v3623_v62, %v2825_v61 }
 0x113   :  { %3007 = vmatmul.msk.bf16.vlgmr.msra.gmra.mxu2 %vm425_vm0, %v2802_v10 }
 0x114   :  { %1693 = vmatmul.bf16.gmra.mxu1 %v3066_v7  ;;  %v765_v56 = vpop.f32.mrf.mxu3 }
 0x115   :  { %v4615_v14 = vadd.f32 %v765_v56, %v4428_v11  ;;  %v3627_v11 = vld [vmem:[%s5344_s0 + $0xac] sm:$0xf] }
 0x116   :  { %v799_v63 = vpop.f32.mrf.mxu2  ;;  %v855_v34 = vpop.f32.mrf.mxu0  ;;  %v2846_v39 = vor.u32 %v3627_v11, %v2843_v15 }
 0x117   :  { %v800_v17 = vadd.f32 %v799_v63, %v4475_v48  ;;  %v3073_v48 = vld [vmem:[%s5344_s0 + $0x54] sm:$0xf]  ;;  %v3090_v63 = vor.u32 %v3668_v59, %v3087_v60 }
 0x118   :  { %v3074_v32 = vor.u32 %v3666_v23, %v3073_v48 }
 0x119   :  { %v4618_v20 = vpop.f32.mrf.mxu1  ;;  %v4620_v21 = vadd.f32 %v848_v38, %v800_v17 }
 0x11c   :  { %v767_v30 = vpop.f32.mrf.mxu3 }
 0x11d   :  { %v4653_v33 = vadd.f32 %v767_v30, %v4451_v24  ;;  %v2867_v30 = vld [vmem:[%s5344_s0 + $0xe4] sm:$0xf0] }
 0x11e   :  { %v801_v36 = vpop.f32.mrf.mxu2  ;;  %v858_v38 = vpop.f32.mrf.mxu0 }
 0x11f   :  { %v802_v44 = vadd.f32 %v801_v36, %v4510_v3  ;;  %v3099_v36 = vld [vmem:[%s5344_s0 + $0xc0] sm:$0xf0] }
 0x121   :  { %v4656_v46 = vpop.f32.mrf.mxu1  ;;  %v4658_v35 = vadd.f32 %v850_v50, %v802_v44  ;;  %1649 = vmatmul.bf16.gmra.mxu0 %v3074_v32  ;;  %1255 = vmatmul.bf16.gmra.mxu3 %v2846_v39  ;;  %v3738_v50 = vld [vmem:[%s5343_s1 + $0x2d8] sm:$0xff]  ;;  %v3626_v39 = vld [vmem:[%s5344_s0 + $0x70] sm:$0xf0] }
 0x122   :  { %2137 = vmatpush.bf16.msrb.mxu0 %v3738_v50  ;;  %v3671_v32 = vld [vmem:[%s5344_s0 + $0xb8] sm:$0xf] }
 0x123   :  { %3008 = vmatmul.msk.bf16.gmra.mxu2 %vm425_vm0, %v2814_v28  ;;  %v3102_v50 = vor.u32 %v3671_v32, %v3099_v36  ;;  %v3699_v32 = vld [vmem:[%s5343_s1 + $0x260] sm:$0xff] }
 0x124   :  { %1698 = vmatmul.bf16.gmra.mxu1 %v3078_v40  ;;  %v770_v54 = vpop.f32.mrf.mxu3 }
 0x125   :  { %v4662_v24 = vadd.f32 %v770_v54, %v4472_v43  ;;  %v3744_v43 = vld [vmem:[%s5343_s1 + $0x308] sm:$0xff] }
 0x126   :  { %v804_v0 = vpop.f32.mrf.mxu2  ;;  %v860_v51 = vpop.f32.mrf.mxu0  ;;  %2188 = vmatpush.bf16.msrb.mxu1 %v3744_v43  ;;  %2138 = vmatpush.bf16.msrb.mxu0 %v3737_v27 }
 0x127   :  { %v805_v45 = vadd.f32 %v804_v0, %v4519_v16  ;;  %v3630_v16 = vld [vmem:[%s5344_s0 + $0xc4] sm:$0xf] }
 0x128   :  { %v2858_v56 = vor.u32 %v3630_v16, %v2855_v58 }
 0x129   :  { %v4665_v13 = vpop.f32.mrf.mxu1  ;;  %v4667_v3 = vadd.f32 %v853_v4, %v805_v45 }
 0x12c   :  { %v772_v4 = vpop.f32.mrf.mxu3 }
 0x12d   :  { %v4703_v7 = vadd.f32 %v772_v4, %v4492_v53  ;;  %v3636_v4 = vld [vmem:[%s5344_s0 + $0xf4] sm:$0xf] }
 0x12e   :  { %v806_v10 = vpop.f32.mrf.mxu2  ;;  %v863_v6 = vpop.f32.mrf.mxu0 }
 0x12f   :  { %v807_v17 = vadd.f32 %v806_v10, %v4554_v37  ;;  %v3109_v10 = vld [vmem:[%s5344_s0 + $0xcc] sm:$0xf] }
 0x131   :  { %v4706_v22 = vpop.f32.mrf.mxu1  ;;  %v4708_v11 = vadd.f32 %v855_v34, %v807_v17  ;;  %1654 = vmatmul.bf16.gmra.mxu0 %v3086_v5  ;;  %1260 = vmatmul.bf16.gmra.mxu3 %v2858_v56  ;;  %v3729_v34 = vld [vmem:[%s5343_s1 + $0x290] sm:$0xff]  ;;  %v3736_v5 = vld [vmem:[%s5343_s1 + $0x2c8] sm:$0xff] }
 0x132   :  { %2089 = vmatpush.bf16.msrb.mxu2 %v3729_v34  ;;  %v3700_v56 = vld [vmem:[%s5343_s1 + $0x268] sm:$0xff]  ;;  %v3674_v17 = vld [vmem:[%s5344_s0 + $0xd0] sm:$0xf]  ;;  %2139 = vmatpush.bf16.msrb.mxu0 %v3736_v5 }
 0x133   :  { %3009 = vmatmul.msk.bf16.gmra.mxu2 %vm425_vm0, %v2826_v18  ;;  %v3111_v18 = vld [vmem:[%s5344_s0 + $0xd8] sm:$0xf0] }
 0x134   :  { %1703 = vmatmul.bf16.gmra.mxu1 %v3090_v63  ;;  %v775_v48 = vpop.f32.mrf.mxu3  ;;  %v2879_v63 = vld [vmem:[%s5344_s0 + $0xfc] sm:$0xf0] }
 0x135   :  { %v4712_v53 = vadd.f32 %v775_v48, %v4513_v12  ;;  %v3633_v12 = vld [vmem:[%s5344_s0 + $0xdc] sm:$0xf]  ;;  %v2849_v48 = vld [vmem:[%s5344_s0 + $0xb0] sm:$0xf] }
 0x136   :  { %v809_v23 = vpop.f32.mrf.mxu2  ;;  %v4714_v15 = vpop.f32.mrf.mxu0  ;;  %v2870_v45 = vor.u32 %v3633_v12, %v2867_v30  ;;  %v3114_v30 = vor.u32 %v3674_v17, %v3111_v18 }
 0x137   :  { %v810_v25 = vadd.f32 %v809_v23, %v4565_v49  ;;  %v3097_v49 = vld [vmem:[%s5344_s0 + $0xb4] sm:$0xf]  ;;  %v3629_v23 = vld [vmem:[%s5344_s0 + $0xb8] sm:$0xf0] }
 0x138   :  { %v3098_v44 = vor.u32 %v3672_v29, %v3097_v49  ;;  %v2882_v29 = vor.u32 %v3636_v4, %v2879_v63 }
 0x139   :  { %v4717_v37 = vpop.f32.mrf.mxu1  ;;  %v4719_v26 = vadd.f32 %v858_v38, %v810_v25  ;;  %v2837_v38 = vld [vmem:[%s5344_s0 + $0x68] sm:$0xf] }
 0x13a   :  { %v2838_v16 = vor.u32 %v3626_v39, %v2837_v38  ;;  %v2850_v39 = vor.u32 %v3629_v23, %v2849_v48 }
 0x13c   :  { %v777_v40 = vpop.f32.mrf.mxu3 }
 0x13d   :  { %v4752_v28 = vadd.f32 %v777_v40, %v4536_v47  ;;  %v3702_v47 = vld [vmem:[%s5343_s1 + $0x278] sm:$0xff] }
 0x13e   :  { %v811_v54 = vpop.f32.mrf.mxu2  ;;  %v4754_v0 = vpop.f32.mrf.mxu0  ;;  %1733 = vmatpush.bf16.msrb.mxu3 %v3702_v47  ;;  %v2885_v47 = vld [vmem:[%s5344_s0 + $0xf8] sm:$0xf] }
 0x13f   :  { %v812_v31 = vadd.f32 %v811_v54, %v4603_v1 }
 0x141   :  { %v4757_v43 = vpop.f32.mrf.mxu1  ;;  %v4759_v55 = vadd.f32 %v860_v51, %v812_v31  ;;  %1659 = vmatmul.bf16.gmra.mxu0 %v3098_v44  ;;  %1265 = vmatmul.bf16.gmra.mxu3 %v2870_v45  ;;  %v3701_v51 = vld [vmem:[%s5343_s1 + $0x270] sm:$0xff] }
 0x142   :  { %1734 = vmatpush.bf16.msrb.mxu3 %v3701_v51  ;;  %v2861_v51 = vld [vmem:[%s5344_s0 + $0xc8] sm:$0xf] }
 0x143   :  { %3010 = vmatmul.msk.bf16.gmra.mxu2 %vm425_vm0, %v2838_v16  ;;  %v3735_v16 = vld [vmem:[%s5343_s1 + $0x2c0] sm:$0xff] }
 0x144   :  { %1708 = vmatmul.bf16.gmra.mxu1 %v3102_v50  ;;  %v780_v57 = vpop.f32.mrf.mxu3  ;;  %2140 = vmatpush.bf16.msrb.mxu0 %v3735_v16 }
 0x145   :  { %v4766_v58 = vadd.f32 %v780_v57, %v4522_v19  ;;  %v3728_v19 = vld [vmem:[%s5343_s1 + $0x288] sm:$0xff] }
 0x146   :  { %v814_v1 = vpop.f32.mrf.mxu2  ;;  %v4768_v59 = vpop.f32.mrf.mxu0  ;;  %2090 = vmatpush.bf16.msrb.mxu2 %v3728_v19  ;;  %1735 = vmatpush.bf16.msrb.mxu3 %v3700_v56  ;;  %v3677_v57 = vld [vmem:[%s5344_s0 + $0xe8] sm:$0xf] }
 0x147   :  { %v815_v60 = vadd.f32 %v814_v1, %v4615_v14  ;;  %v3743_v14 = vld [vmem:[%s5343_s1 + $0x300] sm:$0xff]  ;;  %v3123_v1 = vld [vmem:[%s5344_s0 + $0xf0] sm:$0xf0] }
 0x148   :  { %2189 = vmatpush.bf16.msrb.mxu1 %v3743_v14  ;;  %v3126_v56 = vor.u32 %v3677_v57, %v3123_v1 }
 0x149   :  { %v4774_v61 = vpop.f32.mrf.mxu1  ;;  %v4776_v62 = vadd.f32 %v863_v6, %v815_v60  ;;  %v3675_v6 = vld [vmem:[%s5344_s0 + $0xd4] sm:$0xf0]  ;;  %v3632_v60 = vld [vmem:[%s5344_s0 + $0xd0] sm:$0xf0] }
 0x14a   :  { %v3110_v34 = vor.u32 %v3675_v6, %v3109_v10  ;;  %1736 = vmatpush.bf16.msrb.mxu3 %v3699_v32  ;;  %v2862_v18 = vor.u32 %v3632_v60, %v2861_v51  ;;  %v3661_v32 = vld [vmem:[%s5344_s0 + $0x34] sm:$0xf0] }
 0x14c   :  { %v782_v25 = vpop.f32.mrf.mxu3 }
 0x14d   :  { %v4815_v27 = vadd.f32 %v782_v25, %v4557_v41  ;;  %v3727_v41 = vld [vmem:[%s5343_s1 + $0x280] sm:$0xff] }
 0x14e   :  { %v816_v12 = vpop.f32.mrf.mxu2  ;;  %v873_v49 = vpop.f32.mrf.mxu0  ;;  %2091 = vmatpush.bf16.msrb.mxu2 %v3727_v41 }
 0x14f   :  { %v817_v36 = vadd.f32 %v816_v12, %v4653_v33 }
 0x151   :  { %v4821_v38 = vpop.f32.mrf.mxu1  ;;  %v4824_v40 = vadd.f32 %v4714_v15, %v817_v36  ;;  %1664 = vmatmul.bf16.gmra.mxu0 %v3110_v34  ;;  %1270 = vmatmul.bf16.gmra.mxu3 %v2882_v29  ;;  %v3681_v29 = vld [vmem:[%s5344_s0 + $0x104] sm:$0xf0]  ;;  %v2873_v36 = vld [vmem:[%s5344_s0 + $0xe0] sm:$0xf] }
 0x153   :  { %3011 = vmatmul.msk.bf16.gmra.mxu2 %vm425_vm0, %v2850_v39  ;;  %v3635_v39 = vld [vmem:[%s5344_s0 + $0xe8] sm:$0xf0] }
 0x154   :  { %1713 = vmatmul.bf16.gmra.mxu1 %v3114_v30  ;;  %v785_v44 = vpop.f32.mrf.mxu3  ;;  %v3680_v30 = vld [vmem:[%s5344_s0 + $0x100] sm:$0xf] }
 0x155   :  { %v4831_v33 = vadd.f32 %v785_v44, %v4568_v2  ;;  %v3121_v2 = vld [vmem:[%s5344_s0 + $0xe4] sm:$0xf] }
 0x156   :  { %v819_v54 = vpop.f32.mrf.mxu2  ;;  %v875_v45 = vpop.f32.mrf.mxu0 }
 0x157   :  { %v820_v50 = vadd.f32 %v819_v54, %v4662_v24  ;;  %v3678_v24 = vld [vmem:[%s5344_s0 + $0xec] sm:$0xf0] }
 0x158   :  { %v3122_v19 = vor.u32 %v3678_v24, %v3121_v2 }
 0x159   :  { %v4834_v15 = vpop.f32.mrf.mxu1  ;;  %v4837_v31 = vadd.f32 %v4754_v0, %v820_v50  ;;  %v3638_v0 = vld [vmem:[%s5344_s0 + $0x100] sm:$0xf0] }
 0x15a   :  { %v2886_v6 = vor.u32 %v3638_v0, %v2885_v47  ;;  %v2874_v0 = vor.u32 %v3635_v39, %v2873_v36 }
 0x15c   :  { %v787_v4 = vpop.f32.mrf.mxu3 }
 0x15d   :  { %v4867_v5 = vadd.f32 %v787_v4, %v4606_v8 }
 0x15e   :  { %v821_v14 = vpop.f32.mrf.mxu2  ;;  %v878_v10 = vpop.f32.mrf.mxu0 }
 0x15f   :  { %v822_v63 = vadd.f32 %v821_v14, %v4703_v7  ;;  %v3703_v14 = vld [vmem:[%s5344_s0 + $0x34] sm:$0xf] }
 0x161   :  { %v4870_v17 = vpop.f32.mrf.mxu1  ;;  %v4873_v48 = vadd.f32 %v4768_v59, %v822_v63  ;;  %1669 = vmatmul.bf16.gmra.mxu0 %v3122_v19  ;;  %3014 = vmatmul.msk.bf16.vlgmr.msra.gmra.mxu3 %vm425_vm0, %v2886_v6  ;;  %v3133_v59 = vld [vmem:[%s5344_s0 + $0xfc] sm:$0xf]  ;;  %v3307_v6 = vld [vmem:[%s5344_s0 + $0x3c] sm:$0xf0]  ;;  %v3305_v63 = vld [vmem:[%s5344_s0 + $0x30] sm:$0xf] }
 0x162   :  { %v3134_v44 = vor.u32 %v3681_v29, %v3133_v59 }
 0x163   :  { %3012 = vmatmul.msk.bf16.gmra.mxu2 %vm425_vm0, %v2862_v18  ;;  %v3704_v18 = vld [vmem:[%s5344_s0 + $0x38] sm:$0xf0] }
 0x164   :  { %1718 = vmatmul.bf16.gmra.mxu1 %v3126_v56  ;;  %v4877_v8 = vpop.f32.mrf.mxu3  ;;  %v3705_v56 = vld [vmem:[%s5344_s0 + $0x40] sm:$0xf0]  ;;  %v3306_v36 = vor.u32 %v3704_v18, %v3305_v63 }
 0x166   :  { %v824_v23 = vpop.f32.mrf.mxu2  ;;  %v880_v25 = vpop.f32.mrf.mxu0 }
 0x167   :  { %v825_v34 = vadd.f32 %v824_v23, %v4712_v53  ;;  %v3135_v53 = vld [vmem:[%s5344_s0 + $0x108] sm:$0xf0] }
 0x168   :  { %v3138_v16 = vor.u32 %v3680_v30, %v3135_v53 }
 0x169   :  { %v4880_v12 = vpop.f32.mrf.mxu1  ;;  %v4882_v7 = vadd.f32 %v873_v49, %v825_v34  ;;  %v3057_v49 = vld [vmem:[%s5344_s0 + $0x2c] sm:$0xf]  ;;  %v3310_v34 = vor.u32 %v3703_v14, %v3307_v6  ;;  %v3708_v14 = vld [vmem:[%s5344_s0 + $0x58] sm:$0xf0]  ;;  %v3317_v6 = vld [vmem:[%s5344_s0 + $0x48] sm:$0xf] }
 0x16a   :  { %v3058_v47 = vor.u32 %v3661_v32, %v3057_v49 }
 0x16c   :  { %v4908_v41 = vpop.f32.mrf.mxu3 }
 0x16e   :  { %v826_v54 = vpop.f32.mrf.mxu2  ;;  %v883_v50 = vpop.f32.mrf.mxu0 }
 0x16f   :  { %v827_v2 = vadd.f32 %v826_v54, %v4752_v28 }
 0x171   :  { %v4911_v24 = vpop.f32.mrf.mxu1  ;;  %v4913_v57 = vadd.f32 %v875_v45, %v827_v2  ;;  %1674 = vmatmul.bf16.gmra.mxu0 %v3134_v44  ;;  %3263 = vmatmul.msk.bf16.vlgmr.msrb.gmra.mxu3 %vm425_vm0, %v3058_v47  ;;  %v3069_v45 = vld [vmem:[%s5344_s0 + $0x44] sm:$0xf] }
 0x173   :  { %3013 = vmatmul.msk.bf16.gmra.mxu2 %vm425_vm0, %v2874_v0 }
 0x174   :  { %1723 = vmatmul.bf16.gmra.mxu1 %v3138_v16  ;;  %v4917_v1 = vpop.f32.mrf.mxu3 }
 0x176   :  { %v829_v51 = vpop.f32.mrf.mxu2  ;;  %v885_v60 = vpop.f32.mrf.mxu0 }
 0x177   :  { %v830_v4 = vadd.f32 %v829_v51, %v4766_v58  ;;  %v3664_v58 = vld [vmem:[%s5344_s0 + $0x4c] sm:$0xf0] }
 0x178   :  { %v3070_v30 = vor.u32 %v3664_v58, %v3069_v45  ;;  %v3319_v45 = vld [vmem:[%s5344_s0 + $0x54] sm:$0xf0]  ;;  %v3707_v58 = vld [vmem:[%s5344_s0 + $0x50] sm:$0xf0] }
 0x179   :  { %v4920_v19 = vpop.f32.mrf.mxu1  ;;  %v4922_v28 = vadd.f32 %v878_v10, %v830_v4  ;;  %v3313_v10 = vld [vmem:[%s5344_s0 + $0x38] sm:$0xf]  ;;  %v3706_v4 = vld [vmem:[%s5344_s0 + $0x4c] sm:$0xf] }
 0x17a   :  { %v3314_v53 = vor.u32 %v3705_v56, %v3313_v10  ;;  %v3322_v56 = vor.u32 %v3706_v4, %v3319_v45  ;;  %v3093_v4 = vld [vmem:[%s5344_s0 + $0x74] sm:$0xf]  ;;  %v3709_v45 = vld [vmem:[%s5344_s0 + $0x64] sm:$0xf] }
 0x17c   :  { %v4948_v23 = vpop.f32.mrf.mxu3 }
 0x17e   :  { %v831_v59 = vpop.f32.mrf.mxu2  ;;  %v1640_v29 = vpop.f32.mrf.mxu0 }
 0x17f   :  { %v832_v49 = vadd.f32 %v831_v59, %v4815_v27 }
 0x181   :  { %v1689_v32 = vpop.f32.mrf.mxu1  ;;  %v4953_v44 = vadd.f32 %v880_v25, %v832_v49  ;;  %2141 = vmatmul.bf16.vlgmr.msrb.gmra.mxu0 %v3310_v34  ;;  %3264 = vmatmul.msk.bf16.gmra.mxu3 %vm425_vm0, %v3070_v30  ;;  %v3081_v25 = vld [vmem:[%s5344_s0 + $0x5c] sm:$0xf] }
 0x182   :  { %v4951_v39 = vadd.f32 %v1689_v32, %v1640_v29 }
 0x183   :  { %2092 = vmatmul.bf16.vlgmr.msrb.gmra.mxu2 %v3306_v36  ;;  %v1237_v36 = vadd.f32 %v4877_v8, %v4559_v42  ;;  %v3331_v42 = vld [vmem:[%s5344_s0 + $0x6c] sm:$0xf0]  ;;  %v3670_v8 = vld [vmem:[%s5344_s0 + $0x7c] sm:$0xf0] }
 0x184   :  { %3519 = vmatmul.msk.bf16.vlgmr.msrb.gmra.mxu1 %vm425_vm0, %v3314_v53  ;;  %v4957_v54 = vpop.f32.mrf.mxu3  ;;  %v3318_v53 = vor.u32 %v3707_v58, %v3317_v6  ;;  %v1239_v6 = vadd.f32 %v4908_v41, %v4570_v52  ;;  %v1242_v52 = vadd.f32 %v4917_v1, %v4608_v9  ;;  %v3343_v9 = vld [vmem:[%s5344_s0 + $0x84] sm:$0xf0] }
 0x185   :  { %v3673_v1 = vld [vmem:[%s5344_s0 + $0xc4] sm:$0xf0] }
 0x186   :  { %v834_v16 = vpop.f32.mrf.mxu2  ;;  %v1642_v47 = vpop.f32.mrf.mxu0 }
 0x187   :  { %v835_v2 = vadd.f32 %v834_v16, %v4831_v33  ;;  %v3667_v33 = vld [vmem:[%s5344_s0 + $0x64] sm:$0xf0] }
 0x188   :  { %v3082_v34 = vor.u32 %v3667_v33, %v3081_v25  ;;  %v3711_v33 = vld [vmem:[%s5344_s0 + $0x70] sm:$0xf0] }
 0x189   :  { %v1691_v0 = vpop.f32.mrf.mxu1  ;;  %v4962_v51 = vadd.f32 %v883_v50, %v835_v2  ;;  %v3325_v50 = vld [vmem:[%s5344_s0 + $0x50] sm:$0xf] }
 0x18a   :  { %v4960_v27 = vadd.f32 %v1691_v0, %v1642_v47  ;;  %v3326_v59 = vor.u32 %v3708_v14, %v3325_v50  ;;  %v3329_v50 = vld [vmem:[%s5344_s0 + $0x60] sm:$0xf]  ;;  %v3710_v14 = vld [vmem:[%s5344_s0 + $0x68] sm:$0xf0] }
 0x18c   :  { %v4988_v10 = vpop.f32.mrf.mxu3 }
 0x18e   :  { %v836_v63 = vpop.f32.mrf.mxu2  ;;  %v1645_v18 = vpop.f32.mrf.mxu0 }
 0x18f   :  { %v837_v29 = vadd.f32 %v836_v63, %v4867_v5 }
 0x191   :  { %v1694_v30 = vpop.f32.mrf.mxu1  ;;  %v4993_v32 = vadd.f32 %v885_v60, %v837_v29  ;;  %2146 = vmatmul.bf16.gmra.mxu0 %v3322_v56  ;;  %3265 = vmatmul.msk.bf16.gmra.mxu3 %vm425_vm0, %v3082_v34  ;;  %v3334_v56 = vor.u32 %v3709_v45, %v3331_v42  ;;  %v3094_v34 = vor.u32 %v3670_v8, %v3093_v4  ;;  %v3105_v42 = vld [vmem:[%s5344_s0 + $0xbc] sm:$0xf] }
 0x192   :  { %v4991_v49 = vadd.f32 %v1694_v30, %v1645_v18  ;;  %v3712_v8 = vld [vmem:[%s5344_s0 + $0x7c] sm:$0xf] }
 0x193   :  { %2097 = vmatmul.bf16.gmra.mxu2 %v3318_v53  ;;  %v3330_v53 = vor.u32 %v3710_v14, %v3329_v50  ;;  %v3713_v50 = vld [vmem:[%s5344_s0 + $0x80] sm:$0xf0]  ;;  %v1244_v14 = vadd.f32 %v4948_v23, %v4618_v20  ;;  %v1247_v20 = vadd.f32 %v4957_v54, %v4656_v46  ;;  %v3355_v46 = vld [vmem:[%s5344_s0 + $0xcc] sm:$0xf0]  ;;  %v3676_v54 = vld [vmem:[%s5344_s0 + $0xdc] sm:$0xf0] }
 0x194   :  { %3520 = vmatmul.msk.bf16.gmra.mxu1 %vm425_vm0, %v3326_v59  ;;  %v4999_v16 = vpop.f32.mrf.mxu3 }
 0x196   :  { %v1285_v47 = vpop.f32.mrf.mxu2  ;;  %v1647_v2 = vpop.f32.mrf.mxu0 }
 0x197   :  { %v1286_v5 = vadd.f32 %v1285_v47, %v1237_v36 }
 0x199   :  { %v1696_v0 = vpop.f32.mrf.mxu1  ;;  %v5004_v60 = vadd.f32 %v1286_v5, %v4620_v21  ;;  %v3337_v21 = vld [vmem:[%s5344_s0 + $0x68] sm:$0xf] }
 0x19a   :  { %v5001_v25 = vadd.f32 %v1696_v0, %v1647_v2  ;;  %v3338_v59 = vor.u32 %v3711_v33, %v3337_v21  ;;  %v3714_v21 = vld [vmem:[%s5344_s0 + $0x88] sm:$0xf0]  ;;  %v3341_v33 = vld [vmem:[%s5344_s0 + $0x78] sm:$0xf] }
 0x19c   :  { %v5032_v58 = vpop.f32.mrf.mxu3 }
 0x19e   :  { %v1287_v63 = vpop.f32.mrf.mxu2  ;;  %v1650_v18 = vpop.f32.mrf.mxu0 }
 0x19f   :  { %v1288_v29 = vadd.f32 %v1287_v63, %v1239_v6 }
 0x1a1   :  { %v1699_v30 = vpop.f32.mrf.mxu1  ;;  %v5037_v47 = vadd.f32 %v1288_v29, %v4658_v35  ;;  %2151 = vmatmul.bf16.gmra.mxu0 %v3334_v56  ;;  %3266 = vmatmul.msk.bf16.gmra.mxu3 %vm425_vm0, %v3094_v34  ;;  %v3346_v56 = vor.u32 %v3712_v8, %v3343_v9  ;;  %v3106_v34 = vor.u32 %v3673_v1, %v3105_v42  ;;  %v3117_v9 = vld [vmem:[%s5344_s0 + $0xd4] sm:$0xf]  ;;  %v3715_v1 = vld [vmem:[%s5344_s0 + $0xc4] sm:$0xf] }
 0x1a2   :  { %v5034_v36 = vadd.f32 %v1699_v30, %v1650_v18 }
 0x1a3   :  { %2102 = vmatmul.bf16.gmra.mxu2 %v3330_v53  ;;  %v3342_v53 = vor.u32 %v3713_v50, %v3341_v33  ;;  %v3716_v33 = vld [vmem:[%s5344_s0 + $0xc8] sm:$0xf0]  ;;  %v1249_v50 = vadd.f32 %v4988_v10, %v4665_v13  ;;  %v1252_v13 = vadd.f32 %v4999_v16, %v4706_v22  ;;  %v3367_v22 = vld [vmem:[%s5344_s0 + $0xe4] sm:$0xf0]  ;;  %v3679_v16 = vld [vmem:[%s5344_s0 + $0xf4] sm:$0xf0] }
 0x1a4   :  { %3521 = vmatmul.msk.bf16.gmra.mxu1 %vm425_vm0, %v3338_v59  ;;  %v5043_v41 = vpop.f32.mrf.mxu3 }
 0x1a6   :  { %v1290_v2 = vpop.f32.mrf.mxu2  ;;  %v1652_v5 = vpop.f32.mrf.mxu0 }
 0x1a7   :  { %v1291_v0 = vadd.f32 %v1290_v2, %v1242_v52 }
 0x1a9   :  { %v1701_v4 = vpop.f32.mrf.mxu1  ;;  %v5048_v35 = vadd.f32 %v1291_v0, %v4667_v3  ;;  %v3349_v3 = vld [vmem:[%s5344_s0 + $0x80] sm:$0xf] }
 0x1aa   :  { %v5045_v45 = vadd.f32 %v1701_v4, %v1652_v5  ;;  %v3350_v59 = vor.u32 %v3714_v21, %v3349_v3  ;;  %v3717_v3 = vld [vmem:[%s5344_s0 + $0xd0] sm:$0xf0]  ;;  %v3353_v21 = vld [vmem:[%s5344_s0 + $0xc0] sm:$0xf] }
 0x1ac   :  { %v5076_v6 = vpop.f32.mrf.mxu3 }
 0x1ae   :  { %v1292_v63 = vpop.f32.mrf.mxu2  ;;  %v1655_v18 = vpop.f32.mrf.mxu0 }
 0x1af   :  { %v1293_v29 = vadd.f32 %v1292_v63, %v1244_v14 }
 0x1b1   :  { %v1704_v30 = vpop.f32.mrf.mxu1  ;;  %v5081_v2 = vadd.f32 %v1293_v29, %v4708_v11  ;;  %2156 = vmatmul.bf16.gmra.mxu0 %v3346_v56  ;;  %3267 = vmatmul.msk.bf16.gmra.mxu3 %vm425_vm0, %v3106_v34  ;;  %v3358_v56 = vor.u32 %v3715_v1, %v3355_v46  ;;  %v3118_v34 = vor.u32 %v3676_v54, %v3117_v9  ;;  %v3129_v46 = vld [vmem:[%s5344_s0 + $0xec] sm:$0xf]  ;;  %v3718_v54 = vld [vmem:[%s5344_s0 + $0xdc] sm:$0xf] }
 0x1b2   :  { %v5078_v52 = vadd.f32 %v1704_v30, %v1655_v18 }
 0x1b3   :  { %2107 = vmatmul.bf16.gmra.mxu2 %v3342_v53  ;;  %v3354_v53 = vor.u32 %v3716_v33, %v3353_v21  ;;  %v3719_v21 = vld [vmem:[%s5344_s0 + $0xe0] sm:$0xf0]  ;;  %v1254_v33 = vadd.f32 %v5032_v58, %v4717_v37  ;;  %v1257_v37 = vadd.f32 %v5043_v41, %v4757_v43  ;;  %v3379_v43 = vld [vmem:[%s5344_s0 + $0xfc] sm:$0xf0]  ;;  %v3682_v41 = vld [vmem:[%s5344_s0 + $0x10c] sm:$0xf0] }
 0x1b4   :  { %3522 = vmatmul.msk.bf16.gmra.mxu1 %vm425_vm0, %v3350_v59  ;;  %v5087_v23 = vpop.f32.mrf.mxu3 }
 0x1b6   :  { %v1295_v5 = vpop.f32.mrf.mxu2  ;;  %v1657_v0 = vpop.f32.mrf.mxu0 }
 0x1b7   :  { %v1296_v4 = vadd.f32 %v1295_v5, %v1247_v20 }
 0x1b9   :  { %v1706_v42 = vpop.f32.mrf.mxu1  ;;  %v5092_v11 = vadd.f32 %v1296_v4, %v4719_v26  ;;  %v3361_v26 = vld [vmem:[%s5344_s0 + $0xc8] sm:$0xf] }
 0x1ba   :  { %v5089_v8 = vadd.f32 %v1706_v42, %v1657_v0  ;;  %v3362_v59 = vor.u32 %v3717_v3, %v3361_v26  ;;  %v3720_v26 = vld [vmem:[%s5344_s0 + $0xe8] sm:$0xf0]  ;;  %v3365_v3 = vld [vmem:[%s5344_s0 + $0xd8] sm:$0xf] }
 0x1bc   :  { %v5120_v14 = vpop.f32.mrf.mxu3 }
 0x1be   :  { %v1297_v63 = vpop.f32.mrf.mxu2  ;;  %v1660_v18 = vpop.f32.mrf.mxu0 }
 0x1bf   :  { %v1298_v29 = vadd.f32 %v1297_v63, %v1249_v50 }
 0x1c1   :  { %v1709_v30 = vpop.f32.mrf.mxu1  ;;  %v5125_v5 = vadd.f32 %v1298_v29, %v4759_v55  ;;  %2161 = vmatmul.bf16.gmra.mxu0 %v3358_v56  ;;  %3268 = vmatmul.msk.bf16.gmra.mxu3 %vm425_vm0, %v3118_v34  ;;  %v3370_v56 = vor.u32 %v3718_v54, %v3367_v22  ;;  %v3130_v34 = vor.u32 %v3679_v16, %v3129_v46  ;;  %v3721_v16 = vld [vmem:[%s5344_s0 + $0xf4] sm:$0xf] }
 0x1c2   :  { %v5122_v20 = vadd.f32 %v1709_v30, %v1660_v18 }
 0x1c3   :  { %2112 = vmatmul.bf16.gmra.mxu2 %v3354_v53  ;;  %v3366_v53 = vor.u32 %v3719_v21, %v3365_v3  ;;  %v3722_v3 = vld [vmem:[%s5344_s0 + $0xf8] sm:$0xf0]  ;;  %v1259_v21 = vadd.f32 %v5076_v6, %v4774_v61  ;;  %v1262_v6 = vadd.f32 %v5087_v23, %v4821_v38  ;;  %v3391_v38 = vld [vmem:[%s5344_s0 + $0x114] sm:$0xf0]  ;;  %v3397_v23 = vld [vmem:[%s5344_s0 + $0x110] sm:$0xf] }
 0x1c4   :  { %3523 = vmatmul.msk.bf16.gmra.mxu1 %vm425_vm0, %v3362_v59  ;;  %v5131_v10 = vpop.f32.mrf.mxu3 }
 0x1c6   :  { %v1300_v0 = vpop.f32.mrf.mxu2  ;;  %v1662_v4 = vpop.f32.mrf.mxu0 }
 0x1c7   :  { %v1301_v42 = vadd.f32 %v1300_v0, %v1252_v13 }
 0x1c9   :  { %v1711_v9 = vpop.f32.mrf.mxu1  ;;  %v5136_v55 = vadd.f32 %v1301_v42, %v4776_v62  ;;  %v3373_v62 = vld [vmem:[%s5344_s0 + $0xe0] sm:$0xf] }
 0x1ca   :  { %v5133_v1 = vadd.f32 %v1711_v9, %v1662_v4  ;;  %v3374_v59 = vor.u32 %v3720_v26, %v3373_v62  ;;  %v3723_v62 = vld [vmem:[%s5344_s0 + $0x100] sm:$0xf0]  ;;  %v3377_v26 = vld [vmem:[%s5344_s0 + $0xf0] sm:$0xf] }
 0x1cc   :  { %v5164_v50 = vpop.f32.mrf.mxu3 }
 0x1ce   :  { %v1302_v63 = vpop.f32.mrf.mxu2  ;;  %v1665_v18 = vpop.f32.mrf.mxu0 }
 0x1cf   :  { %v1303_v29 = vadd.f32 %v1302_v63, %v1254_v33 }
 0x1d1   :  { %v1714_v30 = vpop.f32.mrf.mxu1  ;;  %v5169_v0 = vadd.f32 %v1303_v29, %v4824_v40  ;;  %2166 = vmatmul.bf16.gmra.mxu0 %v3370_v56  ;;  %3269 = vmatmul.msk.bf16.gmra.mxu3 %vm425_vm0, %v3130_v34  ;;  %v3141_v40 = vld [vmem:[%s5344_s0 + $0x104] sm:$0xf]  ;;  %v3382_v56 = vor.u32 %v3721_v16, %v3379_v43 }
 0x1d2   :  { %v5166_v13 = vadd.f32 %v1714_v30, %v1665_v18  ;;  %v3142_v34 = vor.u32 %v3682_v41, %v3141_v40 }
 0x1d3   :  { %2117 = vmatmul.bf16.gmra.mxu2 %v3366_v53  ;;  %v3378_v53 = vor.u32 %v3722_v3, %v3377_v26  ;;  %v1264_v26 = vadd.f32 %v5120_v14, %v4834_v15  ;;  %v1267_v15 = vadd.f32 %v5131_v10, %v4870_v17 }
 0x1d4   :  { %3524 = vmatmul.msk.bf16.gmra.mxu1 %vm425_vm0, %v3374_v59  ;;  %v1271_v58 = vpop.f32.mrf.mxu3 }
 0x1d5   :  { %v1272_v61 = vadd.f32 %v1271_v58, %v4911_v24  ;;  %v3724_v24 = vld [vmem:[%s5344_s0 + $0x10c] sm:$0xf] }
 0x1d6   :  { %v1305_v4 = vpop.f32.mrf.mxu2  ;;  %v1667_v42 = vpop.f32.mrf.mxu0 }
 0x1d7   :  { %v1306_v9 = vadd.f32 %v1305_v4, %v1257_v37 }
 0x1d9   :  { %v1716_v46 = vpop.f32.mrf.mxu1  ;;  %v5178_v22 = vadd.f32 %v1306_v9, %v4837_v31  ;;  %v3385_v31 = vld [vmem:[%s5344_s0 + $0xf8] sm:$0xf] }
 0x1da   :  { %v5175_v54 = vadd.f32 %v1716_v46, %v1667_v42  ;;  %v3386_v59 = vor.u32 %v3723_v62, %v3385_v31  ;;  %v3725_v62 = vld [vmem:[%s5344_s0 + $0x110] sm:$0xf0] }
 0x1dc   :  { %v1273_v33 = vpop.f32.mrf.mxu3 }
 0x1dd   :  { %v1274_v58 = vadd.f32 %v1273_v33, %v4920_v19 }
 0x1de   :  { %v1307_v63 = vpop.f32.mrf.mxu2  ;;  %v1670_v18 = vpop.f32.mrf.mxu0 }
 0x1df   :  { %v1308_v29 = vadd.f32 %v1307_v63, %v1259_v21  ;;  %v3394_v21 = vor.u32 %v3724_v24, %v3391_v38 }
 0x1e1   :  { %v1719_v30 = vpop.f32.mrf.mxu1  ;;  %v5209_v4 = vadd.f32 %v1308_v29, %v4873_v48  ;;  %2171 = vmatmul.bf16.gmra.mxu0 %v3382_v56  ;;  %3270 = vmatmul.msk.bf16.gmra.mxu3 %vm425_vm0, %v3142_v34 }
 0x1e2   :  { %v5206_v37 = vadd.f32 %v1719_v30, %v1670_v18 }
 0x1e3   :  { %2122 = vmatmul.bf16.gmra.mxu2 %v3378_v53 }
 0x1e4   :  { %3525 = vmatmul.msk.bf16.gmra.mxu1 %vm425_vm0, %v3386_v59  ;;  %v1320_v42 = vpop.f32.mrf.mxu3 }
 0x1e5   :  { %v1321_v46 = vadd.f32 %v1320_v42, %v1272_v61 }
 0x1e6   :  { %v1310_v9 = vpop.f32.mrf.mxu2  ;;  %v1672_v40 = vpop.f32.mrf.mxu0 }
 0x1e7   :  { %v1311_v16 = vadd.f32 %v1310_v9, %v1262_v6  ;;  %v5217_v48 = vadd.f32 %v1321_v46, %v4962_v51  ;;  %v3726_v51 = vld [vmem:[%s5344_s0 + $0x118] sm:$0xf0] }
 0x1e8   :  { %v3398_v34 = vor.u32 %v3726_v51, %v3397_v23 }
 0x1e9   :  { %v1721_v43 = vpop.f32.mrf.mxu1  ;;  %v5222_v31 = vadd.f32 %v1311_v16, %v4882_v7  ;;  %v3389_v7 = vld [vmem:[%s5344_s0 + $0x108] sm:$0xf]  ;;  %v1269_v16 = vadd.f32 %v5164_v50, %v4880_v12 }
 0x1ea   :  { %v5219_v41 = vadd.f32 %v1721_v43, %v1672_v40  ;;  %v3390_v19 = vor.u32 %v3725_v62, %v3389_v7 }
 0x1ec   :  { %v1322_v3 = vpop.f32.mrf.mxu3 }
 0x1ed   :  { %v1323_v63 = vadd.f32 %v1322_v3, %v1274_v58 }
 0x1ee   :  { %v1312_v56 = vpop.f32.mrf.mxu2  ;;  %v1675_v18 = vpop.f32.mrf.mxu0 }
 0x1ef   :  { %v1313_v59 = vadd.f32 %v1312_v56, %v1264_v26  ;;  %v5246_v33 = vadd.f32 %v1323_v63, %v4993_v32 }
 0x1f1   :  { %v1724_v29 = vpop.f32.mrf.mxu1  ;;  %v5251_v53 = vadd.f32 %v1313_v59, %v4913_v57  ;;  %2176 = vmatmul.bf16.gmra.mxu0 %v3394_v21 }
 0x1f2   :  { %v5248_v30 = vadd.f32 %v1724_v29, %v1675_v18 }
 0x1f3   :  { %2127 = vmatmul.bf16.gmra.mxu2 %v3390_v19 }
 0x1f4   :  { %3526 = vmatmul.msk.bf16.gmra.mxu1 %vm425_vm0, %v3398_v34  ;;  %v1738_v14 = vpop.f32.mrf.mxu3 }
 0x1f5   :  { %v1739_v6 = vadd.f32 %v1738_v14, %v4951_v39 }
 0x1f6   :  { %v1315_v61 = vpop.f32.mrf.mxu2  ;;  %v1677_v42 = vpop.f32.mrf.mxu0 }
 0x1f7   :  { %v1316_v9 = vadd.f32 %v1315_v61, %v1267_v15  ;;  %v1778_v46 = vadd.f32 %v1739_v6, %v5004_v60 }
 0x1f9   :  { %v1726_v32 = vpop.f32.mrf.mxu1  ;;  %v5261_v57 = vadd.f32 %v1316_v9, %v4922_v28 }
 0x1fa   :  { %v5258_v40 = vadd.f32 %v1726_v32, %v1677_v42 }
 0x1fc   :  { %v1740_v43 = vpop.f32.mrf.mxu3 }
 0x1fd   :  { %v1741_v17 = vadd.f32 %v1740_v43, %v4960_v27 }
 0x1fe   :  { %v1317_v24 = vpop.f32.mrf.mxu2  ;;  %v2142_v10 = vpop.f32.mrf.mxu0 }
 0x1ff   :  { %v1318_v38 = vadd.f32 %v1317_v24, %v1269_v16  ;;  %v1779_v23 = vadd.f32 %v1741_v17, %v5037_v47 }
 0x201   :  { %v2191_v39 = vpop.f32.mrf.mxu1  ;;  %v5268_v51 = vadd.f32 %v1318_v38, %v4953_v44  ;;  %v5276_v44 = vld [vmem:[%s5345_s2] ss:$0 sm:$0xff] }
 0x204   :  { %v1743_v60 = vpop.f32.mrf.mxu3 }
 0x205   :  { %v1744_v58 = vadd.f32 %v1743_v60, %v4991_v49 }
 0x206   :  { %v2093_v28 = vpop.f32.mrf.mxu2  ;;  %v2144_v7 = vpop.f32.mrf.mxu0 }
 0x207   :  { %v2143_v62 = vadd.f32 %v2142_v10, %v2093_v28  ;;  %v1780_v12 = vadd.f32 %v1744_v58, %v5048_v35 }
 0x209   :  { %v2193_v26 = vpop.f32.mrf.mxu1  ;;  %v2192_v50 = vadd.f32 %v2191_v39, %v2143_v62 }
 0x20b   :  { %v2231_v63 = vadd.f32 %v2192_v50, %v1778_v46 }
 0x20c   :  { %v1745_v3 = vpop.f32.mrf.mxu3 }
 0x20d   :  { %v1746_v27 = vadd.f32 %v1745_v3, %v5001_v25  ;;  %v2251_v59 = vadd.f32 %v5276_v44, %v2231_v63 }
 0x20e   :  { %v2095_v21 = vpop.f32.mrf.mxu2  ;;  %v2147_v56 = vpop.f32.mrf.mxu0 }
 0x20f   :  { %v2145_v47 = vadd.f32 %v2144_v7, %v2095_v21  ;;  %v1781_v18 = vadd.f32 %v1746_v27, %v5081_v2  ;;  %v2267_v61 = vmax.f32 %v2251_v59, 0.0 }
 0x211   :  { %v2196_v49 = vpop.f32.mrf.mxu1  ;;  %v2194_v34 = vadd.f32 %v2193_v26, %v2145_v47 }
 0x213   :  { %v2232_v35 = vadd.f32 %v2194_v34, %v1779_v23 }
 0x214   :  { %v1748_v19 = vpop.f32.mrf.mxu3 }
 0x215   :  { %v2252_v29 = vadd.f32 %v5276_v44, %v2232_v35  ;;  %v1749_v25 = vadd.f32 %v1748_v19, %v5034_v36 }
 0x216   :  { %v2098_v15 = vpop.f32.mrf.mxu2  ;;  %v2149_v14 = vpop.f32.mrf.mxu0 }
 0x217   :  { %v2268_v6 = vmax.f32 %v2252_v29, 0.0  ;;  %v2148_v42 = vadd.f32 %v2147_v56, %v2098_v15  ;;  %v1782_v32 = vadd.f32 %v1749_v25, %v5092_v11 }
 0x219   :  { %v2198_v9 = vpop.f32.mrf.mxu1  ;;  %v3750_v46 = vpack.c.bf16 %v2268_v6, %v2267_v61  ;;  %v2197_v2 = vadd.f32 %v2196_v49, %v2148_v42 }
 0x21b   :  { %3751 = vst [vmem:[%s5346_s3] sm:$0xff] %v3750_v46   ;;  %v2233_v36 = vadd.f32 %v2197_v2, %v1780_v12 }
 0x21c   :  { %v1750_v16 = vpop.f32.mrf.mxu3 }
 0x21d   :  { %v1751_v43 = vadd.f32 %v1750_v16, %v5045_v45  ;;  %v2253_v60 = vadd.f32 %v5276_v44, %v2233_v36 }
 0x21e   :  { %v2100_v24 = vpop.f32.mrf.mxu2  ;;  %v2152_v17 = vpop.f32.mrf.mxu0 }
 0x21f   :  { %v2150_v10 = vadd.f32 %v2149_v14, %v2100_v24  ;;  %v1783_v39 = vadd.f32 %v1751_v43, %v5125_v5  ;;  %v2269_v50 = vmax.f32 %v2253_v60, 0.0 }
 0x221   :  { %v2201_v38 = vpop.f32.mrf.mxu1  ;;  %v2199_v23 = vadd.f32 %v2198_v9, %v2150_v10 }
 0x223   :  { %v2234_v11 = vadd.f32 %v2199_v23, %v1781_v18 }
 0x224   :  { %v1753_v28 = vpop.f32.mrf.mxu3 }
 0x225   :  { %v2254_v58 = vadd.f32 %v5276_v44, %v2234_v11  ;;  %v1754_v7 = vadd.f32 %v1753_v28, %v5078_v52 }
 0x226   :  { %v2103_v62 = vpop.f32.mrf.mxu2  ;;  %v2154_v26 = vpop.f32.mrf.mxu0 }
 0x227   :  { %v2270_v45 = vmax.f32 %v2254_v58, 0.0  ;;  %v2153_v3 = vadd.f32 %v2152_v17, %v2103_v62  ;;  %v1784_v12 = vadd.f32 %v1754_v7, %v5136_v55 }
 0x229   :  { %v2203_v27 = vpop.f32.mrf.mxu1  ;;  %v3755_v21 = vpack.c.bf16 %v2270_v45, %v2269_v50  ;;  %v2202_v5 = vadd.f32 %v2201_v38, %v2153_v3 }
 0x22b   :  { %3787 = vst [vmem:[%s5346_s3 + $0x8] sm:$0xff] %v3755_v21   ;;  %v2235_v52 = vadd.f32 %v2202_v5, %v1782_v32 }
 0x22c   :  { %v1755_v56 = vpop.f32.mrf.mxu3 }
 0x22d   :  { %v1756_v63 = vadd.f32 %v1755_v56, %v5089_v8  ;;  %v2255_v29 = vadd.f32 %v5276_v44, %v2235_v52 }
 0x22e   :  { %v2105_v47 = vpop.f32.mrf.mxu2  ;;  %v2157_v49 = vpop.f32.mrf.mxu0 }
 0x22f   :  { %v2155_v18 = vadd.f32 %v2154_v26, %v2105_v47  ;;  %v1785_v59 = vadd.f32 %v1756_v63, %v5169_v0  ;;  %v2271_v6 = vmax.f32 %v2255_v29, 0.0 }
 0x231   :  { %v2206_v34 = vpop.f32.mrf.mxu1  ;;  %v2204_v35 = vadd.f32 %v2203_v27, %v2155_v18 }
 0x233   :  { %v2236_v55 = vadd.f32 %v2204_v35, %v1783_v39 }
 0x234   :  { %v1758_v25 = vpop.f32.mrf.mxu3 }
 0x235   :  { %v2256_v19 = vadd.f32 %v5276_v44, %v2236_v55  ;;  %v1759_v15 = vadd.f32 %v1758_v25, %v5122_v20 }
 0x236   :  { %v2108_v14 = vpop.f32.mrf.mxu2  ;;  %v2159_v61 = vpop.f32.mrf.mxu0 }
 0x237   :  { %v2272_v8 = vmax.f32 %v2256_v19, 0.0  ;;  %v2158_v42 = vadd.f32 %v2157_v49, %v2108_v14  ;;  %v1786_v32 = vadd.f32 %v1759_v15, %v5178_v22 }
 0x239   :  { %v2208_v9 = vpop.f32.mrf.mxu1  ;;  %v3760_v46 = vpack.c.bf16 %v2272_v8, %v2271_v6  ;;  %v2207_v0 = vadd.f32 %v2206_v34, %v2158_v42 }
 0x23b   :  { %3788 = vst [vmem:[%s5346_s3 + $0x10] sm:$0xff] %v3760_v46   ;;  %v2237_v20 = vadd.f32 %v2207_v0, %v1784_v12 }
 0x23c   :  { %v1760_v2 = vpop.f32.mrf.mxu3 }
 0x23d   :  { %v1761_v16 = vadd.f32 %v1760_v2, %v5133_v1  ;;  %v2257_v39 = vadd.f32 %v5276_v44, %v2237_v20 }
 0x23e   :  { %v2110_v43 = vpop.f32.mrf.mxu2  ;;  %v2162_v24 = vpop.f32.mrf.mxu0 }
 0x23f   :  { %v2160_v17 = vadd.f32 %v2159_v61, %v2110_v43  ;;  %v1787_v10 = vadd.f32 %v1761_v16, %v5209_v4  ;;  %v2273_v7 = vmax.f32 %v2257_v39, 0.0 }
 0x241   :  { %v2211_v36 = vpop.f32.mrf.mxu1  ;;  %v2209_v38 = vadd.f32 %v2208_v9, %v2160_v17 }
 0x243   :  { %v2238_v22 = vadd.f32 %v2209_v38, %v1785_v59 }
 0x244   :  { %v1763_v60 = vpop.f32.mrf.mxu3 }
 0x245   :  { %v2258_v23 = vadd.f32 %v5276_v44, %v2238_v22  ;;  %v1764_v11 = vadd.f32 %v1763_v60, %v5166_v13 }
 0x246   :  { %v2113_v58 = vpop.f32.mrf.mxu2  ;;  %v2164_v28 = vpop.f32.mrf.mxu0 }
 0x247   :  { %v2274_v1 = vmax.f32 %v2258_v23, 0.0  ;;  %v2163_v62 = vadd.f32 %v2162_v24, %v2113_v58  ;;  %v1788_v50 = vadd.f32 %v1764_v11, %v5222_v31 }
 0x249   :  { %v2213_v26 = vpop.f32.mrf.mxu1  ;;  %v3765_v45 = vpack.c.bf16 %v2274_v1, %v2273_v7  ;;  %v2212_v4 = vadd.f32 %v2211_v36, %v2163_v62 }
 0x24b   :  { %3789 = vst [vmem:[%s5346_s3 + $0x18] sm:$0xff] %v3765_v45   ;;  %v2239_v13 = vadd.f32 %v2212_v4, %v1786_v32 }
 0x24c   :  { %v1765_v3 = vpop.f32.mrf.mxu3 }
 0x24d   :  { %v1766_v27 = vadd.f32 %v1765_v3, %v5175_v54  ;;  %v2259_v49 = vadd.f32 %v5276_v44, %v2239_v13 }
 0x24e   :  { %v2115_v12 = vpop.f32.mrf.mxu2  ;;  %v2167_v21 = vpop.f32.mrf.mxu0 }
 0x24f   :  { %v2165_v5 = vadd.f32 %v2164_v28, %v2115_v12  ;;  %v1789_v63 = vadd.f32 %v1766_v27, %v5251_v53  ;;  %v2275_v29 = vmax.f32 %v2259_v49, 0.0 }
 0x251   :  { %v2216_v56 = vpop.f32.mrf.mxu1  ;;  %v2214_v47 = vadd.f32 %v2213_v26, %v2165_v5 }
 0x253   :  { %v2240_v31 = vadd.f32 %v2214_v47, %v1787_v10 }
 0x254   :  { %v1768_v18 = vpop.f32.mrf.mxu3 }
 0x255   :  { %v2260_v52 = vadd.f32 %v5276_v44, %v2240_v31  ;;  %v1769_v34 = vadd.f32 %v1768_v18, %v5206_v37 }
 0x256   :  { %v2118_v59 = vpop.f32.mrf.mxu2  ;;  %v2169_v35 = vpop.f32.mrf.mxu0 }
 0x257   :  { %v2276_v54 = vmax.f32 %v2260_v52, 0.0  ;;  %v2168_v55 = vadd.f32 %v2167_v21, %v2118_v59  ;;  %v1790_v19 = vadd.f32 %v1769_v34, %v5261_v57 }
 0x259   :  { %v2218_v25 = vpop.f32.mrf.mxu1  ;;  %v3770_v15 = vpack.c.bf16 %v2276_v54, %v2275_v29  ;;  %v2217_v53 = vadd.f32 %v2216_v56, %v2168_v55 }
 0x25b   :  { %3790 = vst [vmem:[%s5346_s3 + $0x20] sm:$0xff] %v3770_v15   ;;  %v2241_v8 = vadd.f32 %v2217_v53, %v1788_v50 }
 0x25c   :  { %v1770_v14 = vpop.f32.mrf.mxu3 }
 0x25d   :  { %v1771_v61 = vadd.f32 %v1770_v14, %v5219_v41  ;;  %v2261_v57 = vadd.f32 %v5276_v44, %v2241_v8 }
 0x25e   :  { %v2120_v6 = vpop.f32.mrf.mxu2  ;;  %v2172_v9 = vpop.f32.mrf.mxu0 }
 0x25f   :  { %v2170_v37 = vadd.f32 %v2169_v35, %v2120_v6  ;;  %v1791_v42 = vadd.f32 %v1771_v61, %v5268_v51  ;;  %v2277_v20 = vmax.f32 %v2261_v57, 0.0 }
 0x261   :  { %v2219_v32 = vadd.f32 %v2218_v25, %v2170_v37  ;;  %v2221_v46 = vpop.f32.mrf.mxu1 }
 0x263   :  { %v2242_v0 = vadd.f32 %v2219_v32, %v1789_v63 }
 0x264   :  { %v1773_v16 = vpop.f32.mrf.mxu3 }
 0x265   :  { %v2262_v2 = vadd.f32 %v5276_v44, %v2242_v0  ;;  %v1774_v43 = vadd.f32 %v1773_v16, %v5248_v30 }
 0x266   :  { %v2123_v24 = vpop.f32.mrf.mxu2  ;;  %v2174_v38 = vpop.f32.mrf.mxu0 }
 0x267   :  { %v2278_v17 = vmax.f32 %v2262_v2, 0.0  ;;  %v2173_v41 = vadd.f32 %v2172_v9, %v2123_v24  ;;  %v1792_v36 = vadd.f32 %v1774_v43, %v5217_v48 }
 0x269   :  { %v3775_v10 = vpack.c.bf16 %v2278_v17, %v2277_v20  ;;  %v2222_v51 = vadd.f32 %v2221_v46, %v2173_v41  ;;  %v2223_v39 = vpop.f32.mrf.mxu1 }
 0x26b   :  { %3791 = vst [vmem:[%s5346_s3 + $0x28] sm:$0xff] %v3775_v10   ;;  %v2243_v11 = vadd.f32 %v2222_v51, %v1790_v19 }
 0x26c   :  { %v1775_v22 = vpop.f32.mrf.mxu3 }
 0x26d   :  { %v1776_v23 = vadd.f32 %v1775_v22, %v5258_v40  ;;  %v2263_v7 = vadd.f32 %v5276_v44, %v2243_v11 }
 0x26e   :  { %v2125_v60 = vpop.f32.mrf.mxu2  ;;  %v2177_v1 = vpop.f32.mrf.mxu0 }
 0x26f   :  { %v2175_v30 = vadd.f32 %v2174_v38, %v2125_v60  ;;  %v1793_v58 = vadd.f32 %v1776_v23, %v5246_v33  ;;  %v2279_v45 = vmax.f32 %v2263_v7, 0.0 }
 0x271   :  { %v2224_v28 = vadd.f32 %v2223_v39, %v2175_v30  ;;  %v2226_v26 = vpop.f32.mrf.mxu1 }
 0x273   :  { %v2244_v48 = vadd.f32 %v2224_v28, %v1791_v42 }
 0x275   :  { %v2264_v62 = vadd.f32 %v5276_v44, %v2244_v48 }
 0x276   :  { %v2128_v50 = vpop.f32.mrf.mxu2  ;;  %v2179_v12 = vpop.f32.mrf.mxu0 }
 0x277   :  { %v2280_v4 = vmax.f32 %v2264_v62, 0.0  ;;  %v2178_v3 = vadd.f32 %v2177_v1, %v2128_v50 }
 0x279   :  { %v3780_v27 = vpack.c.bf16 %v2280_v4, %v2279_v45  ;;  %v2227_v40 = vadd.f32 %v2226_v26, %v2178_v3  ;;  %v2228_v5 = vpop.f32.mrf.mxu1 }
 0x27b   :  { %3792 = vst [vmem:[%s5346_s3 + $0x30] sm:$0xff] %v3780_v27   ;;  %v2245_v21 = vadd.f32 %v2227_v40, %v1792_v36 }
 0x27d   :  { %v2265_v63 = vadd.f32 %v5276_v44, %v2245_v21 }
 0x27e   :  { %v2130_v33 = vpop.f32.mrf.mxu2 }
 0x27f   :  { %v2180_v13 = vadd.f32 %v2179_v12, %v2130_v33  ;;  %v2281_v31 = vmax.f32 %v2265_v63, 0.0 }
 0x281   :  { %v2229_v56 = vadd.f32 %v2228_v5, %v2180_v13 }
 0x283   :  { %v2246_v47 = vadd.f32 %v2229_v56, %v1793_v58 }
 0x285   :  { %v2266_v49 = vadd.f32 %v5276_v44, %v2246_v47 }
 0x287   :  { %v2282_v52 = vmax.f32 %v2266_v49, 0.0 }
 0x289   :  { %v3785_v18 = vpack.c.bf16 %v2282_v52, %v2281_v31 }
 0x28b   :  { %3793 = vst [vmem:[%s5346_s3 + $0x38] sm:$0xff] %v3785_v18  }

// kernel: convnet_forward.9
= control target key start
LH: loop header
LB: loop body
LE: loop exit
PB: predicated region body
PF: predicated region fallthrough
CT: control target
= control target key end

     0   :  { %vm1359_vm0 = vcmask 523264   ;;  %s2503_s1 = inlined_call_operand.vmem [shape: bf16[2048,64], index: 1, kind: input, shape index: {}]   ;;  %s2504_s2 = inlined_call_operand.vmem [shape: f32[1,64], index: 2, kind: input, shape index: {}]   ;;  %s2505_s0 = inlined_call_operand.vmem [shape: bf16[8,2048], index: 0, kind: input, shape index: {}]   ;;  %s2506_s4 = inlined_call_operand.vmem [shape: f32[1,128], index: 4, kind: input, shape index: {}]   ;;  %s2507_s3 = inlined_call_operand.vmem [shape: bf16[64,128], index: 3, kind: input, shape index: {}]   ;;  %s2508_s5 = inlined_call_operand.vmem [shape: f32[8,128], index: 5, kind: output, shape index: {}]  }
   0x1   :  { %v1917_v0 = vld [vmem:[%s2503_s1 + $0x38] sm:$0xff]  ;;  %v1916_v4 = vld [vmem:[%s2503_s1 + $0x30] sm:$0xff]  ;;  %v1915_v8 = vld [vmem:[%s2503_s1 + $0x28] sm:$0xff] }
   0x2   :  { %v1925_v1 = vld [vmem:[%s2503_s1 + $0x78] sm:$0xff]  ;;  %1113 = vmatpush.bf16.msra.mxu0 %v1917_v0  ;;  %v1924_v5 = vld [vmem:[%s2503_s1 + $0x70] sm:$0xff]  ;;  %v1923_v9 = vld [vmem:[%s2503_s1 + $0x68] sm:$0xff] }
   0x3   :  { %v1933_v2 = vld [vmem:[%s2503_s1 + $0xb8] sm:$0xff]  ;;  %1126 = vmatpush.bf16.msra.mxu1 %v1925_v1  ;;  %v1932_v6 = vld [vmem:[%s2503_s1 + $0xb0] sm:$0xff]  ;;  %v1931_v10 = vld [vmem:[%s2503_s1 + $0xa8] sm:$0xff] }
   0x4   :  { %v1941_v3 = vld [vmem:[%s2503_s1 + $0xf8] sm:$0xff]  ;;  %1139 = vmatpush.bf16.msra.mxu2 %v1933_v2  ;;  %v1940_v7 = vld [vmem:[%s2503_s1 + $0xf0] sm:$0xff]  ;;  %v1939_v11 = vld [vmem:[%s2503_s1 + $0xe8] sm:$0xff] }
   0x5   :  { %1152 = vmatpush.bf16.msra.mxu3 %v1941_v3  ;;  %v1914_v12 = vld [vmem:[%s2503_s1 + $0x20] sm:$0xff]  ;;  %v1913_v16 = vld [vmem:[%s2503_s1 + $0x18] sm:$0xff]  ;;  %v1912_v20 = vld [vmem:[%s2503_s1 + $0x10] sm:$0xff] }
   0x6   :  { %1114 = vmatpush.bf16.msra.mxu0 %v1916_v4  ;;  %v1922_v13 = vld [vmem:[%s2503_s1 + $0x60] sm:$0xff]  ;;  %v1921_v17 = vld [vmem:[%s2503_s1 + $0x58] sm:$0xff]  ;;  %v1920_v21 = vld [vmem:[%s2503_s1 + $0x50] sm:$0xff] }
   0x7   :  { %1127 = vmatpush.bf16.msra.mxu1 %v1924_v5  ;;  %v1930_v14 = vld [vmem:[%s2503_s1 + $0xa0] sm:$0xff]  ;;  %v1929_v18 = vld [vmem:[%s2503_s1 + $0x98] sm:$0xff]  ;;  %v1928_v22 = vld [vmem:[%s2503_s1 + $0x90] sm:$0xff] }
   0x8   :  { %1140 = vmatpush.bf16.msra.mxu2 %v1932_v6  ;;  %v1938_v15 = vld [vmem:[%s2503_s1 + $0xe0] sm:$0xff]  ;;  %v1937_v19 = vld [vmem:[%s2503_s1 + $0xd8] sm:$0xff]  ;;  %v1936_v23 = vld [vmem:[%s2503_s1 + $0xd0] sm:$0xff] }
   0x9   :  { %1153 = vmatpush.bf16.msra.mxu3 %v1940_v7  ;;  %v1911_v24 = vld [vmem:[%s2503_s1 + $0x8] sm:$0xff]  ;;  %v21_v29 = vld [vmem:[%s2505_s0] sm:$0xff]  ;;  %v1949_v38 = vld [vmem:[%s2503_s1 + $0x138] sm:$0xff] }
   0xa   :  { %1115 = vmatpush.bf16.msra.mxu0 %v1915_v8  ;;  %v1919_v25 = vld [vmem:[%s2503_s1 + $0x48] sm:$0xff]  ;;  %v1910_v30 = vld [vmem:[%s2503_s1] sm:$0xff]  ;;  %v297_v33 = vunpack.c.l.b16 %v21_v29  ;;  %v298_v37 = vunpack.c.h.b16 %v21_v29  ;;  %v1957_v39 = vld [vmem:[%s2503_s1 + $0x178] sm:$0xff] }
   0xb   :  { %1128 = vmatpush.bf16.msra.mxu1 %v1923_v9  ;;  %v1927_v26 = vld [vmem:[%s2503_s1 + $0x88] sm:$0xff]  ;;  %v1918_v31 = vld [vmem:[%s2503_s1 + $0x40] sm:$0xff]  ;;  %v1965_v40 = vld [vmem:[%s2503_s1 + $0x1b8] sm:$0xff] }
   0xc   :  { %1141 = vmatpush.bf16.msra.mxu2 %v1931_v10  ;;  %v1935_v27 = vld [vmem:[%s2503_s1 + $0xc8] sm:$0xff]  ;;  %v1926_v34 = vld [vmem:[%s2503_s1 + $0x80] sm:$0xff]  ;;  %v1973_v41 = vld [vmem:[%s2503_s1 + $0x1f8] sm:$0xff]  ;;  %v313_v43 = vpack.c.b16 %v297_v33, %v297_v33  ;;  %v314_v45 = vpack.c.b16 %v298_v37, %v298_v37 }
   0xd   :  { %1154 = vmatpush.bf16.msra.mxu3 %v1939_v11  ;;  %v22_v28 = vld [vmem:[%s2505_s0 + $0x8] sm:$0xff]  ;;  %v1934_v35 = vld [vmem:[%s2503_s1 + $0xc0] sm:$0xff]  ;;  %v1948_v46 = vld [vmem:[%s2503_s1 + $0x130] sm:$0xff] }
   0xe   :  { %1116 = vmatpush.bf16.msra.mxu0 %v1914_v12  ;;  %v299_v32 = vunpack.c.l.b16 %v22_v28  ;;  %v300_v36 = vunpack.c.h.b16 %v22_v28  ;;  %v1956_v47 = vld [vmem:[%s2503_s1 + $0x170] sm:$0xff]  ;;  %v1947_v50 = vld [vmem:[%s2503_s1 + $0x128] sm:$0xff]  ;;  %v1946_v54 = vld [vmem:[%s2503_s1 + $0x120] sm:$0xff] }
   0xf   :  { %1129 = vmatpush.bf16.msra.mxu1 %v1922_v13  ;;  %v1964_v48 = vld [vmem:[%s2503_s1 + $0x1b0] sm:$0xff]  ;;  %v1955_v51 = vld [vmem:[%s2503_s1 + $0x168] sm:$0xff]  ;;  %v1954_v55 = vld [vmem:[%s2503_s1 + $0x160] sm:$0xff] }
  0x10   :  { %1142 = vmatpush.bf16.msra.mxu2 %v1930_v14  ;;  %v315_v42 = vpack.c.b16 %v299_v32, %v299_v32  ;;  %v316_v44 = vpack.c.b16 %v300_v36, %v300_v36  ;;  %v1972_v49 = vld [vmem:[%s2503_s1 + $0x1f0] sm:$0xff]  ;;  %v1963_v52 = vld [vmem:[%s2503_s1 + $0x1a8] sm:$0xff]  ;;  %v1962_v56 = vld [vmem:[%s2503_s1 + $0x1a0] sm:$0xff] }
  0x11   :  { %1155 = vmatpush.bf16.msra.mxu3 %v1938_v15  ;;  %v1971_v53 = vld [vmem:[%s2503_s1 + $0x1e8] sm:$0xff]  ;;  %v1970_v57 = vld [vmem:[%s2503_s1 + $0x1e0] sm:$0xff]  ;;  %v1945_v58 = vld [vmem:[%s2503_s1 + $0x118] sm:$0xff] }
  0x12   :  { %1117 = vmatpush.bf16.msra.mxu0 %v1913_v16  ;;  %v1953_v59 = vld [vmem:[%s2503_s1 + $0x158] sm:$0xff]  ;;  %v1944_v62 = vld [vmem:[%s2503_s1 + $0x110] sm:$0xff]  ;;  %v1943_v2 = vld [vmem:[%s2503_s1 + $0x108] sm:$0xff] }
  0x13   :  { %1130 = vmatpush.bf16.msra.mxu1 %v1921_v17  ;;  %v1961_v60 = vld [vmem:[%s2503_s1 + $0x198] sm:$0xff]  ;;  %v1952_v63 = vld [vmem:[%s2503_s1 + $0x150] sm:$0xff]  ;;  %v1951_v3 = vld [vmem:[%s2503_s1 + $0x148] sm:$0xff] }
  0x14   :  { %1143 = vmatpush.bf16.msra.mxu2 %v1929_v18  ;;  %v1969_v61 = vld [vmem:[%s2503_s1 + $0x1d8] sm:$0xff]  ;;  %v1960_v0 = vld [vmem:[%s2503_s1 + $0x190] sm:$0xff]  ;;  %v1959_v4 = vld [vmem:[%s2503_s1 + $0x188] sm:$0xff] }
  0x15   :  { %1156 = vmatpush.bf16.msra.mxu3 %v1937_v19  ;;  %v1968_v1 = vld [vmem:[%s2503_s1 + $0x1d0] sm:$0xff]  ;;  %v1967_v5 = vld [vmem:[%s2503_s1 + $0x1c8] sm:$0xff]  ;;  %v24_v6 = vld [vmem:[%s2505_s0 + $0x18] sm:$0xff] }
  0x16   :  { %1118 = vmatpush.bf16.msra.mxu0 %v1912_v20  ;;  %v23_v7 = vld [vmem:[%s2505_s0 + $0x10] sm:$0xff]  ;;  %v1942_v8 = vld [vmem:[%s2503_s1 + $0x100] sm:$0xff]  ;;  %v303_v10 = vunpack.c.l.b16 %v24_v6  ;;  %v304_v14 = vunpack.c.h.b16 %v24_v6  ;;  %v1981_v16 = vld [vmem:[%s2503_s1 + $0x238] sm:$0xff] }
  0x17   :  { %1131 = vmatpush.bf16.msra.mxu1 %v1920_v21  ;;  %v1950_v9 = vld [vmem:[%s2503_s1 + $0x140] sm:$0xff]  ;;  %v301_v11 = vunpack.c.l.b16 %v23_v7  ;;  %v302_v15 = vunpack.c.h.b16 %v23_v7  ;;  %v1989_v17 = vld [vmem:[%s2503_s1 + $0x278] sm:$0xff]  ;;  %v1979_v28 = vld [vmem:[%s2503_s1 + $0x228] sm:$0xff] }
  0x18   :  { %1144 = vmatpush.bf16.msra.mxu2 %v1928_v22  ;;  %v1958_v12 = vld [vmem:[%s2503_s1 + $0x180] sm:$0xff]  ;;  %v1997_v18 = vld [vmem:[%s2503_s1 + $0x2b8] sm:$0xff]  ;;  %v319_v20 = vpack.c.b16 %v303_v10, %v303_v10  ;;  %v320_v22 = vpack.c.b16 %v304_v14, %v304_v14  ;;  %v1987_v29 = vld [vmem:[%s2503_s1 + $0x268] sm:$0xff] }
  0x19   :  { %1157 = vmatpush.bf16.msra.mxu3 %v1936_v23  ;;  %v1966_v13 = vld [vmem:[%s2503_s1 + $0x1c0] sm:$0xff]  ;;  %v2005_v19 = vld [vmem:[%s2503_s1 + $0x2f8] sm:$0xff]  ;;  %v317_v21 = vpack.c.b16 %v301_v11, %v301_v11  ;;  %v318_v23 = vpack.c.b16 %v302_v15, %v302_v15  ;;  %v2011_v6 = vld [vmem:[%s2503_s1 + $0x328] sm:$0xff] }
  0x1a   :  { %1119 = vmatpush.bf16.msra.mxu0 %v1911_v24  ;;  %v1980_v24 = vld [vmem:[%s2503_s1 + $0x230] sm:$0xff]  ;;  %v1978_v32 = vld [vmem:[%s2503_s1 + $0x220] sm:$0xff]  ;;  %v1977_v36 = vld [vmem:[%s2503_s1 + $0x218] sm:$0xff] }
  0x1b   :  { %1132 = vmatpush.bf16.msra.mxu1 %v1919_v25  ;;  %v1988_v25 = vld [vmem:[%s2503_s1 + $0x270] sm:$0xff]  ;;  %v1986_v33 = vld [vmem:[%s2503_s1 + $0x260] sm:$0xff]  ;;  %v1985_v37 = vld [vmem:[%s2503_s1 + $0x258] sm:$0xff] }
  0x1c   :  { %1145 = vmatpush.bf16.msra.mxu2 %v1927_v26  ;;  %v1996_v26 = vld [vmem:[%s2503_s1 + $0x2b0] sm:$0xff]  ;;  %v2019_v7 = vld [vmem:[%s2503_s1 + $0x368] sm:$0xff]  ;;  %v2010_v10 = vld [vmem:[%s2503_s1 + $0x320] sm:$0xff] }
  0x1d   :  { %1158 = vmatpush.bf16.msra.mxu3 %v1935_v27  ;;  %v2004_v27 = vld [vmem:[%s2503_s1 + $0x2f0] sm:$0xff]  ;;  %v2018_v11 = vld [vmem:[%s2503_s1 + $0x360] sm:$0xff]  ;;  %v2009_v14 = vld [vmem:[%s2503_s1 + $0x318] sm:$0xff] }
  0x1e   :  { %1120 = vmatpush.bf16.msra.mxu0 %v1910_v30  ;;  %v1995_v30 = vld [vmem:[%s2503_s1 + $0x2a8] sm:$0xff]  ;;  %v2017_v15 = vld [vmem:[%s2503_s1 + $0x358] sm:$0xff] }
  0x1f   :  { %1133 = vmatpush.bf16.msra.mxu1 %v1918_v31  ;;  %v2003_v31 = vld [vmem:[%s2503_s1 + $0x2e8] sm:$0xff] }
  0x20   :  { %1146 = vmatpush.bf16.msra.mxu2 %v1926_v34  ;;  %v1994_v34 = vld [vmem:[%s2503_s1 + $0x2a0] sm:$0xff] }
  0x21   :  { %1159 = vmatpush.bf16.msra.mxu3 %v1934_v35  ;;  %1121 = vmatmul.bf16.vlgmr.msra.gmra.mxu0 %v313_v43  ;;  %v2002_v35 = vld [vmem:[%s2503_s1 + $0x2e0] sm:$0xff]  ;;  %v2000_v43 = vld [vmem:[%s2503_s1 + $0x2d0] sm:$0xff] }
  0x22   :  { %1165 = vmatpush.bf16.msrb.mxu0 %v1949_v38  ;;  %1134 = vmatmul.bf16.vlgmr.msra.gmra.mxu1 %v314_v45  ;;  %v1993_v38 = vld [vmem:[%s2503_s1 + $0x298] sm:$0xff]  ;;  %v1983_v45 = vld [vmem:[%s2503_s1 + $0x248] sm:$0xff] }
  0x23   :  { %1178 = vmatpush.bf16.msrb.mxu1 %v1957_v39  ;;  %1147 = vmatmul.bf16.vlgmr.msra.gmra.mxu2 %v315_v42  ;;  %v2001_v39 = vld [vmem:[%s2503_s1 + $0x2d8] sm:$0xff]  ;;  %v1992_v42 = vld [vmem:[%s2503_s1 + $0x290] sm:$0xff] }
  0x24   :  { %1191 = vmatpush.bf16.msrb.mxu2 %v1965_v40  ;;  %1160 = vmatmul.bf16.vlgmr.msra.gmra.mxu3 %v316_v44  ;;  %v1976_v40 = vld [vmem:[%s2503_s1 + $0x210] sm:$0xff]  ;;  %v1975_v44 = vld [vmem:[%s2503_s1 + $0x208] sm:$0xff] }
  0x25   :  { %1204 = vmatpush.bf16.msrb.mxu3 %v1973_v41  ;;  %v1984_v41 = vld [vmem:[%s2503_s1 + $0x250] sm:$0xff] }
  0x26   :  { %1166 = vmatpush.bf16.msrb.mxu0 %v1948_v46  ;;  %v1991_v46 = vld [vmem:[%s2503_s1 + $0x288] sm:$0xff] }
  0x27   :  { %1179 = vmatpush.bf16.msrb.mxu1 %v1956_v47  ;;  %v1999_v47 = vld [vmem:[%s2503_s1 + $0x2c8] sm:$0xff] }
  0x28   :  { %1192 = vmatpush.bf16.msrb.mxu2 %v1964_v48  ;;  %v25_v48 = vld [vmem:[%s2505_s0 + $0x20] sm:$0xff] }
  0x29   :  { %1205 = vmatpush.bf16.msrb.mxu3 %v1972_v49  ;;  %v26_v49 = vld [vmem:[%s2505_s0 + $0x28] sm:$0xff] }
  0x2a   :  { %1167 = vmatpush.bf16.msrb.mxu0 %v1947_v50  ;;  %v1974_v50 = vld [vmem:[%s2503_s1 + $0x200] sm:$0xff] }
  0x2b   :  { %1180 = vmatpush.bf16.msrb.mxu1 %v1955_v51  ;;  %v1982_v51 = vld [vmem:[%s2503_s1 + $0x240] sm:$0xff] }
  0x2c   :  { %1193 = vmatpush.bf16.msrb.mxu2 %v1963_v52  ;;  %v305_v52 = vunpack.c.l.b16 %v25_v48 }
  0x2d   :  { %1206 = vmatpush.bf16.msrb.mxu3 %v1971_v53  ;;  %v307_v53 = vunpack.c.l.b16 %v26_v49 }
  0x2e   :  { %1168 = vmatpush.bf16.msrb.mxu0 %v1946_v54  ;;  %v1990_v54 = vld [vmem:[%s2503_s1 + $0x280] sm:$0xff] }
  0x2f   :  { %1181 = vmatpush.bf16.msrb.mxu1 %v1954_v55  ;;  %v1998_v55 = vld [vmem:[%s2503_s1 + $0x2c0] sm:$0xff] }
  0x30   :  { %1194 = vmatpush.bf16.msrb.mxu2 %v1962_v56  ;;  %v306_v56 = vunpack.c.h.b16 %v25_v48 }
  0x31   :  { %1207 = vmatpush.bf16.msrb.mxu3 %v1970_v57  ;;  %v308_v57 = vunpack.c.h.b16 %v26_v49 }
  0x32   :  { %1169 = vmatpush.bf16.msrb.mxu0 %v1945_v58  ;;  %v2013_v58 = vld [vmem:[%s2503_s1 + $0x338] sm:$0xff] }
  0x33   :  { %1182 = vmatpush.bf16.msrb.mxu1 %v1953_v59  ;;  %v2021_v59 = vld [vmem:[%s2503_s1 + $0x378] sm:$0xff] }
  0x34   :  { %1195 = vmatpush.bf16.msrb.mxu2 %v1961_v60  ;;  %v2029_v60 = vld [vmem:[%s2503_s1 + $0x3b8] sm:$0xff] }
  0x35   :  { %1208 = vmatpush.bf16.msrb.mxu3 %v1969_v61  ;;  %v2037_v61 = vld [vmem:[%s2503_s1 + $0x3f8] sm:$0xff] }
  0x36   :  { %1170 = vmatpush.bf16.msrb.mxu0 %v1944_v62  ;;  %v321_v62 = vpack.c.b16 %v305_v52, %v305_v52 }
  0x37   :  { %1183 = vmatpush.bf16.msrb.mxu1 %v1952_v63  ;;  %v323_v63 = vpack.c.b16 %v307_v53, %v307_v53 }
  0x38   :  { %1196 = vmatpush.bf16.msrb.mxu2 %v1960_v0  ;;  %v322_v0 = vpack.c.b16 %v306_v56, %v306_v56 }
  0x39   :  { %1209 = vmatpush.bf16.msrb.mxu3 %v1968_v1  ;;  %v324_v1 = vpack.c.b16 %v308_v57, %v308_v57 }
  0x3a   :  { %1171 = vmatpush.bf16.msrb.mxu0 %v1943_v2  ;;  %v2012_v2 = vld [vmem:[%s2503_s1 + $0x330] sm:$0xff] }
  0x3b   :  { %1184 = vmatpush.bf16.msrb.mxu1 %v1951_v3  ;;  %v2020_v3 = vld [vmem:[%s2503_s1 + $0x370] sm:$0xff] }
  0x3c   :  { %1197 = vmatpush.bf16.msrb.mxu2 %v1959_v4  ;;  %v2028_v4 = vld [vmem:[%s2503_s1 + $0x3b0] sm:$0xff] }
  0x3d   :  { %1210 = vmatpush.bf16.msrb.mxu3 %v1967_v5  ;;  %v2036_v5 = vld [vmem:[%s2503_s1 + $0x3f0] sm:$0xff] }
  0x3e   :  { %1172 = vmatpush.bf16.msrb.mxu0 %v1942_v8  ;;  %v2027_v8 = vld [vmem:[%s2503_s1 + $0x3a8] sm:$0xff] }
  0x3f   :  { %1185 = vmatpush.bf16.msrb.mxu1 %v1950_v9  ;;  %v2035_v9 = vld [vmem:[%s2503_s1 + $0x3e8] sm:$0xff] }
  0x40   :  { %1198 = vmatpush.bf16.msrb.mxu2 %v1958_v12  ;;  %v2026_v12 = vld [vmem:[%s2503_s1 + $0x3a0] sm:$0xff] }
  0x41   :  { %1211 = vmatpush.bf16.msrb.mxu3 %v1966_v13  ;;  %1173 = vmatmul.bf16.vlgmr.msrb.gmra.mxu0 %v317_v21  ;;  %v2034_v13 = vld [vmem:[%s2503_s1 + $0x3e0] sm:$0xff]  ;;  %v2032_v21 = vld [vmem:[%s2503_s1 + $0x3d0] sm:$0xff] }
  0x42   :  { %1217 = vmatpush.bf16.msra.mxu0 %v1981_v16  ;;  %1186 = vmatmul.bf16.vlgmr.msrb.gmra.mxu1 %v318_v23  ;;  %v2025_v16 = vld [vmem:[%s2503_s1 + $0x398] sm:$0xff]  ;;  %v2015_v23 = vld [vmem:[%s2503_s1 + $0x348] sm:$0xff] }
  0x43   :  { %1230 = vmatpush.bf16.msra.mxu1 %v1989_v17  ;;  %1199 = vmatmul.bf16.vlgmr.msrb.gmra.mxu2 %v319_v20  ;;  %v2033_v17 = vld [vmem:[%s2503_s1 + $0x3d8] sm:$0xff]  ;;  %v2024_v20 = vld [vmem:[%s2503_s1 + $0x390] sm:$0xff] }
  0x44   :  { %1243 = vmatpush.bf16.msra.mxu2 %v1997_v18  ;;  %1212 = vmatmul.bf16.vlgmr.msrb.gmra.mxu3 %v320_v22  ;;  %v2008_v18 = vld [vmem:[%s2503_s1 + $0x310] sm:$0xff]  ;;  %v2007_v22 = vld [vmem:[%s2503_s1 + $0x308] sm:$0xff] }
  0x45   :  { %1256 = vmatpush.bf16.msra.mxu3 %v2005_v19  ;;  %v2016_v19 = vld [vmem:[%s2503_s1 + $0x350] sm:$0xff] }
  0x46   :  { %1218 = vmatpush.bf16.msra.mxu0 %v1980_v24  ;;  %v27_v24 = vld [vmem:[%s2505_s0 + $0x30] sm:$0xff] }
  0x47   :  { %1231 = vmatpush.bf16.msra.mxu1 %v1988_v25  ;;  %v2023_v25 = vld [vmem:[%s2503_s1 + $0x388] sm:$0xff] }
  0x48   :  { %1244 = vmatpush.bf16.msra.mxu2 %v1996_v26  ;;  %v2031_v26 = vld [vmem:[%s2503_s1 + $0x3c8] sm:$0xff] }
  0x49   :  { %1257 = vmatpush.bf16.msra.mxu3 %v2004_v27  ;;  %v28_v27 = vld [vmem:[%s2505_s0 + $0x38] sm:$0xff] }
  0x4a   :  { %1219 = vmatpush.bf16.msra.mxu0 %v1979_v28  ;;  %v309_v28 = vunpack.c.l.b16 %v27_v24 }
  0x4b   :  { %1232 = vmatpush.bf16.msra.mxu1 %v1987_v29  ;;  %v310_v29 = vunpack.c.h.b16 %v27_v24 }
  0x4c   :  { %1245 = vmatpush.bf16.msra.mxu2 %v1995_v30  ;;  %v2006_v30 = vld [vmem:[%s2503_s1 + $0x300] sm:$0xff] }
  0x4d   :  { %1258 = vmatpush.bf16.msra.mxu3 %v2003_v31  ;;  %v2014_v31 = vld [vmem:[%s2503_s1 + $0x340] sm:$0xff] }
  0x4e   :  { %1220 = vmatpush.bf16.msra.mxu0 %v1978_v32  ;;  %v311_v32 = vunpack.c.l.b16 %v28_v27 }
  0x4f   :  { %1233 = vmatpush.bf16.msra.mxu1 %v1986_v33  ;;  %v312_v33 = vunpack.c.h.b16 %v28_v27 }
  0x50   :  { %1246 = vmatpush.bf16.msra.mxu2 %v1994_v34  ;;  %v2022_v34 = vld [vmem:[%s2503_s1 + $0x380] sm:$0xff] }
  0x51   :  { %1259 = vmatpush.bf16.msra.mxu3 %v2002_v35  ;;  %v2030_v35 = vld [vmem:[%s2503_s1 + $0x3c0] sm:$0xff] }
  0x52   :  { %1221 = vmatpush.bf16.msra.mxu0 %v1977_v36  ;;  %v325_v36 = vpack.c.b16 %v309_v28, %v309_v28 }
  0x53   :  { %1234 = vmatpush.bf16.msra.mxu1 %v1985_v37  ;;  %v326_v37 = vpack.c.b16 %v310_v29, %v310_v29 }
  0x54   :  { %1247 = vmatpush.bf16.msra.mxu2 %v1993_v38  ;;  %v327_v38 = vpack.c.b16 %v311_v32, %v311_v32 }
  0x55   :  { %1260 = vmatpush.bf16.msra.mxu3 %v2001_v39  ;;  %v328_v39 = vpack.c.b16 %v312_v33, %v312_v33 }
  0x56   :  { %1222 = vmatpush.bf16.msra.mxu0 %v1976_v40  ;;  %v2042_v40 = vld [vmem:[%s2504_s2] ss:$0 sm:$0xff] }
  0x57   :  { %1235 = vmatpush.bf16.msra.mxu1 %v1984_v41 }
  0x58   :  { %1248 = vmatpush.bf16.msra.mxu2 %v1992_v42 }
  0x59   :  { %1261 = vmatpush.bf16.msra.mxu3 %v2000_v43 }
  0x5a   :  { %1223 = vmatpush.bf16.msra.mxu0 %v1975_v44 }
  0x5b   :  { %1236 = vmatpush.bf16.msra.mxu1 %v1983_v45 }
  0x5c   :  { %1249 = vmatpush.bf16.msra.mxu2 %v1991_v46 }
  0x5d   :  { %1262 = vmatpush.bf16.msra.mxu3 %v1999_v47 }
  0x5e   :  { %1224 = vmatpush.bf16.msra.mxu0 %v1974_v50 }
  0x5f   :  { %1237 = vmatpush.bf16.msra.mxu1 %v1982_v51 }
  0x60   :  { %1250 = vmatpush.bf16.msra.mxu2 %v1990_v54 }
  0x61   :  { %1263 = vmatpush.bf16.msra.mxu3 %v1998_v55  ;;  %1225 = vmatmul.bf16.vlgmr.msra.gmra.mxu0 %v321_v62 }
  0x62   :  { %1269 = vmatpush.bf16.msrb.mxu0 %v2013_v58  ;;  %1238 = vmatmul.bf16.vlgmr.msra.gmra.mxu1 %v322_v0 }
  0x63   :  { %1282 = vmatpush.bf16.msrb.mxu1 %v2021_v59  ;;  %1251 = vmatmul.bf16.vlgmr.msra.gmra.mxu2 %v323_v63  ;;  %v2041_v59 = vld [vmem:[%s2507_s3 + $0x18] sm:$0xff]  ;;  %v2040_v63 = vld [vmem:[%s2507_s3 + $0x10] sm:$0xff] }
  0x64   :  { %1295 = vmatpush.bf16.msrb.mxu2 %v2029_v60  ;;  %1264 = vmatmul.bf16.vlgmr.msra.gmra.mxu3 %v324_v1  ;;  %v2039_v1 = vld [vmem:[%s2507_s3 + $0x8] sm:$0xff] }
  0x65   :  { %1308 = vmatpush.bf16.msrb.mxu3 %v2037_v61 }
  0x66   :  { %1270 = vmatpush.bf16.msrb.mxu0 %v2012_v2 }
  0x67   :  { %1283 = vmatpush.bf16.msrb.mxu1 %v2020_v3 }
  0x68   :  { %1296 = vmatpush.bf16.msrb.mxu2 %v2028_v4 }
  0x69   :  { %1309 = vmatpush.bf16.msrb.mxu3 %v2036_v5 }
  0x6a   :  { %1271 = vmatpush.bf16.msrb.mxu0 %v2011_v6  ;;  %v2038_v6 = vld [vmem:[%s2507_s3] sm:$0xff] }
  0x6b   :  { %1284 = vmatpush.bf16.msrb.mxu1 %v2019_v7 }
  0x6c   :  { %1297 = vmatpush.bf16.msrb.mxu2 %v2027_v8 }
  0x6d   :  { %1310 = vmatpush.bf16.msrb.mxu3 %v2035_v9 }
  0x6e   :  { %1272 = vmatpush.bf16.msrb.mxu0 %v2010_v10 }
  0x6f   :  { %1285 = vmatpush.bf16.msrb.mxu1 %v2018_v11 }
  0x70   :  { %1298 = vmatpush.bf16.msrb.mxu2 %v2026_v12 }
  0x71   :  { %1311 = vmatpush.bf16.msrb.mxu3 %v2034_v13 }
  0x72   :  { %1273 = vmatpush.bf16.msrb.mxu0 %v2009_v14 }
  0x73   :  { %1286 = vmatpush.bf16.msrb.mxu1 %v2017_v15 }
  0x74   :  { %1299 = vmatpush.bf16.msrb.mxu2 %v2025_v16 }
  0x75   :  { %1312 = vmatpush.bf16.msrb.mxu3 %v2033_v17 }
  0x76   :  { %1274 = vmatpush.bf16.msrb.mxu0 %v2008_v18 }
  0x77   :  { %1287 = vmatpush.bf16.msrb.mxu1 %v2016_v19 }
  0x78   :  { %1300 = vmatpush.bf16.msrb.mxu2 %v2024_v20 }
  0x79   :  { %1313 = vmatpush.bf16.msrb.mxu3 %v2032_v21 }
  0x7a   :  { %1275 = vmatpush.bf16.msrb.mxu0 %v2007_v22 }
  0x7b   :  { %1288 = vmatpush.bf16.msrb.mxu1 %v2015_v23 }
  0x7c   :  { %1301 = vmatpush.bf16.msrb.mxu2 %v2023_v25 }
  0x7d   :  { %1314 = vmatpush.bf16.msrb.mxu3 %v2031_v26 }
  0x7e   :  { %1276 = vmatpush.bf16.msrb.mxu0 %v2006_v30 }
  0x7f   :  { %1289 = vmatpush.bf16.msrb.mxu1 %v2014_v31  ;;  %v2043_v31 = vld [vmem:[%s2506_s4] ss:$0 sm:$0xff] }
  0x80   :  { %1302 = vmatpush.bf16.msrb.mxu2 %v2022_v34 }
  0x81   :  { %1315 = vmatpush.bf16.msrb.mxu3 %v2030_v35  ;;  %1277 = vmatmul.bf16.vlgmr.msrb.gmra.mxu0 %v325_v36 }
  0x82   :  { %1290 = vmatmul.bf16.vlgmr.msrb.gmra.mxu1 %v326_v37  ;;  %1367 = vmatpush.bf16.msra.mxu0 %v2041_v59 }
  0x83   :  { %1303 = vmatmul.bf16.vlgmr.msrb.gmra.mxu2 %v327_v38 }
  0x84   :  { %1316 = vmatmul.bf16.vlgmr.msrb.gmra.mxu3 %v328_v39 }
  0x86   :  { %1368 = vmatpush.bf16.msra.mxu0 %v2040_v63 }
  0x8a   :  { %1369 = vmatpush.bf16.msra.mxu0 %v2039_v1 }
  0x8e   :  { %1370 = vmatpush.bf16.msra.mxu0 %v2038_v6 }
  0x9e   :  { %v1122_v41 = vpop.f32.mrf.mxu0 }
  0x9f   :  { %v1123_v42 = vadd.f32 %v2042_v40, %v1122_v41  ;;  %v1135_v43 = vpop.f32.mrf.mxu1 }
  0xa1   :  { %v1136_v44 = vadd.f32 %v1135_v43, %v1123_v42 }
  0xa6   :  { %v1148_v45 = vpop.f32.mrf.mxu2  ;;  %v1124_v48 = vpop.f32.mrf.mxu0 }
  0xa7   :  { %v1149_v46 = vadd.f32 %v1148_v45, %v1136_v44  ;;  %v1161_v47 = vpop.f32.mrf.mxu3  ;;  %v1137_v50 = vpop.f32.mrf.mxu1 }
  0xa9   :  { %v1162_v49 = vadd.f32 %v1161_v47, %v1149_v46 }
  0xae   :  { %v1150_v51 = vpop.f32.mrf.mxu2 }
  0xaf   :  { %v1163_v52 = vpop.f32.mrf.mxu3 }
  0xbe   :  { %v1174_v53 = vpop.f32.mrf.mxu0 }
  0xbf   :  { %v1187_v54 = vpop.f32.mrf.mxu1  ;;  %v1175_v2 = vadd.f32 %v1174_v53, %v1162_v49 }
  0xc1   :  { %v1188_v7 = vadd.f32 %v1187_v54, %v1175_v2 }
  0xc6   :  { %v1200_v55 = vpop.f32.mrf.mxu2  ;;  %v1176_v57 = vpop.f32.mrf.mxu0 }
  0xc7   :  { %v1213_v56 = vpop.f32.mrf.mxu3  ;;  %v1189_v58 = vpop.f32.mrf.mxu1  ;;  %v1201_v9 = vadd.f32 %v1200_v55, %v1188_v7 }
  0xc9   :  { %v1214_v12 = vadd.f32 %v1213_v56, %v1201_v9 }
  0xce   :  { %v1202_v60 = vpop.f32.mrf.mxu2 }
  0xcf   :  { %v1215_v61 = vpop.f32.mrf.mxu3 }
  0xde   :  { %v1226_v62 = vpop.f32.mrf.mxu0 }
  0xdf   :  { %v1239_v0 = vpop.f32.mrf.mxu1  ;;  %v1227_v13 = vadd.f32 %v1226_v62, %v1214_v12 }
  0xe1   :  { %v1240_v14 = vadd.f32 %v1239_v0, %v1227_v13 }
  0xe6   :  { %v1252_v3 = vpop.f32.mrf.mxu2  ;;  %v1228_v5 = vpop.f32.mrf.mxu0 }
  0xe7   :  { %v1265_v4 = vpop.f32.mrf.mxu3  ;;  %v1241_v8 = vpop.f32.mrf.mxu1  ;;  %v1253_v15 = vadd.f32 %v1252_v3, %v1240_v14 }
  0xe9   :  { %v1266_v16 = vadd.f32 %v1265_v4, %v1253_v15 }
  0xee   :  { %v1254_v10 = vpop.f32.mrf.mxu2 }
  0xef   :  { %v1267_v11 = vpop.f32.mrf.mxu3 }
  0xfe   :  { %v1278_v17 = vpop.f32.mrf.mxu0 }
  0xff   :  { %v1291_v18 = vpop.f32.mrf.mxu1  ;;  %v1279_v19 = vadd.f32 %v1278_v17, %v1266_v16 }
 0x101   :  { %v1292_v20 = vadd.f32 %v1291_v18, %v1279_v19 }
 0x106   :  { %v1304_v21 = vpop.f32.mrf.mxu2  ;;  %v1280_v24 = vpop.f32.mrf.mxu0 }
 0x107   :  { %v1317_v22 = vpop.f32.mrf.mxu3  ;;  %v1305_v23 = vadd.f32 %v1304_v21, %v1292_v20  ;;  %v1293_v25 = vpop.f32.mrf.mxu1 }
 0x109   :  { %v1318_v26 = vadd.f32 %v1317_v22, %v1305_v23 }
 0x10b   :  { %v1321_v27 = vmax.f32 %v1318_v26, 0.0 }
 0x10d   :  { %v1322_v28 = vpack.c.bf16 %v1321_v27, %v1321_v27 }
 0x10e   :  { %v1306_v29 = vpop.f32.mrf.mxu2 }
 0x10f   :  { %v1319_v30 = vpop.f32.mrf.mxu3  ;;  %1909 = vmatmul.msk.bf16.vlgmr.msra.gmra.mxu0 %vm1359_vm0, %v1322_v28 }
 0x18c   :  { %v1372_v32 = vpop.f32.mrf.mxu0 }
 0x18d   :  { %v1373_v33 = vadd.f32 %v2043_v31, %v1372_v32 }
 0x18f   :  { %1376 = vst [vmem:[%s2508_s5] sm:$0xff] %v1373_v33 }
 0x194   :  { %v1374_v34 = vpop.f32.mrf.mxu0 }

</bundles_post_ra>
